<compile_context>
chip_gen: v6e
topology: v6e:2x2x1
jax: 0.10.0
libtpu: 0.0.40
codegen_flags: <defaults>
</compile_context>

<pallas_src>
import functools
import math

import jax
import jax.numpy as jnp
from jax import lax
from jax.experimental import pallas as pl
from jax.experimental.pallas import tpu as pltpu


def _round_up(x, m):
    return ((x + m - 1) // m) * m


# -----------------------------------------------------------------------------
# In-kernel helpers (traced inside the pallas kernels)
# -----------------------------------------------------------------------------
def _ln(x, g, b, d_true, eps):
    """LayerNorm over the zero-padded last dim.

    Statistics use the TRUE width `d_true`; padded lanes of x are exactly zero by
    construction (padded weight cols / biases / gamma / beta are zero), so
    sum(x) and sum(x*x) over the padded width equal the unpadded sums."""
    s = jnp.sum(x, axis=-1, keepdims=True)
    mean = s / d_true
    var = jnp.sum(x * x, axis=-1, keepdims=True) / d_true - mean * mean
    return (x - mean) * lax.rsqrt(var + eps) * g + b


def _mha(q_all, k_all, v_all, wo, bo, neg_bias, batch, nhead, d_head_pad, scale):
    """Multi-head attention with the output projection folded per head.

    q_all: (B*Lq, H*Dhp) f32, k_all/v_all: (B*Lk, H*Dhp) f32,
    wo: (H*Dhp, Dp) bf16, bo: (1, Dp) f32, neg_bias: (B, 1, Lk) f32 or None.
    Per-head slices are 128-lane aligned (Dhp is a multiple of 128), so no
    sub-128-lane relayouts.  Matmuls run in bf16 with f32 accumulation; softmax
    math stays f32.  Returns (B*Lq, Dp) f32 (pre-residual attention output)."""
    hd = nhead * d_head_pad
    lq = q_all.shape[0] // batch
    lk = k_all.shape[0] // batch
    q3 = q_all.reshape(batch, lq, hd)
    k3 = k_all.reshape(batch, lk, hd)
    v3 = v_all.reshape(batch, lk, hd)
    acc = None
    for h in range(nhead):
        sl = slice(h * d_head_pad, (h + 1) * d_head_pad)
        qh = q3[:, :, sl].astype(jnp.bfloat16)
        kh = k3[:, :, sl].astype(jnp.bfloat16)
        vh = v3[:, :, sl].astype(jnp.bfloat16)
        s = jnp.einsum("bqd,bkd->bqk", qh, kh,
                       preferred_element_type=jnp.float32) * scale
        if neg_bias is not None:
            # -1e9 (not -inf): a fully padded key row gives a uniform distribution
            # instead of NaN.  TODO(synk): exact key_padding_mask -inf semantics.
            s = s - neg_bias
        s = s - jnp.max(s, axis=-1, keepdims=True)
        p = jnp.exp(s)
        p = p * pl.reciprocal(jnp.sum(p, axis=-1, keepdims=True), approx=True)
        ctx = jnp.einsum("bqk,bkd->bqd", p.astype(jnp.bfloat16), vh,
                         preferred_element_type=jnp.float32)          # (B, Lq, Dhp)
        contrib = jnp.dot(ctx.reshape(batch * lq, d_head_pad).astype(jnp.bfloat16),
                          wo[sl, :], preferred_element_type=jnp.float32)
        acc = contrib if acc is None else acc + contrib
    return acc + bo


# -----------------------------------------------------------------------------
# Fused encoder stack kernel: input_proj at layer 0 + num_enc encoder layers.
# grid=(num_enc,), "arbitrary"; activation resident in the constant-index output.
# -----------------------------------------------------------------------------
def _encoder_stack_kernel(src_ref, pos_ref, negb_ref, pw_ref, pb_ref, *refs,
                          nhead, d_model, d_head_pad, eps):
    (wqk, bqk, wv, bv, wo, bo, n1g, n1b,
     w1, b1, w2, b2, n2g, n2b, out_ref) = refs

    layer = pl.program_id(0)
    B, S, Dp = out_ref.shape
    M = B * S
    HD = nhead * d_head_pad
    scale = 1.0 / math.sqrt(d_model / nhead)

    # Layer 0: fused input_proj (Conv1d kernel_size=1 == per-position matmul).
    @pl.when(layer == 0)
    def _():
        src = src_ref[...].astype(jnp.bfloat16).reshape(M, -1)
        x0 = jnp.dot(src, pw_ref[...], preferred_element_type=jnp.float32) + pb_ref[...]
        out_ref[...] = x0.reshape(B, S, Dp)

    x2 = out_ref[...].reshape(M, Dp)           # resident f32 activation
    pos2 = pos_ref[...].reshape(M, Dp)
    neg_bias = negb_ref[...]                   # (B, 1, S)

    # Self-attention: q = k = x + pos (fused Q|K projection), v = x.
    qk_in = (x2 + pos2).astype(jnp.bfloat16)
    qk = jnp.dot(qk_in, wqk[0], preferred_element_type=jnp.float32) + bqk[0]
    v = jnp.dot(x2.astype(jnp.bfloat16), wv[0],
                preferred_element_type=jnp.float32) + bv[0]
    attn = _mha(qk[:, :HD], qk[:, HD:], v, wo[0], bo[0], neg_bias,
                B, nhead, d_head_pad, scale)
    y2 = _ln(x2 + attn, n1g[0], n1b[0], d_model, eps)

    # FFN (lin1 + ReLU + lin2 fused).
    h = jnp.maximum(
        jnp.dot(y2.astype(jnp.bfloat16), w1[0],
                preferred_element_type=jnp.float32) + b1[0], 0.0)
    ff = jnp.dot(h.astype(jnp.bfloat16), w2[0],
                 preferred_element_type=jnp.float32) + b2[0]
    out_ref[...] = _ln(y2 + ff, n2g[0], n2b[0], d_model, eps).reshape(B, S, Dp)


# -----------------------------------------------------------------------------
# Fused decoder stack kernel: num_dec decoder layers + dec_norm + class head
# (classification variant keeps only the LAST layer).  grid=(num_dec,),
# tgt carried in a VMEM scratch across layers.
# -----------------------------------------------------------------------------
def _decoder_stack_kernel(mem_ref, pos_ref, qpos_ref, negb_ref,
                          dng_ref, dnb_ref, cw_ref, cb_ref, *refs,
                          nhead, d_model, d_head_pad, eps):
    (s_wqk, s_bqk, s_wv, s_bv, s_wo, s_bo,
     c_wq, c_bq, c_wk, c_bk, c_wv, c_bv, c_wo, c_bo,
     n1g, n1b, n2g, n2b, n3g, n3b,
     w1, b1, w2, b2, logits_ref, tgt_ref) = refs

    layer = pl.program_id(0)
    nlayers = pl.num_programs(0)
    B, Q, Dp = tgt_ref.shape
    S = mem_ref.shape[1]
    Mq, Ms = B * Q, B * S
    HD = nhead * d_head_pad
    scale = 1.0 / math.sqrt(d_model / nhead)

    @pl.when(layer == 0)
    def _():
        tgt_ref[...] = jnp.zeros_like(tgt_ref)     # DETR decoder tgt starts at 0

    tgt2 = tgt_ref[...].reshape(Mq, Dp)
    mem2 = mem_ref[...].reshape(Ms, Dp)
    pos2 = pos_ref[...].reshape(Ms, Dp)
    qpos2 = qpos_ref[...].reshape(Mq, Dp)
    neg_bias = negb_ref[...]                        # (B, 1, S)

    # Decoder self-attention (no key-padding mask), q = k = tgt + query_pos.
    qk_in = (tgt2 + qpos2).astype(jnp.bfloat16)
    qk = jnp.dot(qk_in, s_wqk[0], preferred_element_type=jnp.float32) + s_bqk[0]
    v = jnp.dot(tgt2.astype(jnp.bfloat16), s_wv[0],
                preferred_element_type=jnp.float32) + s_bv[0]
    sa = _mha(qk[:, :HD], qk[:, HD:], v, s_wo[0], s_bo[0], None,
              B, nhead, d_head_pad, scale)
    x2 = _ln(tgt2 + sa, n1g[0], n1b[0], d_model, eps)

    # Cross-attention: queries -> encoder memory (key-padding mask).
    q = jnp.dot((x2 + qpos2).astype(jnp.bfloat16), c_wq[0],
                preferred_element_type=jnp.float32) + c_bq[0]
    k = jnp.dot((mem2 + pos2).astype(jnp.bfloat16), c_wk[0],
                preferred_element_type=jnp.float32) + c_bk[0]
    vv = jnp.dot(mem2.astype(jnp.bfloat16), c_wv[0],
                 preferred_element_type=jnp.float32) + c_bv[0]
    ca = _mha(q, k, vv, c_wo[0], c_bo[0], neg_bias, B, nhead, d_head_pad, scale)
    y2 = _ln(x2 + ca, n2g[0], n2b[0], d_model, eps)

    # FFN.
    h = jnp.maximum(
        jnp.dot(y2.astype(jnp.bfloat16), w1[0],
                preferred_element_type=jnp.float32) + b1[0], 0.0)
    ff = jnp.dot(h.astype(jnp.bfloat16), w2[0],
                 preferred_element_type=jnp.float32) + b2[0]
    z2 = _ln(y2 + ff, n3g[0], n3b[0], d_model, eps)
    tgt_ref[...] = z2.reshape(B, Q, Dp)

    # Classification head only on the last decoder layer (aux outputs discarded).
    @pl.when(layer == nlayers - 1)
    def _():
        hs = _ln(z2, dng_ref[...], dnb_ref[...], d_model, eps)
        logits = jnp.dot(hs.astype(jnp.bfloat16), cw_ref[...],
                         preferred_element_type=jnp.float32) + cb_ref[...]
        logits_ref[...] = logits.reshape(B, Q, -1)


# -----------------------------------------------------------------------------
# BlockSpec helpers
# -----------------------------------------------------------------------------
def _const_spec(a):
    """Whole array as one block, constant index across the layer grid."""
    nd = a.ndim
    return pl.BlockSpec(tuple(a.shape), lambda l, nd=nd: (0,) * nd)


def _layer_spec(a):
    """Per-layer slice of a (num_layers, ...) stacked weight; streamed per step."""
    nd = a.ndim
    return pl.BlockSpec((1,) + tuple(a.shape[1:]),
                        lambda l, nd=nd: (l,) + (0,) * (nd - 1))


_ENC_KEYS = ("wqk", "bqk", "wv", "bv", "wo", "bo", "n1g", "n1b",
             "w1", "b1", "w2", "b2", "n2g", "n2b")
_DEC_KEYS = ("s_wqk", "s_bqk", "s_wv", "s_bv", "s_wo", "s_bo",
             "c_wq", "c_bq", "c_wk", "c_bk", "c_wv", "c_bv", "c_wo", "c_bo",
             "n1g", "n1b", "n2g", "n2b", "n3g", "n3b",
             "w1", "b1", "w2", "b2")


# -----------------------------------------------------------------------------
# Kernel wrappers
# -----------------------------------------------------------------------------
def encoder_stack(enc, src_feat, pos, neg_bias, proj_w, proj_b, *,
                  nhead, d_model, d_head_pad, eps=1e-5):
    B, S, _ = src_feat.shape
    Dp = proj_w.shape[1]
    num_layers = enc["wqk"].shape[0]
    const_ins = [src_feat, pos, neg_bias, proj_w, proj_b]
    layer_ins = [enc[k] for k in _ENC_KEYS]
    return pl.pallas_call(
        functools.partial(_encoder_stack_kernel, nhead=nhead, d_model=d_model,
                          d_head_pad=d_head_pad, eps=eps),
        out_shape=jax.ShapeDtypeStruct((B, S, Dp), jnp.float32),
        grid=(num_layers,),
        in_specs=[_const_spec(a) for a in const_ins]
                 + [_layer_spec(a) for a in layer_ins],
        out_specs=pl.BlockSpec((B, S, Dp), lambda l: (0, 0, 0)),
        compiler_params=pltpu.CompilerParams(dimension_semantics=("arbitrary",)),
    )(*const_ins, *layer_ins)


def decoder_stack(dec, memory, pos, query_pos_b, neg_bias, dec_ng, dec_nb,
                  class_w, class_b, *, nhead, d_model, d_head_pad, eps=1e-5):
    B, S, Dp = memory.shape
    Q = query_pos_b.shape[1]
    NCp = class_w.shape[1]
    num_layers = dec["s_wqk"].shape[0]
    const_ins = [memory, pos, query_pos_b, neg_bias, dec_ng, dec_nb,
                 class_w, class_b]
    layer_ins = [dec[k] for k in _DEC_KEYS]
    return pl.pallas_call(
        functools.partial(_decoder_stack_kernel, nhead=nhead, d_model=d_model,
                          d_head_pad=d_head_pad, eps=eps),
        out_shape=jax.ShapeDtypeStruct((B, Q, NCp), jnp.float32),
        grid=(num_layers,),
        in_specs=[_const_spec(a) for a in const_ins]
                 + [_layer_spec(a) for a in layer_ins],
        out_specs=pl.BlockSpec((B, Q, NCp), lambda l: (0, 0, 0)),
        scratch_shapes=[pltpu.VMEM((B, Q, Dp), jnp.float32)],
        compiler_params=pltpu.CompilerParams(dimension_semantics=("arbitrary",)),
    )(*const_ins, *layer_ins)


# -----------------------------------------------------------------------------
# Backbone stand-in (external module in the original code; plain JAX glue)
# -----------------------------------------------------------------------------
# TODO(synk): the real backbone is an injected external torch module (backbone.py);
# a minimal deterministic channels-last stand-in is used to produce features, the
# key-padding mask and a sinusoidal positional encoding (lane-padded with zeros).
def backbone_forward(bp, samples_t, samples_mask, saccades_t):
    B, _, S = samples_t.shape
    feat_real = (jnp.einsum("bcs,co->bso", samples_t, bp["w_feat"])
                 + jnp.einsum("bcs,co->bso", saccades_t, bp["w_sac"]))
    feat = jnp.zeros((B, S, bp["c_pad"]), jnp.float32)
    feat = feat.at[:, :, :feat_real.shape[-1]].set(feat_real)

    d, dp = bp["d_model"], bp["d_pad"]
    pos_idx = jnp.arange(S, dtype=jnp.float32)
    dim = jnp.arange(d // 2, dtype=jnp.float32)
    freq = 1.0 / (10000.0 ** (2.0 * dim / d))
    ang = pos_idx[:, None] * freq[None, :]                          # (S, d//2)
    pos_real = jnp.concatenate([jnp.sin(ang), jnp.cos(ang)], axis=-1)
    pos = jnp.zeros((B, S, dp), jnp.float32)
    pos = pos.at[:, :, :d].set(jnp.broadcast_to(pos_real[None], (B, S, d)))
    return feat, samples_mask, pos


# -----------------------------------------------------------------------------
# DETR forward
# -----------------------------------------------------------------------------
def detr_forward(params, samples_t, samples_mask, saccades_t, saccades_mask):
    dims = params["dims"]
    nhead, d_model, dhp = dims["nhead"], dims["d_model"], dims["d_head_pad"]

    feat, mask, pos = backbone_forward(params["backbone"], samples_t,
                                       samples_mask, saccades_t)
    B, S, _ = feat.shape
    # additive key-padding bias, computed ONCE (hoisted out of all head loops)
    neg_bias = (mask.astype(jnp.float32) * 1e9).reshape(B, 1, S)

    memory = encoder_stack(params["enc"], feat, pos, neg_bias,
                           params["input_proj_w"], params["input_proj_b"],
                           nhead=nhead, d_model=d_model, d_head_pad=dhp)

    Q, Dp = params["query_embed"].shape
    query_pos_b = jnp.broadcast_to(params["query_embed"][None], (B, Q, Dp))
    logits_pad = decoder_stack(params["dec"], memory, pos, query_pos_b, neg_bias,
                               params["dec_norm_g"], params["dec_norm_b"],
                               params["class_w"], params["class_b"],
                               nhead=nhead, d_model=d_model, d_head_pad=dhp)
    return {"pred_logits": logits_pad[:, :, :dims["num_classes"]]}


# -----------------------------------------------------------------------------
# Parameter initialization: weights pre-transposed (in, out), zero-padded to
# 128-lane multiples, matmul weights in bf16; per-layer weights stacked on a
# leading layer axis for the fused-stack kernels.
# -----------------------------------------------------------------------------
def init_params(key, *, backbone_channels, d_model, nhead, dim_ff,
                num_queries, num_classes, num_enc, num_dec):
    d_head = d_model // nhead
    DP = _round_up(d_model, 128)
    DHP = _round_up(d_head, 128)          # per-head slot, 128-lane aligned
    FP = _round_up(dim_ff, 128)           # TODO(synk): prefer 256 on v6e/v7x
    c_in = backbone_channels * 4 * 4
    CP = _round_up(c_in, 128)
    NCP = _round_up(num_classes, 128)
    HD = nhead * DHP

    keys = iter(jax.random.split(key, 1024))

    def nrm(shape, scale=0.02):
        return scale * jax.random.normal(next(keys), shape, jnp.float32)

    def pad_mat(real, rows, cols):
        w = jnp.zeros((rows, cols), jnp.float32)
        w = w.at[:real.shape[0], :real.shape[1]].set(real)
        return w.astype(jnp.bfloat16)

    def head_proj():
        """(DP, H*DHP) bf16; real (d_model, d_head) block in each head slot."""
        w = jnp.zeros((DP, HD), jnp.float32)
        for h in range(nhead):
            w = w.at[:d_model, h * DHP:h * DHP + d_head].set(nrm((d_model, d_head)))
        return w.astype(jnp.bfloat16)

    def head_out():
        """(H*DHP, DP) bf16 output projection, per-head row blocks."""
        w = jnp.zeros((HD, DP), jnp.float32)
        for h in range(nhead):
            w = w.at[h * DHP:h * DHP + d_head, :d_model].set(nrm((d_head, d_model)))
        return w.astype(jnp.bfloat16)

    def gamma():
        return jnp.zeros((1, DP), jnp.float32).at[:, :d_model].set(1.0)

    def zf(shape):
        return jnp.zeros(shape, jnp.float32)

    def enc_layer():
        return dict(
            wqk=jnp.concatenate([head_proj(), head_proj()], axis=1),
            bqk=zf((1, 2 * HD)),
            wv=head_proj(), bv=zf((1, HD)),
            wo=head_out(), bo=zf((1, DP)),
            n1g=gamma(), n1b=zf((1, DP)),
            w1=pad_mat(nrm((d_model, dim_ff)), DP, FP), b1=zf((1, FP)),
            w2=pad_mat(nrm((dim_ff, d_model)), FP, DP), b2=zf((1, DP)),
            n2g=gamma(), n2b=zf((1, DP)))

    def dec_layer():
        return dict(
            s_wqk=jnp.concatenate([head_proj(), head_proj()], axis=1),
            s_bqk=zf((1, 2 * HD)),
            s_wv=head_proj(), s_bv=zf((1, HD)),
            s_wo=head_out(), s_bo=zf((1, DP)),
            c_wq=head_proj(), c_bq=zf((1, HD)),
            c_wk=head_proj(), c_bk=zf((1, HD)),
            c_wv=head_proj(), c_bv=zf((1, HD)),
            c_wo=head_out(), c_bo=zf((1, DP)),
            n1g=gamma(), n1b=zf((1, DP)),
            n2g=gamma(), n2b=zf((1, DP)),
            n3g=gamma(), n3b=zf((1, DP)),
            w1=pad_mat(nrm((d_model, dim_ff)), DP, FP), b1=zf((1, FP)),
            w2=pad_mat(nrm((dim_ff, d_model)), FP, DP), b2=zf((1, DP)))

    def stack(layers):
        return {k: jnp.stack([l[k] for l in layers]) for k in layers[0]}

    query_embed = jnp.zeros((num_queries, DP), jnp.float32)
    query_embed = query_embed.at[:, :d_model].set(
        nrm((num_queries, d_model), scale=1.0))

    return dict(
        dims=dict(d_model=d_model, nhead=nhead, d_head_pad=DHP,
                  num_classes=num_classes),
        backbone=dict(w_feat=nrm((backbone_channels, c_in)),
                      w_sac=nrm((2, c_in)),
                      d_model=d_model, d_pad=DP, c_pad=CP),
        input_proj_w=pad_mat(nrm((c_in, d_model)), CP, DP),
        input_proj_b=zf((1, DP)),
        query_embed=query_embed,
        class_w=pad_mat(nrm((d_model, num_classes)), DP, NCP),
        class_b=zf((1, NCP)),
        dec_norm_g=gamma(), dec_norm_b=zf((1, DP)),
        enc=stack([enc_layer() for _ in range(num_enc)]),
        dec=stack([dec_layer() for _ in range(num_dec)]),
    )


# -----------------------------------------------------------------------------
# Main
# -----------------------------------------------------------------------------
if __name__ == "__main__":
    B, S = 2, 16
    backbone_channels = 2                     # -> C_in = 2 * 4 * 4 = 32
    d_model, nhead, dim_ff = 32, 4, 64
    num_queries, num_classes = 8, 10
    num_enc, num_dec = 2, 2

    key = jax.random.PRNGKey(0)
    k1, k2 = jax.random.split(key, 2)
    samples_t = jax.random.normal(k1, (B, backbone_channels, S), jnp.float32)
    saccades_t = jax.random.normal(k2, (B, 2, S), jnp.float32)
    # binary masks: 1 on padded saccades
    samples_mask = jnp.zeros((B, S), jnp.float32).at[1, -2:].set(1.0)
    saccades_mask = samples_mask

    params = init_params(jax.random.PRNGKey(42),
                         backbone_channels=backbone_channels, d_model=d_model,
                         nhead=nhead, dim_ff=dim_ff, num_queries=num_queries,
                         num_classes=num_classes, num_enc=num_enc,
                         num_dec=num_dec)

    out = detr_forward(params, samples_t, samples_mask, saccades_t,
                       saccades_mask)
    logits = jax.block_until_ready(out["pred_logits"])
    assert logits.shape == (B, num_queries, num_classes), logits.shape
    assert bool(jnp.all(jnp.isfinite(logits)))
    print("KERNEL_OK")
</pallas_src>

<mosaic_0001>
module attributes {stable_mosaic.version = 11 : i64} {
  func.func @_encoder_stack_kernel(%arg0: i32, %arg1: memref<2x16x128xf32, #tpu.memory_space<vmem>>, %arg2: memref<2x16x128xf32, #tpu.memory_space<vmem>>, %arg3: memref<2x1x16xf32, #tpu.memory_space<vmem>>, %arg4: memref<128x128xbf16, #tpu.memory_space<vmem>>, %arg5: memref<1x128xf32, #tpu.memory_space<vmem>>, %arg6: memref<1x128x1024xbf16, #tpu.memory_space<vmem>>, %arg7: memref<1x1x1024xf32, #tpu.memory_space<vmem>>, %arg8: memref<1x128x512xbf16, #tpu.memory_space<vmem>>, %arg9: memref<1x1x512xf32, #tpu.memory_space<vmem>>, %arg10: memref<1x512x128xbf16, #tpu.memory_space<vmem>>, %arg11: memref<1x1x128xf32, #tpu.memory_space<vmem>>, %arg12: memref<1x1x128xf32, #tpu.memory_space<vmem>>, %arg13: memref<1x1x128xf32, #tpu.memory_space<vmem>>, %arg14: memref<1x128x128xbf16, #tpu.memory_space<vmem>>, %arg15: memref<1x1x128xf32, #tpu.memory_space<vmem>>, %arg16: memref<1x128x128xbf16, #tpu.memory_space<vmem>>, %arg17: memref<1x1x128xf32, #tpu.memory_space<vmem>>, %arg18: memref<1x1x128xf32, #tpu.memory_space<vmem>>, %arg19: memref<1x1x128xf32, #tpu.memory_space<vmem>>, %arg20: memref<2x16x128xf32, #tpu.memory_space<vmem>>) attributes {dimension_semantics = [#tpu.dimension_semantics<arbitrary>], iteration_bounds = array<i64: 2>, scalar_prefetch = 0 : i64, scratch_operands = 0 : i64, tpu.core_type = #tpu.core_type<tc>, window_params = [{pipeline_mode = #tpu.pipeline_mode<synchronous>, transform_indices = @transform_0, window_bounds = array<i64: 2, 16, 128>}, {pipeline_mode = #tpu.pipeline_mode<synchronous>, transform_indices = @transform_1, window_bounds = array<i64: 2, 16, 128>}, {pipeline_mode = #tpu.pipeline_mode<synchronous>, transform_indices = @transform_2, window_bounds = array<i64: 2, 1, 16>}, {pipeline_mode = #tpu.pipeline_mode<synchronous>, transform_indices = @transform_3, window_bounds = array<i64: 128, 128>}, {pipeline_mode = #tpu.pipeline_mode<synchronous>, transform_indices = @transform_4, window_bounds = array<i64: 1, 128>}, {transform_indices = @transform_5, window_bounds = array<i64: 1, 128, 1024>}, {transform_indices = @transform_6, window_bounds = array<i64: 1, 1, 1024>}, {transform_indices = @transform_7, window_bounds = array<i64: 1, 128, 512>}, {transform_indices = @transform_8, window_bounds = array<i64: 1, 1, 512>}, {transform_indices = @transform_9, window_bounds = array<i64: 1, 512, 128>}, {transform_indices = @transform_10, window_bounds = array<i64: 1, 1, 128>}, {transform_indices = @transform_11, window_bounds = array<i64: 1, 1, 128>}, {transform_indices = @transform_12, window_bounds = array<i64: 1, 1, 128>}, {transform_indices = @transform_13, window_bounds = array<i64: 1, 128, 128>}, {transform_indices = @transform_14, window_bounds = array<i64: 1, 1, 128>}, {transform_indices = @transform_15, window_bounds = array<i64: 1, 128, 128>}, {transform_indices = @transform_16, window_bounds = array<i64: 1, 1, 128>}, {transform_indices = @transform_17, window_bounds = array<i64: 1, 1, 128>}, {transform_indices = @transform_18, window_bounds = array<i64: 1, 1, 128>}, {pipeline_mode = #tpu.pipeline_mode<synchronous>, transform_indices = @transform_19, window_bounds = array<i64: 2, 16, 128>}]} {
    %c0_i32 = arith.constant 0 : i32
    %0 = arith.cmpi eq, %arg0, %c0_i32 : i32
    %1 = arith.extui %0 : i1 to i32
    %c0_i32_0 = arith.constant 0 : i32
    %2 = arith.cmpi ne, %1, %c0_i32_0 : i32
    scf.if %2 {
      %c0_92 = arith.constant 0 : index
      %c0_93 = arith.constant 0 : index
      %c0_94 = arith.constant 0 : index
      %221 = vector.load %arg1[%c0_92, %c0_93, %c0_94] : memref<2x16x128xf32, #tpu.memory_space<vmem>>, vector<2x16x128xf32>
      %222 = arith.truncf %221 : vector<2x16x128xf32> to vector<2x16x128xbf16>
      %223 = vector.shape_cast %222 : vector<2x16x128xbf16> to vector<32x128xbf16>
      %c0_95 = arith.constant 0 : index
      %c0_96 = arith.constant 0 : index
      %224 = vector.load %arg4[%c0_95, %c0_96] : memref<128x128xbf16, #tpu.memory_space<vmem>>, vector<128x128xbf16>
      %cst_97 = arith.constant dense<0.000000e+00> : vector<32x128xf32>
      %225 = tpu.matmul %223, %224, %cst_97 {dimension_numbers = #tpu.dot_dimension_numbers<[1], [0], [0], [1], [0, 0, 1, 1], [], []>} : vector<32x128xbf16>, vector<128x128xbf16>, vector<32x128xf32> -> vector<32x128xf32>
      %c0_98 = arith.constant 0 : index
      %c0_99 = arith.constant 0 : index
      %226 = vector.load %arg5[%c0_98, %c0_99] : memref<1x128xf32, #tpu.memory_space<vmem>>, vector<1x128xf32>
      %227 = vector.broadcast %226 : vector<1x128xf32> to vector<32x128xf32>
      %228 = arith.addf %225, %227 : vector<32x128xf32>
      %229 = vector.shape_cast %228 : vector<32x128xf32> to vector<2x16x128xf32>
      %c0_100 = arith.constant 0 : index
      %c0_101 = arith.constant 0 : index
      %c0_102 = arith.constant 0 : index
      %230 = vector.load %arg20[%c0_100, %c0_101, %c0_102] : memref<2x16x128xf32, #tpu.memory_space<vmem>>, vector<2x16x128xf32>
      tpu.vector_store %arg20[%c0_100, %c0_101, %c0_102], %229 {strides = array<i32>} : memref<2x16x128xf32, #tpu.memory_space<vmem>>, vector<2x16x128xf32>,
    } else {
    }
    %c0 = arith.constant 0 : index
    %c0_1 = arith.constant 0 : index
    %c0_2 = arith.constant 0 : index
    %3 = vector.load %arg20[%c0, %c0_1, %c0_2] : memref<2x16x128xf32, #tpu.memory_space<vmem>>, vector<2x16x128xf32>
    %4 = vector.shape_cast %3 : vector<2x16x128xf32> to vector<32x128xf32>
    %c0_3 = arith.constant 0 : index
    %c0_4 = arith.constant 0 : index
    %c0_5 = arith.constant 0 : index
    %5 = vector.load %arg2[%c0_3, %c0_4, %c0_5] : memref<2x16x128xf32, #tpu.memory_space<vmem>>, vector<2x16x128xf32>
    %6 = vector.shape_cast %5 : vector<2x16x128xf32> to vector<32x128xf32>
    %c0_6 = arith.constant 0 : index
    %c0_7 = arith.constant 0 : index
    %c0_8 = arith.constant 0 : index
    %7 = vector.load %arg3[%c0_6, %c0_7, %c0_8] : memref<2x1x16xf32, #tpu.memory_space<vmem>>, vector<2x1x16xf32>
    %8 = arith.addf %4, %6 : vector<32x128xf32>
    %9 = arith.truncf %8 : vector<32x128xf32> to vector<32x128xbf16>
    %c0_9 = arith.constant 0 : index
    %c0_10 = arith.constant 0 : index
    %c0_11 = arith.constant 0 : index
    %10 = vector.load %arg6[%c0_9, %c0_10, %c0_11] : memref<1x128x1024xbf16, #tpu.memory_space<vmem>>, vector<1x128x1024xbf16>
    %11 = vector.shape_cast %10 : vector<1x128x1024xbf16> to vector<128x1024xbf16>
    %cst = arith.constant dense<0.000000e+00> : vector<32x1024xf32>
    %12 = tpu.matmul %9, %11, %cst {dimension_numbers = #tpu.dot_dimension_numbers<[1], [0], [0], [1], [0, 0, 1, 1], [], []>} : vector<32x128xbf16>, vector<128x1024xbf16>, vector<32x1024xf32> -> vector<32x1024xf32>
    %c0_12 = arith.constant 0 : index
    %c0_13 = arith.constant 0 : index
    %c0_14 = arith.constant 0 : index
    %13 = vector.load %arg7[%c0_12, %c0_13, %c0_14] : memref<1x1x1024xf32, #tpu.memory_space<vmem>>, vector<1x1x1024xf32>
    %14 = vector.shape_cast %13 : vector<1x1x1024xf32> to vector<1x1024xf32>
    %15 = vector.broadcast %14 : vector<1x1024xf32> to vector<32x1024xf32>
    %16 = arith.addf %12, %15 : vector<32x1024xf32>
    %17 = arith.truncf %4 : vector<32x128xf32> to vector<32x128xbf16>
    %c0_15 = arith.constant 0 : index
    %c0_16 = arith.constant 0 : index
    %c0_17 = arith.constant 0 : index
    %18 = vector.load %arg8[%c0_15, %c0_16, %c0_17] : memref<1x128x512xbf16, #tpu.memory_space<vmem>>, vector<1x128x512xbf16>
    %19 = vector.shape_cast %18 : vector<1x128x512xbf16> to vector<128x512xbf16>
    %cst_18 = arith.constant dense<0.000000e+00> : vector<32x512xf32>
    %20 = tpu.matmul %17, %19, %cst_18 {dimension_numbers = #tpu.dot_dimension_numbers<[1], [0], [0], [1], [0, 0, 1, 1], [], []>} : vector<32x128xbf16>, vector<128x512xbf16>, vector<32x512xf32> -> vector<32x512xf32>
    %c0_19 = arith.constant 0 : index
    %c0_20 = arith.constant 0 : index
    %c0_21 = arith.constant 0 : index
    %21 = vector.load %arg9[%c0_19, %c0_20, %c0_21] : memref<1x1x512xf32, #tpu.memory_space<vmem>>, vector<1x1x512xf32>
    %22 = vector.shape_cast %21 : vector<1x1x512xf32> to vector<1x512xf32>
    %23 = vector.broadcast %22 : vector<1x512xf32> to vector<32x512xf32>
    %24 = arith.addf %20, %23 : vector<32x512xf32>
    %25 = vector.extract_strided_slice %16 {offsets = [0, 0], sizes = [32, 512], strides = [1, 1]} : vector<32x1024xf32> to vector<32x512xf32>
    %26 = vector.extract_strided_slice %16 {offsets = [0, 512], sizes = [32, 512], strides = [1, 1]} : vector<32x1024xf32> to vector<32x512xf32>
    %c0_22 = arith.constant 0 : index
    %c0_23 = arith.constant 0 : index
    %c0_24 = arith.constant 0 : index
    %27 = vector.load %arg10[%c0_22, %c0_23, %c0_24] : memref<1x512x128xbf16, #tpu.memory_space<vmem>>, vector<1x512x128xbf16>
    %28 = vector.shape_cast %27 : vector<1x512x128xbf16> to vector<512x128xbf16>
    %c0_25 = arith.constant 0 : index
    %c0_26 = arith.constant 0 : index
    %c0_27 = arith.constant 0 : index
    %29 = vector.load %arg11[%c0_25, %c0_26, %c0_27] : memref<1x1x128xf32, #tpu.memory_space<vmem>>, vector<1x1x128xf32>
    %30 = vector.shape_cast %29 : vector<1x1x128xf32> to vector<1x128xf32>
    %31 = vector.shape_cast %25 : vector<32x512xf32> to vector<2x16x512xf32>
    %32 = vector.shape_cast %26 : vector<32x512xf32> to vector<2x16x512xf32>
    %33 = vector.shape_cast %24 : vector<32x512xf32> to vector<2x16x512xf32>
    %34 = vector.extract_strided_slice %31 {offsets = [0, 0, 0], sizes = [2, 16, 128], strides = [1, 1, 1]} : vector<2x16x512xf32> to vector<2x16x128xf32>
    %35 = arith.truncf %34 : vector<2x16x128xf32> to vector<2x16x128xbf16>
    %36 = vector.extract_strided_slice %32 {offsets = [0, 0, 0], sizes = [2, 16, 128], strides = [1, 1, 1]} : vector<2x16x512xf32> to vector<2x16x128xf32>
    %37 = arith.truncf %36 : vector<2x16x128xf32> to vector<2x16x128xbf16>
    %38 = vector.extract_strided_slice %33 {offsets = [0, 0, 0], sizes = [2, 16, 128], strides = [1, 1, 1]} : vector<2x16x512xf32> to vector<2x16x128xf32>
    %39 = arith.truncf %38 : vector<2x16x128xf32> to vector<2x16x128xbf16>
    "tpu.trace_start"() <{level = 10 : i32, message = "bqd,bkd->bqk"}> : () -> ()
    %cst_28 = arith.constant dense<0.000000e+00> : vector<2x16x16xf32>
    %40 = tpu.matmul %35, %37, %cst_28 {dimension_numbers = #tpu.dot_dimension_numbers<[2], [2], [1], [1], [0, 0, 0, 1, 1, 1], [0], [0]>} : vector<2x16x128xbf16>, vector<2x16x128xbf16>, vector<2x16x16xf32> -> vector<2x16x16xf32>
    "tpu.trace_stop"() : () -> ()
    %cst_29 = arith.constant 0.353553385 : f32
    %41 = vector.broadcast %cst_29 : f32 to vector<2x16x16xf32>
    %42 = arith.mulf %40, %41 : vector<2x16x16xf32>
    %43 = vector.broadcast %7 : vector<2x1x16xf32> to vector<2x16x16xf32>
    %44 = arith.subf %42, %43 : vector<2x16x16xf32>
    %cst_30 = arith.constant dense<0xFF800000> : vector<2x16xf32>
    %45 = vector.multi_reduction <maximumf>, %44, %cst_30 [2] : vector<2x16x16xf32> to vector<2x16xf32>
    %46 = vector.shape_cast %45 : vector<2x16xf32> to vector<2x16x1xf32>
    %47 = vector.broadcast %46 : vector<2x16x1xf32> to vector<2x16x16xf32>
    %48 = arith.subf %44, %47 : vector<2x16x16xf32>
    %49 = math.exp %48 : vector<2x16x16xf32>
    %cst_31 = arith.constant dense<0.000000e+00> : vector<2x16xf32>
    %50 = vector.multi_reduction <add>, %49, %cst_31 [2] : vector<2x16x16xf32> to vector<2x16xf32>
    %51 = vector.shape_cast %50 : vector<2x16xf32> to vector<2x16x1xf32>
    %52 = tpu.reciprocal %51 {approx = true} : vector<2x16x1xf32> -> vector<2x16x1xf32>
    %53 = vector.broadcast %52 : vector<2x16x1xf32> to vector<2x16x16xf32>
    %54 = arith.mulf %49, %53 : vector<2x16x16xf32>
    %55 = arith.truncf %54 : vector<2x16x16xf32> to vector<2x16x16xbf16>
    "tpu.trace_start"() <{level = 10 : i32, message = "bqk,bkd->bqd"}> : () -> ()
    %cst_32 = arith.constant dense<0.000000e+00> : vector<2x16x128xf32>
    %56 = tpu.matmul %55, %39, %cst_32 {dimension_numbers = #tpu.dot_dimension_numbers<[2], [1], [1], [2], [0, 0, 0, 1, 1, 2], [0], [0]>} : vector<2x16x16xbf16>, vector<2x16x128xbf16>, vector<2x16x128xf32> -> vector<2x16x128xf32>
    "tpu.trace_stop"() : () -> ()
    %57 = vector.shape_cast %56 : vector<2x16x128xf32> to vector<32x128xf32>
    %58 = arith.truncf %57 : vector<32x128xf32> to vector<32x128xbf16>
    %59 = vector.extract_strided_slice %28 {offsets = [0, 0], sizes = [128, 128], strides = [1, 1]} : vector<512x128xbf16> to vector<128x128xbf16>
    %cst_33 = arith.constant dense<0.000000e+00> : vector<32x128xf32>
    %60 = tpu.matmul %58, %59, %cst_33 {dimension_numbers = #tpu.dot_dimension_numbers<[1], [0], [0], [1], [0, 0, 1, 1], [], []>} : vector<32x128xbf16>, vector<128x128xbf16>, vector<32x128xf32> -> vector<32x128xf32>
    %61 = vector.extract_strided_slice %31 {offsets = [0, 0, 128], sizes = [2, 16, 128], strides = [1, 1, 1]} : vector<2x16x512xf32> to vector<2x16x128xf32>
    %62 = arith.truncf %61 : vector<2x16x128xf32> to vector<2x16x128xbf16>
    %63 = vector.extract_strided_slice %32 {offsets = [0, 0, 128], sizes = [2, 16, 128], strides = [1, 1, 1]} : vector<2x16x512xf32> to vector<2x16x128xf32>
    %64 = arith.truncf %63 : vector<2x16x128xf32> to vector<2x16x128xbf16>
    %65 = vector.extract_strided_slice %33 {offsets = [0, 0, 128], sizes = [2, 16, 128], strides = [1, 1, 1]} : vector<2x16x512xf32> to vector<2x16x128xf32>
    %66 = arith.truncf %65 : vector<2x16x128xf32> to vector<2x16x128xbf16>
    "tpu.trace_start"() <{level = 10 : i32, message = "bqd,bkd->bqk"}> : () -> ()
    %cst_34 = arith.constant dense<0.000000e+00> : vector<2x16x16xf32>
    %67 = tpu.matmul %62, %64, %cst_34 {dimension_numbers = #tpu.dot_dimension_numbers<[2], [2], [1], [1], [0, 0, 0, 1, 1, 1], [0], [0]>} : vector<2x16x128xbf16>, vector<2x16x128xbf16>, vector<2x16x16xf32> -> vector<2x16x16xf32>
    "tpu.trace_stop"() : () -> ()
    %cst_35 = arith.constant 0.353553385 : f32
    %68 = vector.broadcast %cst_35 : f32 to vector<2x16x16xf32>
    %69 = arith.mulf %67, %68 : vector<2x16x16xf32>
    %70 = vector.broadcast %7 : vector<2x1x16xf32> to vector<2x16x16xf32>
    %71 = arith.subf %69, %70 : vector<2x16x16xf32>
    %cst_36 = arith.constant dense<0xFF800000> : vector<2x16xf32>
    %72 = vector.multi_reduction <maximumf>, %71, %cst_36 [2] : vector<2x16x16xf32> to vector<2x16xf32>
    %73 = vector.shape_cast %72 : vector<2x16xf32> to vector<2x16x1xf32>
    %74 = vector.broadcast %73 : vector<2x16x1xf32> to vector<2x16x16xf32>
    %75 = arith.subf %71, %74 : vector<2x16x16xf32>
    %76 = math.exp %75 : vector<2x16x16xf32>
    %cst_37 = arith.constant dense<0.000000e+00> : vector<2x16xf32>
    %77 = vector.multi_reduction <add>, %76, %cst_37 [2] : vector<2x16x16xf32> to vector<2x16xf32>
    %78 = vector.shape_cast %77 : vector<2x16xf32> to vector<2x16x1xf32>
    %79 = tpu.reciprocal %78 {approx = true} : vector<2x16x1xf32> -> vector<2x16x1xf32>
    %80 = vector.broadcast %79 : vector<2x16x1xf32> to vector<2x16x16xf32>
    %81 = arith.mulf %76, %80 : vector<2x16x16xf32>
    %82 = arith.truncf %81 : vector<2x16x16xf32> to vector<2x16x16xbf16>
    "tpu.trace_start"() <{level = 10 : i32, message = "bqk,bkd->bqd"}> : () -> ()
    %cst_38 = arith.constant dense<0.000000e+00> : vector<2x16x128xf32>
    %83 = tpu.matmul %82, %66, %cst_38 {dimension_numbers = #tpu.dot_dimension_numbers<[2], [1], [1], [2], [0, 0, 0, 1, 1, 2], [0], [0]>} : vector<2x16x16xbf16>, vector<2x16x128xbf16>, vector<2x16x128xf32> -> vector<2x16x128xf32>
    "tpu.trace_stop"() : () -> ()
    %84 = vector.shape_cast %83 : vector<2x16x128xf32> to vector<32x128xf32>
    %85 = arith.truncf %84 : vector<32x128xf32> to vector<32x128xbf16>
    %86 = vector.extract_strided_slice %28 {offsets = [128, 0], sizes = [128, 128], strides = [1, 1]} : vector<512x128xbf16> to vector<128x128xbf16>
    %cst_39 = arith.constant dense<0.000000e+00> : vector<32x128xf32>
    %87 = tpu.matmul %85, %86, %cst_39 {dimension_numbers = #tpu.dot_dimension_numbers<[1], [0], [0], [1], [0, 0, 1, 1], [], []>} : vector<32x128xbf16>, vector<128x128xbf16>, vector<32x128xf32> -> vector<32x128xf32>
    %88 = arith.addf %60, %87 : vector<32x128xf32>
    %89 = vector.extract_strided_slice %31 {offsets = [0, 0, 256], sizes = [2, 16, 128], strides = [1, 1, 1]} : vector<2x16x512xf32> to vector<2x16x128xf32>
    %90 = arith.truncf %89 : vector<2x16x128xf32> to vector<2x16x128xbf16>
    %91 = vector.extract_strided_slice %32 {offsets = [0, 0, 256], sizes = [2, 16, 128], strides = [1, 1, 1]} : vector<2x16x512xf32> to vector<2x16x128xf32>
    %92 = arith.truncf %91 : vector<2x16x128xf32> to vector<2x16x128xbf16>
    %93 = vector.extract_strided_slice %33 {offsets = [0, 0, 256], sizes = [2, 16, 128], strides = [1, 1, 1]} : vector<2x16x512xf32> to vector<2x16x128xf32>
    %94 = arith.truncf %93 : vector<2x16x128xf32> to vector<2x16x128xbf16>
    "tpu.trace_start"() <{level = 10 : i32, message = "bqd,bkd->bqk"}> : () -> ()
    %cst_40 = arith.constant dense<0.000000e+00> : vector<2x16x16xf32>
    %95 = tpu.matmul %90, %92, %cst_40 {dimension_numbers = #tpu.dot_dimension_numbers<[2], [2], [1], [1], [0, 0, 0, 1, 1, 1], [0], [0]>} : vector<2x16x128xbf16>, vector<2x16x128xbf16>, vector<2x16x16xf32> -> vector<2x16x16xf32>
    "tpu.trace_stop"() : () -> ()
    %cst_41 = arith.constant 0.353553385 : f32
    %96 = vector.broadcast %cst_41 : f32 to vector<2x16x16xf32>
    %97 = arith.mulf %95, %96 : vector<2x16x16xf32>
    %98 = vector.broadcast %7 : vector<2x1x16xf32> to vector<2x16x16xf32>
    %99 = arith.subf %97, %98 : vector<2x16x16xf32>
    %cst_42 = arith.constant dense<0xFF800000> : vector<2x16xf32>
    %100 = vector.multi_reduction <maximumf>, %99, %cst_42 [2] : vector<2x16x16xf32> to vector<2x16xf32>
    %101 = vector.shape_cast %100 : vector<2x16xf32> to vector<2x16x1xf32>
    %102 = vector.broadcast %101 : vector<2x16x1xf32> to vector<2x16x16xf32>
    %103 = arith.subf %99, %102 : vector<2x16x16xf32>
    %104 = math.exp %103 : vector<2x16x16xf32>
    %cst_43 = arith.constant dense<0.000000e+00> : vector<2x16xf32>
    %105 = vector.multi_reduction <add>, %104, %cst_43 [2] : vector<2x16x16xf32> to vector<2x16xf32>
    %106 = vector.shape_cast %105 : vector<2x16xf32> to vector<2x16x1xf32>
    %107 = tpu.reciprocal %106 {approx = true} : vector<2x16x1xf32> -> vector<2x16x1xf32>
    %108 = vector.broadcast %107 : vector<2x16x1xf32> to vector<2x16x16xf32>
    %109 = arith.mulf %104, %108 : vector<2x16x16xf32>
    %110 = arith.truncf %109 : vector<2x16x16xf32> to vector<2x16x16xbf16>
    "tpu.trace_start"() <{level = 10 : i32, message = "bqk,bkd->bqd"}> : () -> ()
    %cst_44 = arith.constant dense<0.000000e+00> : vector<2x16x128xf32>
    %111 = tpu.matmul %110, %94, %cst_44 {dimension_numbers = #tpu.dot_dimension_numbers<[2], [1], [1], [2], [0, 0, 0, 1, 1, 2], [0], [0]>} : vector<2x16x16xbf16>, vector<2x16x128xbf16>, vector<2x16x128xf32> -> vector<2x16x128xf32>
    "tpu.trace_stop"() : () -> ()
    %112 = vector.shape_cast %111 : vector<2x16x128xf32> to vector<32x128xf32>
    %113 = arith.truncf %112 : vector<32x128xf32> to vector<32x128xbf16>
    %114 = vector.extract_strided_slice %28 {offsets = [256, 0], sizes = [128, 128], strides = [1, 1]} : vector<512x128xbf16> to vector<128x128xbf16>
    %cst_45 = arith.constant dense<0.000000e+00> : vector<32x128xf32>
    %115 = tpu.matmul %113, %114, %cst_45 {dimension_numbers = #tpu.dot_dimension_numbers<[1], [0], [0], [1], [0, 0, 1, 1], [], []>} : vector<32x128xbf16>, vector<128x128xbf16>, vector<32x128xf32> -> vector<32x128xf32>
    %116 = arith.addf %88, %115 : vector<32x128xf32>
    %117 = vector.extract_strided_slice %31 {offsets = [0, 0, 384], sizes = [2, 16, 128], strides = [1, 1, 1]} : vector<2x16x512xf32> to vector<2x16x128xf32>
    %118 = arith.truncf %117 : vector<2x16x128xf32> to vector<2x16x128xbf16>
    %119 = vector.extract_strided_slice %32 {offsets = [0, 0, 384], sizes = [2, 16, 128], strides = [1, 1, 1]} : vector<2x16x512xf32> to vector<2x16x128xf32>
    %120 = arith.truncf %119 : vector<2x16x128xf32> to vector<2x16x128xbf16>
    %121 = vector.extract_strided_slice %33 {offsets = [0, 0, 384], sizes = [2, 16, 128], strides = [1, 1, 1]} : vector<2x16x512xf32> to vector<2x16x128xf32>
    %122 = arith.truncf %121 : vector<2x16x128xf32> to vector<2x16x128xbf16>
    "tpu.trace_start"() <{level = 10 : i32, message = "bqd,bkd->bqk"}> : () -> ()
    %cst_46 = arith.constant dense<0.000000e+00> : vector<2x16x16xf32>
    %123 = tpu.matmul %118, %120, %cst_46 {dimension_numbers = #tpu.dot_dimension_numbers<[2], [2], [1], [1], [0, 0, 0, 1, 1, 1], [0], [0]>} : vector<2x16x128xbf16>, vector<2x16x128xbf16>, vector<2x16x16xf32> -> vector<2x16x16xf32>
    "tpu.trace_stop"() : () -> ()
    %cst_47 = arith.constant 0.353553385 : f32
    %124 = vector.broadcast %cst_47 : f32 to vector<2x16x16xf32>
    %125 = arith.mulf %123, %124 : vector<2x16x16xf32>
    %126 = vector.broadcast %7 : vector<2x1x16xf32> to vector<2x16x16xf32>
    %127 = arith.subf %125, %126 : vector<2x16x16xf32>
    %cst_48 = arith.constant dense<0xFF800000> : vector<2x16xf32>
    %128 = vector.multi_reduction <maximumf>, %127, %cst_48 [2] : vector<2x16x16xf32> to vector<2x16xf32>
    %129 = vector.shape_cast %128 : vector<2x16xf32> to vector<2x16x1xf32>
    %130 = vector.broadcast %129 : vector<2x16x1xf32> to vector<2x16x16xf32>
    %131 = arith.subf %127, %130 : vector<2x16x16xf32>
    %132 = math.exp %131 : vector<2x16x16xf32>
    %cst_49 = arith.constant dense<0.000000e+00> : vector<2x16xf32>
    %133 = vector.multi_reduction <add>, %132, %cst_49 [2] : vector<2x16x16xf32> to vector<2x16xf32>
    %134 = vector.shape_cast %133 : vector<2x16xf32> to vector<2x16x1xf32>
    %135 = tpu.reciprocal %134 {approx = true} : vector<2x16x1xf32> -> vector<2x16x1xf32>
    %136 = vector.broadcast %135 : vector<2x16x1xf32> to vector<2x16x16xf32>
    %137 = arith.mulf %132, %136 : vector<2x16x16xf32>
    %138 = arith.truncf %137 : vector<2x16x16xf32> to vector<2x16x16xbf16>
    "tpu.trace_start"() <{level = 10 : i32, message = "bqk,bkd->bqd"}> : () -> ()
    %cst_50 = arith.constant dense<0.000000e+00> : vector<2x16x128xf32>
    %139 = tpu.matmul %138, %122, %cst_50 {dimension_numbers = #tpu.dot_dimension_numbers<[2], [1], [1], [2], [0, 0, 0, 1, 1, 2], [0], [0]>} : vector<2x16x16xbf16>, vector<2x16x128xbf16>, vector<2x16x128xf32> -> vector<2x16x128xf32>
    "tpu.trace_stop"() : () -> ()
    %140 = vector.shape_cast %139 : vector<2x16x128xf32> to vector<32x128xf32>
    %141 = arith.truncf %140 : vector<32x128xf32> to vector<32x128xbf16>
    %142 = vector.extract_strided_slice %28 {offsets = [384, 0], sizes = [128, 128], strides = [1, 1]} : vector<512x128xbf16> to vector<128x128xbf16>
    %cst_51 = arith.constant dense<0.000000e+00> : vector<32x128xf32>
    %143 = tpu.matmul %141, %142, %cst_51 {dimension_numbers = #tpu.dot_dimension_numbers<[1], [0], [0], [1], [0, 0, 1, 1], [], []>} : vector<32x128xbf16>, vector<128x128xbf16>, vector<32x128xf32> -> vector<32x128xf32>
    %144 = arith.addf %116, %143 : vector<32x128xf32>
    %145 = vector.broadcast %30 : vector<1x128xf32> to vector<32x128xf32>
    %146 = arith.addf %144, %145 : vector<32x128xf32>
    %147 = arith.addf %4, %146 : vector<32x128xf32>
    %c0_52 = arith.constant 0 : index
    %c0_53 = arith.constant 0 : index
    %c0_54 = arith.constant 0 : index
    %148 = vector.load %arg12[%c0_52, %c0_53, %c0_54] : memref<1x1x128xf32, #tpu.memory_space<vmem>>, vector<1x1x128xf32>
    %149 = vector.shape_cast %148 : vector<1x1x128xf32> to vector<1x128xf32>
    %c0_55 = arith.constant 0 : index
    %c0_56 = arith.constant 0 : index
    %c0_57 = arith.constant 0 : index
    %150 = vector.load %arg13[%c0_55, %c0_56, %c0_57] : memref<1x1x128xf32, #tpu.memory_space<vmem>>, vector<1x1x128xf32>
    %151 = vector.shape_cast %150 : vector<1x1x128xf32> to vector<1x128xf32>
    %cst_58 = arith.constant dense<0.000000e+00> : vector<32xf32>
    %152 = vector.multi_reduction <add>, %147, %cst_58 [1] : vector<32x128xf32> to vector<32xf32>
    %153 = vector.shape_cast %152 : vector<32xf32> to vector<32x1xf32>
    %cst_59 = arith.constant 3.200000e+01 : f32
    %154 = vector.broadcast %cst_59 : f32 to vector<32x1xf32>
    %155 = arith.divf %153, %154 : vector<32x1xf32>
    %156 = arith.mulf %147, %147 : vector<32x128xf32>
    %cst_60 = arith.constant dense<0.000000e+00> : vector<32xf32>
    %157 = vector.multi_reduction <add>, %156, %cst_60 [1] : vector<32x128xf32> to vector<32xf32>
    %158 = vector.shape_cast %157 : vector<32xf32> to vector<32x1xf32>
    %cst_61 = arith.constant 3.200000e+01 : f32
    %159 = vector.broadcast %cst_61 : f32 to vector<32x1xf32>
    %160 = arith.divf %158, %159 : vector<32x1xf32>
    %161 = arith.mulf %155, %155 : vector<32x1xf32>
    %162 = arith.subf %160, %161 : vector<32x1xf32>
    %163 = vector.broadcast %155 : vector<32x1xf32> to vector<32x128xf32>
    %164 = arith.subf %147, %163 : vector<32x128xf32>
    %cst_62 = arith.constant 9.99999974E-6 : f32
    %165 = vector.broadcast %cst_62 : f32 to vector<32x1xf32>
    %166 = arith.addf %162, %165 : vector<32x1xf32>
    %167 = math.rsqrt %166 : vector<32x1xf32>
    %168 = vector.broadcast %167 : vector<32x1xf32> to vector<32x128xf32>
    %169 = arith.mulf %164, %168 : vector<32x128xf32>
    %170 = vector.broadcast %149 : vector<1x128xf32> to vector<32x128xf32>
    %171 = arith.mulf %169, %170 : vector<32x128xf32>
    %172 = vector.broadcast %151 : vector<1x128xf32> to vector<32x128xf32>
    %173 = arith.addf %171, %172 : vector<32x128xf32>
    %174 = arith.truncf %173 : vector<32x128xf32> to vector<32x128xbf16>
    %c0_63 = arith.constant 0 : index
    %c0_64 = arith.constant 0 : index
    %c0_65 = arith.constant 0 : index
    %175 = vector.load %arg14[%c0_63, %c0_64, %c0_65] : memref<1x128x128xbf16, #tpu.memory_space<vmem>>, vector<1x128x128xbf16>
    %176 = vector.shape_cast %175 : vector<1x128x128xbf16> to vector<128x128xbf16>
    %cst_66 = arith.constant dense<0.000000e+00> : vector<32x128xf32>
    %177 = tpu.matmul %174, %176, %cst_66 {dimension_numbers = #tpu.dot_dimension_numbers<[1], [0], [0], [1], [0, 0, 1, 1], [], []>} : vector<32x128xbf16>, vector<128x128xbf16>, vector<32x128xf32> -> vector<32x128xf32>
    %c0_67 = arith.constant 0 : index
    %c0_68 = arith.constant 0 : index
    %c0_69 = arith.constant 0 : index
    %178 = vector.load %arg15[%c0_67, %c0_68, %c0_69] : memref<1x1x128xf32, #tpu.memory_space<vmem>>, vector<1x1x128xf32>
    %179 = vector.shape_cast %178 : vector<1x1x128xf32> to vector<1x128xf32>
    %180 = vector.broadcast %179 : vector<1x128xf32> to vector<32x128xf32>
    %181 = arith.addf %177, %180 : vector<32x128xf32>
    %cst_70 = arith.constant 0.000000e+00 : f32
    %182 = vector.broadcast %cst_70 : f32 to vector<32x128xf32>
    %183 = arith.maximumf %181, %182 : vector<32x128xf32>
    %184 = arith.truncf %183 : vector<32x128xf32> to vector<32x128xbf16>
    %c0_71 = arith.constant 0 : index
    %c0_72 = arith.constant 0 : index
    %c0_73 = arith.constant 0 : index
    %185 = vector.load %arg16[%c0_71, %c0_72, %c0_73] : memref<1x128x128xbf16, #tpu.memory_space<vmem>>, vector<1x128x128xbf16>
    %186 = vector.shape_cast %185 : vector<1x128x128xbf16> to vector<128x128xbf16>
    %cst_74 = arith.constant dense<0.000000e+00> : vector<32x128xf32>
    %187 = tpu.matmul %184, %186, %cst_74 {dimension_numbers = #tpu.dot_dimension_numbers<[1], [0], [0], [1], [0, 0, 1, 1], [], []>} : vector<32x128xbf16>, vector<128x128xbf16>, vector<32x128xf32> -> vector<32x128xf32>
    %c0_75 = arith.constant 0 : index
    %c0_76 = arith.constant 0 : index
    %c0_77 = arith.constant 0 : index
    %188 = vector.load %arg17[%c0_75, %c0_76, %c0_77] : memref<1x1x128xf32, #tpu.memory_space<vmem>>, vector<1x1x128xf32>
    %189 = vector.shape_cast %188 : vector<1x1x128xf32> to vector<1x128xf32>
    %190 = vector.broadcast %189 : vector<1x128xf32> to vector<32x128xf32>
    %191 = arith.addf %187, %190 : vector<32x128xf32>
    %192 = arith.addf %173, %191 : vector<32x128xf32>
    %c0_78 = arith.constant 0 : index
    %c0_79 = arith.constant 0 : index
    %c0_80 = arith.constant 0 : index
    %193 = vector.load %arg18[%c0_78, %c0_79, %c0_80] : memref<1x1x128xf32, #tpu.memory_space<vmem>>, vector<1x1x128xf32>
    %194 = vector.shape_cast %193 : vector<1x1x128xf32> to vector<1x128xf32>
    %c0_81 = arith.constant 0 : index
    %c0_82 = arith.constant 0 : index
    %c0_83 = arith.constant 0 : index
    %195 = vector.load %arg19[%c0_81, %c0_82, %c0_83] : memref<1x1x128xf32, #tpu.memory_space<vmem>>, vector<1x1x128xf32>
    %196 = vector.shape_cast %195 : vector<1x1x128xf32> to vector<1x128xf32>
    %cst_84 = arith.constant dense<0.000000e+00> : vector<32xf32>
    %197 = vector.multi_reduction <add>, %192, %cst_84 [1] : vector<32x128xf32> to vector<32xf32>
    %198 = vector.shape_cast %197 : vector<32xf32> to vector<32x1xf32>
    %cst_85 = arith.constant 3.200000e+01 : f32
    %199 = vector.broadcast %cst_85 : f32 to vector<32x1xf32>
    %200 = arith.divf %198, %199 : vector<32x1xf32>
    %201 = arith.mulf %192, %192 : vector<32x128xf32>
    %cst_86 = arith.constant dense<0.000000e+00> : vector<32xf32>
    %202 = vector.multi_reduction <add>, %201, %cst_86 [1] : vector<32x128xf32> to vector<32xf32>
    %203 = vector.shape_cast %202 : vector<32xf32> to vector<32x1xf32>
    %cst_87 = arith.constant 3.200000e+01 : f32
    %204 = vector.broadcast %cst_87 : f32 to vector<32x1xf32>
    %205 = arith.divf %203, %204 : vector<32x1xf32>
    %206 = arith.mulf %200, %200 : vector<32x1xf32>
    %207 = arith.subf %205, %206 : vector<32x1xf32>
    %208 = vector.broadcast %200 : vector<32x1xf32> to vector<32x128xf32>
    %209 = arith.subf %192, %208 : vector<32x128xf32>
    %cst_88 = arith.constant 9.99999974E-6 : f32
    %210 = vector.broadcast %cst_88 : f32 to vector<32x1xf32>
    %211 = arith.addf %207, %210 : vector<32x1xf32>
    %212 = math.rsqrt %211 : vector<32x1xf32>
    %213 = vector.broadcast %212 : vector<32x1xf32> to vector<32x128xf32>
    %214 = arith.mulf %209, %213 : vector<32x128xf32>
    %215 = vector.broadcast %194 : vector<1x128xf32> to vector<32x128xf32>
    %216 = arith.mulf %214, %215 : vector<32x128xf32>
    %217 = vector.broadcast %196 : vector<1x128xf32> to vector<32x128xf32>
    %218 = arith.addf %216, %217 : vector<32x128xf32>
    %219 = vector.shape_cast %218 : vector<32x128xf32> to vector<2x16x128xf32>
    %c0_89 = arith.constant 0 : index
    %c0_90 = arith.constant 0 : index
    %c0_91 = arith.constant 0 : index
    %220 = vector.load %arg20[%c0_89, %c0_90, %c0_91] : memref<2x16x128xf32, #tpu.memory_space<vmem>>, vector<2x16x128xf32>
    tpu.vector_store %arg20[%c0_89, %c0_90, %c0_91], %219 {strides = array<i32>} : memref<2x16x128xf32, #tpu.memory_space<vmem>>, vector<2x16x128xf32>,
    return
  }
  func.func @transform_0(%arg0: i32) -> (i32, i32, i32) {
    %c0_i32 = arith.constant 0 : i32
    %c0_i32_0 = arith.constant 0 : i32
    %c0_i32_1 = arith.constant 0 : i32
    %c0_i32_2 = arith.constant 0 : i32
    return %c0_i32, %c0_i32_0, %c0_i32_1 : i32, i32, i32
  }
  func.func @transform_1(%arg0: i32) -> (i32, i32, i32) {
    %c0_i32 = arith.constant 0 : i32
    %c0_i32_0 = arith.constant 0 : i32
    %c0_i32_1 = arith.constant 0 : i32
    %c0_i32_2 = arith.constant 0 : i32
    return %c0_i32, %c0_i32_0, %c0_i32_1 : i32, i32, i32
  }
  func.func @transform_2(%arg0: i32) -> (i32, i32, i32) {
    %c0_i32 = arith.constant 0 : i32
    %c0_i32_0 = arith.constant 0 : i32
    %c0_i32_1 = arith.constant 0 : i32
    %c0_i32_2 = arith.constant 0 : i32
    return %c0_i32, %c0_i32_0, %c0_i32_1 : i32, i32, i32
  }
  func.func @transform_3(%arg0: i32) -> (i32, i32) {
    %c0_i32 = arith.constant 0 : i32
    %c0_i32_0 = arith.constant 0 : i32
    %c0_i32_1 = arith.constant 0 : i32
    return %c0_i32, %c0_i32_0 : i32, i32
  }
  func.func @transform_4(%arg0: i32) -> (i32, i32) {
    %c0_i32 = arith.constant 0 : i32
    %c0_i32_0 = arith.constant 0 : i32
    %c0_i32_1 = arith.constant 0 : i32
    return %c0_i32, %c0_i32_0 : i32, i32
  }
  func.func @transform_5(%arg0: i32) -> (i32, i32, i32) {
    %c0_i32 = arith.constant 0 : i32
    %c0_i32_0 = arith.constant 0 : i32
    %c0_i32_1 = arith.constant 0 : i32
    return %arg0, %c0_i32, %c0_i32_0 : i32, i32, i32
  }
  func.func @transform_6(%arg0: i32) -> (i32, i32, i32) {
    %c0_i32 = arith.constant 0 : i32
    %c0_i32_0 = arith.constant 0 : i32
    %c0_i32_1 = arith.constant 0 : i32
    return %arg0, %c0_i32, %c0_i32_0 : i32, i32, i32
  }
  func.func @transform_7(%arg0: i32) -> (i32, i32, i32) {
    %c0_i32 = arith.constant 0 : i32
    %c0_i32_0 = arith.constant 0 : i32
    %c0_i32_1 = arith.constant 0 : i32
    return %arg0, %c0_i32, %c0_i32_0 : i32, i32, i32
  }
  func.func @transform_8(%arg0: i32) -> (i32, i32, i32) {
    %c0_i32 = arith.constant 0 : i32
    %c0_i32_0 = arith.constant 0 : i32
    %c0_i32_1 = arith.constant 0 : i32
    return %arg0, %c0_i32, %c0_i32_0 : i32, i32, i32
  }
  func.func @transform_9(%arg0: i32) -> (i32, i32, i32) {
    %c0_i32 = arith.constant 0 : i32
    %c0_i32_0 = arith.constant 0 : i32
    %c0_i32_1 = arith.constant 0 : i32
    return %arg0, %c0_i32, %c0_i32_0 : i32, i32, i32
  }
  func.func @transform_10(%arg0: i32) -> (i32, i32, i32) {
    %c0_i32 = arith.constant 0 : i32
    %c0_i32_0 = arith.constant 0 : i32
    %c0_i32_1 = arith.constant 0 : i32
    return %arg0, %c0_i32, %c0_i32_0 : i32, i32, i32
  }
  func.func @transform_11(%arg0: i32) -> (i32, i32, i32) {
    %c0_i32 = arith.constant 0 : i32
    %c0_i32_0 = arith.constant 0 : i32
    %c0_i32_1 = arith.constant 0 : i32
    return %arg0, %c0_i32, %c0_i32_0 : i32, i32, i32
  }
  func.func @transform_12(%arg0: i32) -> (i32, i32, i32) {
    %c0_i32 = arith.constant 0 : i32
    %c0_i32_0 = arith.constant 0 : i32
    %c0_i32_1 = arith.constant 0 : i32
    return %arg0, %c0_i32, %c0_i32_0 : i32, i32, i32
  }
  func.func @transform_13(%arg0: i32) -> (i32, i32, i32) {
    %c0_i32 = arith.constant 0 : i32
    %c0_i32_0 = arith.constant 0 : i32
    %c0_i32_1 = arith.constant 0 : i32
    return %arg0, %c0_i32, %c0_i32_0 : i32, i32, i32
  }
  func.func @transform_14(%arg0: i32) -> (i32, i32, i32) {
    %c0_i32 = arith.constant 0 : i32
    %c0_i32_0 = arith.constant 0 : i32
    %c0_i32_1 = arith.constant 0 : i32
    return %arg0, %c0_i32, %c0_i32_0 : i32, i32, i32
  }
  func.func @transform_15(%arg0: i32) -> (i32, i32, i32) {
    %c0_i32 = arith.constant 0 : i32
    %c0_i32_0 = arith.constant 0 : i32
    %c0_i32_1 = arith.constant 0 : i32
    return %arg0, %c0_i32, %c0_i32_0 : i32, i32, i32
  }
  func.func @transform_16(%arg0: i32) -> (i32, i32, i32) {
    %c0_i32 = arith.constant 0 : i32
    %c0_i32_0 = arith.constant 0 : i32
    %c0_i32_1 = arith.constant 0 : i32
    return %arg0, %c0_i32, %c0_i32_0 : i32, i32, i32
  }
  func.func @transform_17(%arg0: i32) -> (i32, i32, i32) {
    %c0_i32 = arith.constant 0 : i32
    %c0_i32_0 = arith.constant 0 : i32
    %c0_i32_1 = arith.constant 0 : i32
    return %arg0, %c0_i32, %c0_i32_0 : i32, i32, i32
  }
  func.func @transform_18(%arg0: i32) -> (i32, i32, i32) {
    %c0_i32 = arith.constant 0 : i32
    %c0_i32_0 = arith.constant 0 : i32
    %c0_i32_1 = arith.constant 0 : i32
    return %arg0, %c0_i32, %c0_i32_0 : i32, i32, i32
  }
  func.func @transform_19(%arg0: i32) -> (i32, i32, i32) {
    %c0_i32 = arith.constant 0 : i32
    %c0_i32_0 = arith.constant 0 : i32
    %c0_i32_1 = arith.constant 0 : i32
    %c0_i32_2 = arith.constant 0 : i32
    return %c0_i32, %c0_i32_0, %c0_i32_1 : i32, i32, i32
  }
}

</mosaic_0001>

<bundles_post_ra>
// kernel: tpu_custom_call.1
= control target key start
LH: loop header
LB: loop body
LE: loop exit
PB: predicated region body
PF: predicated region fallthrough
CT: control target
= control target key end

     0   :  { %s6539_s0 = inlined_call_operand.hbm [shape: f32[2,16,128], index: 0, kind: input, shape index: {}]   ;;  %s6540_s1 = inlined_call_operand.hbm [shape: f32[2,16,128], index: 1, kind: input, shape index: {}]   ;;  %s6541_s2 = inlined_call_operand.vmem [shape: f32[2,1,16], index: 2, kind: input, shape index: {}]   ;;  %s6542_s3 = inlined_call_operand.hbm [shape: bf16[128,128], index: 3, kind: input, shape index: {}]   ;;  %s6543_s4 = inlined_call_operand.hbm [shape: f32[1,128], index: 4, kind: input, shape index: {}]   ;;  %s6544_s5 = inlined_call_operand.hbm [shape: bf16[2,128,1024], index: 5, kind: input, shape index: {}]   ;;  %s6545_s6 = inlined_call_operand.hbm [shape: f32[2,1,1024], index: 6, kind: input, shape index: {}]   ;;  %s6546_s7 = inlined_call_operand.hbm [shape: bf16[2,128,512], index: 7, kind: input, shape index: {}]   ;;  %s6547_s8 = inlined_call_operand.vmem [shape: f32[2,1,512], index: 8, kind: input, shape index: {}]   ;;  %s6548_s9 = inlined_call_operand.hbm [shape: bf16[2,512,128], index: 9, kind: input, shape index: {}]   ;;  %s6549_s10 = inlined_call_operand.vmem [shape: f32[2,1,128], index: 10, kind: input, shape index: {}]   ;;  %s6550_s11 = inlined_call_operand.vmem [shape: f32[2,1,128], index: 11, kind: input, shape index: {}]   ;;  %s6551_s12 = inlined_call_operand.vmem [shape: f32[2,1,128], index: 12, kind: input, shape index: {}]   ;;  %s6552_s13 = inlined_call_operand.hbm [shape: bf16[2,128,128], index: 13, kind: input, shape index: {}]   ;;  %s6553_s14 = inlined_call_operand.vmem [shape: f32[2,1,128], index: 14, kind: input, shape index: {}]   ;;  %s6554_s15 = inlined_call_operand.hbm [shape: bf16[2,128,128], index: 15, kind: input, shape index: {}]   ;;  %s6555_s16 = inlined_call_operand.vmem [shape: f32[2,1,128], index: 16, kind: input, shape index: {}]   ;;  %s6556_s17 = inlined_call_operand.vmem [shape: f32[2,1,128], index: 17, kind: input, shape index: {}]   ;;  %s6557_s18 = inlined_call_operand.vmem [shape: f32[2,1,128], index: 18, kind: input, shape index: {}]   ;;  %s6558_s19 = inlined_call_operand.hbm [shape: f32[2,16,128], index: 19, kind: output, shape index: {}]  }
   0x1   :  { %6575 = sst [smem:[#allocation25_spill]] %s6539_s0 }
   0x2   :  { %6576 = sst [smem:[#allocation26_spill]] %s6540_s1 }
   0x3   :  { %6577 = sst [smem:[#allocation27_spill]] %s6541_s2 }
   0x4   :  { %6578 = sst [smem:[#allocation28_spill]] %s6542_s3 }
   0x5   :  { %6579 = sst [smem:[#allocation29_spill]] %s6543_s4 }
   0x6   :  { %6580 = sst [smem:[#allocation30_spill]] %s6544_s5 }
   0x7   :  { %6581 = sst [smem:[#allocation31_spill]] %s6545_s6 }
   0x8   :  { %6582 = sst [smem:[#allocation32_spill]] %s6546_s7 }
   0x9   :  { %6583 = sst [smem:[#allocation33_spill]] %s6547_s8 }
   0xa   :  { %6584 = sst [smem:[#allocation34_spill]] %s6548_s9 }
   0xb   :  { %6585 = sst [smem:[#allocation35_spill]] %s6550_s11 }
   0xc   :  { %6586 = sst [smem:[#allocation36_spill]] %s6551_s12 }
   0xd   :  { %6587 = sst [smem:[#allocation37_spill]] %s6552_s13 }
   0xe   :  { %6588 = sst [smem:[#allocation38_spill]] %s6553_s14 }
   0xf   :  { %6589 = sst [smem:[#allocation39_spill]] %s6554_s15 }
  0x10   :  { %6590 = sst [smem:[#allocation40_spill]] %s6555_s16 }
  0x11   :  { %6591 = sst [smem:[#allocation41_spill]] %s6556_s17 }
  0x12   :  { %6592 = sst [smem:[#allocation42_spill]] %s6557_s18 }
  0x13   :  { %6593 = sst [smem:[#allocation43_spill]] %s6558_s19 }
  0x14   :  { %24 = vsyncpa [#allocation3], 0 }
  0x15   :  { %25 = vsyncpa [#allocation6], 0 }
  0x16   :  { %26 = vsyncpa [#allocation9], 0 }
  0x17   :  { %27 = vsyncpa [#allocation4], 0  ;;  %s5506_s0 = smov 0   ;;  %s5508_s30 = smov 0  }
  0x18   :  { %s5510_s20 = smov 0   ;;  %s5512_s21 = smov 0  }
  0x19 LB: > { %6594 = sst [smem:[#allocation22_spill]] %s5376_s20  ;;  %s5525_s1 = sadd.s32 4294967295, %s5380_s21   ;;  %s5380_s21 = sphi %s5512_s21, %s6655_s21   ;;  %s5376_s20 = sphi %s5510_s20, %s6657_s20   ;;  %s5372_s30 = sphi %s5508_s30, %s6659_s30   ;;  %s5368_s0 = sphi %s5506_s0, %s6658_s0  }
  0x1a   : > { %s5528_s22 = sadd.s32 1, %s5380_s21   ;;  %s145_s23 = sadd.s32 1, %s5376_s20 }
  0x1b   : > { %6595 = sst [smem:[#allocation23_spill]] %s5528_s22  ;;  %s142_s2 = ssub.s32 %s5380_s21, %s5528_s22 }
  0x1c   : > { %p143_p0 = scmp.eq.s32.totalorder %s142_s2, 0  ;;  %p152_p1 = scmp.ne.s32.totalorder %s5376_s20, %s5372_s30 }
  0x1d   : > { %p153_p2 = scmp.eq.s32.totalorder %s5380_s21, 0  ;;  %p158_p3 = scmp.ne.s32.totalorder %s5372_s30, %s5368_s0 }
  0x1e   : > { %s5538_s24 = scalar_select %p143_p0, %s5376_s20, %s145_s23  }
  0x1f   : > { %p5540_p4 = por %p153_p2, %p152_p1  ;;  %p6563_p5 = scmp.eq.s32.totalorder %s5525_s1, 0 }
  0x20   : > { %6596 = sst [smem:[#allocation24_spill]] %s5538_s24  ;;  %p4166_p6 = scmp.ge.s32.totalorder %s5380_s21, 1 }
  0x21   : > { %p528_p7 = scmp.lt.s32.totalorder %s5380_s21, 3  ;;  %p5549_p8 = por %p6563_p5, %p158_p3 }
  0x22   : > { %s5382_s27 = smov [#allocation2]   ;;  %p4789_p13 = scmp.lt.s32.totalorder %s5380_s21, 2 }
  0x23   : > { %s6598_s3 = scalar_select %p5549_p8, 1, 0 }
  0x24   : > { %p5554_p10 = pnand %p4166_p6, %p528_p7  ;;  %s540_s28 = sshll.u32 %s5382_s27, 4  ;;  %s541_s28 = int_to_ptr.vmem [resolvable:$true] %s540_s28 }
  0x25   : > { %s594_s0 = sand.u32 1, %s5380_s21   ;;  %s5569_s2 = sand.u32 1, %s5376_s20  }
  0x26   : > { %s6599_s26 = scalar_select %p5554_p10, 1, 0 }
  0x27   : > { %p4753_p11 = pneg %p5554_p10  ;;  %s5045_s23 = scalar_lea.vmem %s541_s28, 512 }
  0x28   : > { %p5046_p1 = scmp.ne.s32.totalorder %s541_s28, %s5045_s23  ;;  %p5053_p6 = scmp.lt.s32.totalorder %s541_s28, %s541_s28 }
  0x29   : > { %p5562_p12 = pnand %p4753_p11, %p6563_p5  ;;  %p5054_p7 = scmp.lt.s32.totalorder %s5045_s23, %s5045_s23 }
  0x2b   : > { %s6600_s29 = scalar_select %p5562_p12, 1, 0 }
  0x2c   : > { %p6564_p0 = pneg %p5562_p12  ;;  %p5055_p11 = por %p5054_p7, %p5053_p6 }
  0x2e   : > { %p5048_p2 = pnand %p5046_p1, %p6564_p0 }
  0x30   : > { %p5049_p3 = pneg %p5048_p2 }
  0x32   : > { %p5056_p9 = pnand %p5055_p11, %p5049_p3 }
  0x34   : > { %5059 = shalt.err (!%p5056_p9)
}
  0x35   : > { %s6569_s27 = smov 128   ;;  %s6570_s24 = smov 8  }
  0x36   : > { %s6601_s19 = sld [smem:[#allocation25_spill]]  ;;  %s4172_s18 = sshll.u32 %s5569_s2, 9 }
  0x37   : > { %s4377_s23 = sshll.u32 %s5380_s21, 13  ;;  %s6602_s5 = sld [smem:[#allocation30_spill]] }
  0x38   : > { %s598_s12 = scalar_lea.vmem [#allocation10], %s4172_s18  ;;  %p5595_p9 = pnand %p4789_p13, %p5540_p4 }
  0x39   : > { %s605_s11 = sshll.u32 %s598_s12, 4  ;;  %s5599_s11 = int_to_ptr.vmem [resolvable:$true] %s605_s11 }
  0x3a   : > { %p5607_p2 = pneg %p5595_p9 }
  0x3c   : > { %4756 = dma.hbm_to_vmem [thread:$0]  (!%p5562_p12), %s6601_s19, 512, %s541_s28, [#allocation3], %s6569_s27, %s6569_s27, %s6570_s24  }
  0x3d   : > { %s5589_s14 = scalar_lea.hbm %s6602_s5, %s4377_s23  ;;  %s5601_s19 = scalar_lea.sflag [#allocation3], %s594_s0 }
  0x3e   : > { %s5060_s20 = scalar_lea.hbm %s5589_s14, 8192  ;;  %s5065_s18 = scalar_lea.hbm %s6602_s5, 16384 }
  0x3f   : > { %p5061_p1 = scmp.ne.s32.totalorder %s5589_s14, %s5060_s20  ;;  %p5066_p4 = scmp.lt.s32.totalorder %s5589_s14, %s6602_s5 }
  0x40   : > { %p5067_p13 = scmp.lt.s32.totalorder %s5065_s18, %s5060_s20 }
  0x41   : > { %p5063_p3 = pnand %p5607_p2, %p5061_p1 }
  0x42   : > { %p5068_p7 = por %p5067_p13, %p5066_p4 }
  0x43   : > { %p5064_p6 = pneg %p5063_p3 }
  0x45   : > { %p5069_p11 = pnand %p5068_p7, %p5064_p6 }
  0x47   : > { %5072 = shalt.err (!%p5069_p11)
}
  0x48   : > { %s5073_s28 = scalar_lea.vmem %s5599_s11, 8192  ;;  %s5385_s0 = smov [#allocation10]  }
  0x49   : > { %p5074_p5 = scmp.ne.s32.totalorder %s5599_s11, %s5073_s28  ;;  %s5078_s23 = sshll.u32 %s5385_s0, 4  ;;  %s5079_s23 = int_to_ptr.vmem [resolvable:$false] %s5078_s23 }
  0x4a   : > { %s5080_s12 = scalar_lea.vmem %s5079_s23, 16384  ;;  %p5081_p0 = scmp.lt.s32.totalorder %s5599_s11, %s5079_s23 }
  0x4b   : > { %p5076_p1 = pnand %p5074_p5, %p5607_p2  ;;  %p5082_p8 = scmp.lt.s32.totalorder %s5080_s12, %s5073_s28 }
  0x4d   : > { %p5077_p3 = pneg %p5076_p1  ;;  %p5083_p10 = por %p5082_p8, %p5081_p0 }
  0x4f   : > { %p5084_p12 = pnand %p5083_p10, %p5077_p3 }
  0x51   : > { %5087 = shalt.err (!%p5084_p12)
}
  0x52   : > { %s5386_s20 = smov 512   ;;  %s5387_s17 = smov 32  }
  0x53   : > { %4769 = dma.hbm_to_vmem [thread:$0]  (!%p5595_p9), %s5589_s14, 8192, %s5599_s11, %s5601_s19, %s5386_s20, %s5386_s20, %s5387_s17  }
  0x54   : > { %s4175_s18 = sshll.u32 %s5569_s2, 3  ;;  %s4378_s22 = sshll.u32 %s5380_s21, 7 }
  0x55   : > { %s6605_s6 = sld [smem:[#allocation31_spill]]  ;;  %s619_s23 = scalar_lea.vmem [#allocation11], %s4175_s18 }
  0x56   : > { %s627_s12 = sshll.u32 %s619_s23, 4  ;;  %s4178_s27 = sshll.u32 %s5569_s2, 8  ;;  %s628_s12 = int_to_ptr.vmem [resolvable:$true] %s627_s12 }
  0x5b   : > { %s5635_s28 = scalar_lea.hbm %s6605_s6, %s4378_s22  ;;  %s5093_s20 = scalar_lea.hbm %s6605_s6, 256 }
  0x5c   : > { %s5088_s24 = scalar_lea.hbm %s5635_s28, 128  ;;  %p5094_p12 = scmp.lt.s32.totalorder %s5635_s28, %s6605_s6 }
  0x5d   : > { %p5089_p5 = scmp.ne.s32.totalorder %s5635_s28, %s5088_s24  ;;  %p5095_p0 = scmp.lt.s32.totalorder %s5093_s20, %s5088_s24 }
  0x5f   : > { %p5091_p8 = pnand %p5089_p5, %p5607_p2  ;;  %p5096_p6 = por %p5095_p0, %p5094_p12 }
  0x61   : > { %p5092_p10 = pneg %p5091_p8 }
  0x63   : > { %p5097_p4 = pnand %p5096_p6, %p5092_p10 }
  0x65   : > { %5100 = shalt.err (!%p5097_p4)
}
  0x66   : > { %s5101_s18 = scalar_lea.vmem %s628_s12, 128  ;;  %s5388_s22 = smov [#allocation11]  }
  0x67   : > { %p5102_p13 = scmp.ne.s32.totalorder %s628_s12, %s5101_s18  ;;  %s5106_s0 = sshll.u32 %s5388_s22, 4  ;;  %s5107_s0 = int_to_ptr.vmem [resolvable:$false] %s5106_s0 }
  0x68   : > { %s5108_s23 = scalar_lea.vmem %s5107_s0, 256  ;;  %p5109_p1 = scmp.lt.s32.totalorder %s628_s12, %s5107_s0 }
  0x69   : > { %p5104_p7 = pnand %p5102_p13, %p5607_p2  ;;  %p5110_p3 = scmp.lt.s32.totalorder %s5108_s23, %s5101_s18 }
  0x6b   : > { %p5105_p11 = pneg %p5104_p7  ;;  %p5111_p5 = por %p5110_p3, %p5109_p1 }
  0x6d   : > { %p5112_p8 = pnand %p5111_p5, %p5105_p11 }
  0x6f   : > { %5115 = shalt.err (!%p5112_p8)
}
  0x70   : > { %4772 = dma.hbm_to_vmem [thread:$0]  (!%p5595_p9), %s5635_s28, 128, %s628_s12, %s5601_s19  }
  0x71   : > { %s4379_s24 = sshll.u32 %s5380_s21, 12  ;;  %s638_s11 = scalar_lea.vmem [#allocation12], %s4178_s27 }
  0x72   : > { %s645_s14 = sshll.u32 %s638_s11, 4  ;;  %s6606_s7 = sld [smem:[#allocation32_spill]]  ;;  %s5665_s14 = int_to_ptr.vmem [resolvable:$true] %s645_s14 }
  0x78   : > { %s5663_s25 = scalar_lea.hbm %s6606_s7, %s4379_s24  ;;  %s5121_s22 = scalar_lea.hbm %s6606_s7, 8192 }
  0x79   : > { %s5116_s18 = scalar_lea.hbm %s5663_s25, 4096  ;;  %p5122_p6 = scmp.lt.s32.totalorder %s5663_s25, %s6606_s7 }
  0x7a   : > { %p5117_p10 = scmp.ne.s32.totalorder %s5663_s25, %s5116_s18  ;;  %p5123_p4 = scmp.lt.s32.totalorder %s5121_s22, %s5116_s18 }
  0x7c   : > { %p5119_p12 = pnand %p5117_p10, %p5607_p2  ;;  %p5124_p13 = por %p5123_p4, %p5122_p6 }
  0x7e   : > { %p5120_p0 = pneg %p5119_p12 }
  0x80   : > { %p5125_p7 = pnand %p5124_p13, %p5120_p0 }
  0x82   : > { %5128 = shalt.err (!%p5125_p7)
}
  0x83   : > { %s5129_s11 = scalar_lea.vmem %s5665_s14, 4096  ;;  %s5389_s20 = smov [#allocation12]  }
  0x84   : > { %p5130_p11 = scmp.ne.s32.totalorder %s5665_s14, %s5129_s11  ;;  %s5134_s17 = sshll.u32 %s5389_s20, 4  ;;  %s5135_s17 = int_to_ptr.vmem [resolvable:$false] %s5134_s17 }
  0x85   : > { %s5136_s28 = scalar_lea.vmem %s5135_s17, 8192  ;;  %p5137_p5 = scmp.lt.s32.totalorder %s5665_s14, %s5135_s17 }
  0x86   : > { %p5132_p1 = pnand %p5130_p11, %p5607_p2  ;;  %p5138_p8 = scmp.lt.s32.totalorder %s5136_s28, %s5129_s11 }
  0x88   : > { %p5133_p3 = pneg %p5132_p1  ;;  %p5139_p10 = por %p5138_p8, %p5137_p5 }
  0x8a   : > { %p5140_p12 = pnand %p5139_p10, %p5133_p3 }
  0x8c   : > { %5143 = shalt.err (!%p5140_p12)
}
  0x8d   : > { %s5390_s18 = smov 256   ;;  %s5391_s12 = smov 16  }
  0x8e   : > { %4775 = dma.hbm_to_vmem [thread:$0]  (!%p5595_p9), %s5663_s25, 4096, %s5665_s14, %s5601_s19, %s5390_s18, %s5390_s18, %s5391_s12  }
  0x8f   : > { %s6607_s9 = sld [smem:[#allocation34_spill]]  ;;  %s666_s11 = scalar_lea.vmem [#allocation13], %s4178_s27 }
  0x90   : > { %s673_s20 = sshll.u32 %s666_s11, 4  ;;  %s5392_s17 = smov [#allocation5]   ;;  %s5697_s20 = int_to_ptr.vmem [resolvable:$true] %s673_s20 }
  0x91   : > { %s5699_s28 = sshll.u32 %s5392_s17, 4  ;;  %s554_s28 = int_to_ptr.vmem [resolvable:$true] %s5699_s28 }
  0x95   : > { %s5693_s23 = scalar_lea.hbm %s6607_s9, %s4379_s24  ;;  %s5149_s24 = scalar_lea.hbm %s6607_s9, 8192 }
  0x96   : > { %s5144_s5 = scalar_lea.hbm %s5693_s23, 4096  ;;  %p5150_p13 = scmp.lt.s32.totalorder %s5693_s23, %s6607_s9 }
  0x97   : > { %p5145_p0 = scmp.ne.s32.totalorder %s5693_s23, %s5144_s5  ;;  %p5151_p7 = scmp.lt.s32.totalorder %s5149_s24, %s5144_s5 }
  0x99   : > { %p5147_p6 = pnand %p5145_p0, %p5607_p2  ;;  %p5152_p11 = por %p5151_p7, %p5150_p13 }
  0x9b   : > { %p5148_p4 = pneg %p5147_p6 }
  0x9d   : > { %p5153_p1 = pnand %p5152_p11, %p5148_p4 }
  0x9f   : > { %5156 = shalt.err (!%p5153_p1)
}
  0xa0   : > { %s5157_s27 = scalar_lea.vmem %s5697_s20, 4096  ;;  %s5393_s22 = smov [#allocation13]  }
  0xa1   : > { %p5158_p3 = scmp.ne.s32.totalorder %s5697_s20, %s5157_s27  ;;  %s5162_s0 = sshll.u32 %s5393_s22, 4  ;;  %s5163_s0 = int_to_ptr.vmem [resolvable:$false] %s5162_s0 }
  0xa2   : > { %s5164_s11 = scalar_lea.vmem %s5163_s0, 8192  ;;  %p5165_p10 = scmp.lt.s32.totalorder %s5697_s20, %s5163_s0 }
  0xa3   : > { %p5160_p5 = pnand %p5158_p3, %p5607_p2  ;;  %p5166_p12 = scmp.lt.s32.totalorder %s5164_s11, %s5157_s27 }
  0xa5   : > { %p5161_p8 = pneg %p5160_p5  ;;  %p5167_p0 = por %p5166_p12, %p5165_p10 }
  0xa7   : > { %p5168_p6 = pnand %p5167_p0, %p5161_p8 }
  0xa9   : > { %5171 = shalt.err (!%p5168_p6)
}
  0xaa   : > { %s6571_s5 = smov 64   ;;  %s5395_s17 = smov 4  }
  0xab   : > { %4778 = dma.hbm_to_vmem [thread:$0]  (!%p5595_p9), %s5693_s23, 4096, %s5697_s20, %s5601_s19, %s6571_s5, %s6571_s5, %s5395_s17  }
  0xac   : > { %s6573_s14 = sshll.u32 %s5569_s2, 6  ;;  %s5183_s25 = scalar_lea.vmem %s554_s28, 512 }
  0xad   : > { %p5184_p4 = scmp.ne.s32.totalorder %s554_s28, %s5183_s25  ;;  %p6608_p13 = scmp.ne.s32.totalorder %s6600_s29, 0 }
  0xae   : > { %p5191_p3 = scmp.lt.s32.totalorder %s554_s28, %s554_s28  ;;  %p5192_p5 = scmp.lt.s32.totalorder %s5183_s25, %s5183_s25 }
  0xaf   : > { %p6609_p7 = pneg %p6608_p13 }
  0xb0   : > { %p5193_p8 = por %p5192_p5, %p5191_p3 }
  0xb1   : > { %p5186_p11 = pnand %p5184_p4, %p6609_p7 }
  0xb3   : > { %p5187_p1 = pneg %p5186_p11 }
  0xb5   : > { %p5194_p10 = pnand %p5193_p8, %p5187_p1 }
  0xb7   : > { %5197 = shalt.err (!%p5194_p10)
}
  0xb8   : > { %s6610_s24 = smov 8   ;;  %s6611_s18 = smov 128  }
  0xb9   : > { %s6612_s20 = sld [smem:[#allocation26_spill]]  ;;  %s4381_s27 = sshll.u32 %s5380_s21, 10 }
  0xba   : > { %s6613_s13 = sld [smem:[#allocation37_spill]]  ;;  %s705_s25 = scalar_lea.vmem [#allocation14], %s6573_s14 }
  0xbb   : > { %s712_s5 = sshll.u32 %s705_s25, 4  ;;  %s713_s5 = int_to_ptr.vmem [resolvable:$true] %s712_s5 }
  0xbf   : > { %4759 = dma.hbm_to_vmem [thread:$0]  (!%p6608_p13), %s6612_s20, 512, %s554_s28, [#allocation6], %s6611_s18, %s6611_s18, %s6610_s24  }
  0xc0   : > { %s5744_s11 = scalar_lea.hbm %s6613_s13, %s4381_s27  ;;  %s5203_s18 = scalar_lea.hbm %s6613_s13, 2048 }
  0xc1   : > { %s5198_s12 = scalar_lea.hbm %s5744_s11, 1024  ;;  %p5204_p4 = scmp.lt.s32.totalorder %s5744_s11, %s6613_s13 }
  0xc2   : > { %p5199_p12 = scmp.ne.s32.totalorder %s5744_s11, %s5198_s12  ;;  %p5205_p7 = scmp.lt.s32.totalorder %s5203_s18, %s5198_s12 }
  0xc4   : > { %p5201_p0 = pnand %p5199_p12, %p5607_p2  ;;  %p5206_p11 = por %p5205_p7, %p5204_p4 }
  0xc6   : > { %p5202_p6 = pneg %p5201_p0 }
  0xc8   : > { %p5207_p1 = pnand %p5206_p11, %p5202_p6 }
  0xca   : > { %5210 = shalt.err (!%p5207_p1)
}
  0xcb   : > { %s5211_s22 = scalar_lea.vmem %s713_s5, 1024  ;;  %s5396_s0 = smov [#allocation14]  }
  0xcc   : > { %p5212_p3 = scmp.ne.s32.totalorder %s713_s5, %s5211_s22  ;;  %s5216_s25 = sshll.u32 %s5396_s0, 4  ;;  %s5217_s25 = int_to_ptr.vmem [resolvable:$false] %s5216_s25 }
  0xcd   : > { %s5218_s14 = scalar_lea.vmem %s5217_s25, 2048  ;;  %p5219_p10 = scmp.lt.s32.totalorder %s713_s5, %s5217_s25 }
  0xce   : > { %p5214_p5 = pnand %p5212_p3, %p5607_p2  ;;  %p5220_p12 = scmp.lt.s32.totalorder %s5218_s14, %s5211_s22 }
  0xd0   : > { %p5215_p8 = pneg %p5214_p5  ;;  %p5221_p0 = por %p5220_p12, %p5219_p10 }
  0xd2   : > { %p5222_p13 = pnand %p5221_p0, %p5215_p8 }
  0xd4   : > { %5225 = shalt.err (!%p5222_p13)
}
  0xd5   : > { %s6614_s12 = smov 64   ;;  %s5397_s28 = smov [#allocation7]  }
  0xd6   : > { %4781 = dma.hbm_to_vmem [thread:$0]  (!%p5595_p9), %s5744_s11, 1024, %s713_s5, %s5601_s19, %s6614_s12, %s6614_s12, %s5395_s17  }
  0xd7   : > { %s569_s24 = sshll.u32 %s5397_s28, 4  ;;  %s5398_s18 = smov [#allocation8]   ;;  %s570_s24 = int_to_ptr.vmem [resolvable:$true] %s569_s24 }
  0xd8   : > { %s583_s23 = sshll.u32 %s5398_s18, 4  ;;  %s5237_s20 = scalar_lea.vmem %s570_s24, 1024  ;;  %s584_s23 = int_to_ptr.vmem [resolvable:$true] %s583_s23 }
  0xd9   : > { %p5238_p6 = scmp.ne.s32.totalorder %s570_s24, %s5237_s20  ;;  %p6615_p4 = scmp.ne.s32.totalorder %s6600_s29, 0 }
  0xda   : > { %p5245_p1 = scmp.lt.s32.totalorder %s570_s24, %s570_s24  ;;  %p5246_p3 = scmp.lt.s32.totalorder %s5237_s20, %s5237_s20 }
  0xdb   : > { %p6616_p7 = pneg %p6615_p4 }
  0xdc   : > { %p5247_p5 = por %p5246_p3, %p5245_p1 }
  0xdd   : > { %p5240_p11 = pnand %p5238_p6, %p6616_p7 }
  0xdf   : > { %p5241_p13 = pneg %p5240_p11 }
  0xe1   : > { %p5248_p8 = pnand %p5247_p5, %p5241_p13 }
  0xe3   : > { %5251 = shalt.err (!%p5248_p8)
}
  0xe4   : > { %s6617_s11 = sld [smem:[#allocation28_spill]]  ;;  %s5263_s22 = scalar_lea.vmem %s584_s23, 16 }
  0xe5   : > { %p5264_p10 = scmp.ne.s32.totalorder %s584_s23, %s5263_s22  ;;  %p6618_p12 = pmov %p6616_p7 }
  0xe6   : > { %s5270_s0 = scalar_lea.vmem %s584_s23, 32  ;;  %p5271_p7 = scmp.lt.s32.totalorder %s584_s23, %s584_s23 }
  0xe7   : > { %p5266_p0 = pnand %p5264_p10, %p6618_p12  ;;  %p5272_p11 = scmp.lt.s32.totalorder %s5270_s0, %s5263_s22 }
  0xe9   : > { %p5267_p6 = pneg %p5266_p0  ;;  %p5273_p13 = por %p5272_p11, %p5271_p7 }
  0xea   : > { %4762 = dma.hbm_to_vmem [thread:$0]  (!%p6615_p4), %s6617_s11, 1024, %s570_s24, [#allocation6], %s6614_s12, %s6614_s12, %s5395_s17  }
  0xeb   : > { %p5274_p1 = pnand %p5273_p13, %p5267_p6 }
  0xed   : > { %5277 = shalt.err (!%p5274_p1)
}
  0xee   : > { %s6619_s4 = sld [smem:[#allocation29_spill]]  ;;  %s6621_s5 = sshll.u32 %s5569_s2, 6 }
  0xef   : > { %s6620_s15 = sld [smem:[#allocation39_spill]]  ;;  %s732_s14 = scalar_lea.vmem [#allocation15], %s6621_s5 }
  0xf0   : > { %s739_s11 = sshll.u32 %s732_s14, 4  ;;  %s740_s11 = int_to_ptr.vmem [resolvable:$true] %s739_s11 }
  0xf4   : > { %4765 = dma.hbm_to_vmem [thread:$0]  (!%p6615_p4), %s6619_s4, 16, %s584_s23, [#allocation9]  }
  0xf5   : > { %s5792_s20 = scalar_lea.hbm %s6620_s15, %s4381_s27  ;;  %s5283_s21 = scalar_lea.hbm %s6620_s15, 2048 }
  0xf6   : > { %s5278_s29 = scalar_lea.hbm %s5792_s20, 1024  ;;  %p5284_p4 = scmp.lt.s32.totalorder %s5792_s20, %s6620_s15 }
  0xf7   : > { %p5279_p3 = scmp.ne.s32.totalorder %s5792_s20, %s5278_s29  ;;  %p5285_p10 = scmp.lt.s32.totalorder %s5283_s21, %s5278_s29 }
  0xf9   : > { %p5281_p5 = pnand %p5279_p3, %p5607_p2  ;;  %p5286_p12 = por %p5285_p10, %p5284_p4 }
  0xfb   : > { %p5282_p8 = pneg %p5281_p5 }
  0xfd   : > { %p5287_p0 = pnand %p5286_p12, %p5282_p8 }
  0xff   : > { %5290 = shalt.err (!%p5287_p0)
}
 0x100   : > { %s5291_s2 = scalar_lea.vmem %s740_s11, 1024  ;;  %s5399_s27 = smov [#allocation15]  }
 0x101   : > { %p5292_p6 = scmp.ne.s32.totalorder %s740_s11, %s5291_s2  ;;  %s5296_s28 = sshll.u32 %s5399_s27, 4  ;;  %s5297_s28 = int_to_ptr.vmem [resolvable:$false] %s5296_s28 }
 0x102   : > { %s5298_s24 = scalar_lea.vmem %s5297_s28, 2048  ;;  %p5299_p13 = scmp.lt.s32.totalorder %s740_s11, %s5297_s28 }
 0x103   : > { %p5294_p7 = pnand %p5292_p6, %p5607_p2  ;;  %p5300_p1 = scmp.lt.s32.totalorder %s5298_s24, %s5291_s2 }
 0x105   : > { %p5295_p11 = pneg %p5294_p7  ;;  %p5301_p3 = por %p5300_p1, %p5299_p13 }
 0x107   : > { %p5302_p5 = pnand %p5301_p3, %p5295_p11 }
 0x109   : > { %5305 = shalt.err (!%p5302_p5)
}
 0x10a   : > { %4784 = dma.hbm_to_vmem [thread:$0]  (!%p5595_p9), %s5792_s20, 1024, %s740_s11, %s5601_s19, %s6614_s12, %s6614_s12, %s5395_s17  }
 0x10b   : > { %p6622_p2 = scmp.ne.s32.totalorder %s6599_s26, 0 }
 0x10c   : > { %p6623_p8 = scmp.eq.s32.totalorder (!%p6622_p2), %s5525_s1, 0 }
 0x10d   : > { %769 = sbr.rel (%p6622_p2) target bundleno = 4121 (0x1019), region = 96 }
 0x112   : > { %5347 = dma.done.wait (%p6623_p8), [#allocation3], 512   ;;  %p6624_p4 = pmov %p6623_p8 }
 0x114   : > { %5349 = vsyncadd (%p6624_p4), [#allocation3], 4294966784  ;;  %p6625_p10 = pmov %p6624_p4 }
 0x115   : > { %p6626_p12 = pmov %p6624_p4 }
 0x116   : > { %5351 = dma.done.wait (%p6625_p10), [#allocation6], 1536  }
 0x117   : > { %5353 = vsyncadd (%p6626_p12), [#allocation6], 4294965760  ;;  %p6627_p0 = pmov %p6624_p4 }
 0x119   : > { %5355 = dma.done.wait (%p6627_p0), [#allocation9], 16   ;;  %p6628_p9 = pmov %p6627_p0 }
 0x11a   : > { %s787_s8 = sand.u32 1, %s5525_s1   ;;  %s789_s26 = sand.u32 1, %s5372_s30  }
 0x11b   : > { %5357 = vsyncadd (%p6628_p9), [#allocation9], 4294967280  ;;  %s4195_s19 = sshll.u32 %s789_s26, 9  ;;  %s788_s16 = scalar_lea.sflag [#allocation3], %s787_s8 }
 0x11c   : > { %s5832_s17 = scalar_lea.vmem [#allocation10], %s4195_s19  ;;  %p6629_p6 = scmp.ne.s32.totalorder %s6598_s3, 0 }
 0x11e   : > { %5359 = dma.done.wait (%p6629_p6), %s788_s16, 18560  }
 0x11f   : > { %5361 = vsyncadd (%p6629_p6), %s788_s16, 4294948736  ;;  %s4196_s12 = sshll.u32 %s789_s26, 3  ;;  %s4197_s18 = sshll.u32 %s789_s26, 8 }
 0x120   : > { %s4199_s20 = sshll.u32 %s789_s26, 6  ;;  %p936_p7 = scmp.lt.s32.totalorder %s5525_s1, 1 }
 0x121   : > { %s6630_s21 = sld [smem:[#allocation33_spill]]  ;;  %s5878_s24 = scalar_lea.vmem [#allocation12], %s4197_s18 }
 0x122   : > { %s5840_s5 = scalar_select %p936_p7, %s5525_s1, 1 }
 0x123   : > { %s6631_s27 = sld [smem:[#allocation35_spill]]  ;;  %s5880_s8 = scalar_lea.vmem [#allocation13], %s4197_s18 }
 0x124   : > { %s4201_s14 = sshll.u32 %s5840_s5, 2  ;;  %s6632_s26 = sld [smem:[#allocation36_spill]] }
 0x125   : > { %s6633_s6 = sld [smem:[#allocation38_spill]]  ;;  %s5882_s4 = scalar_lea.vmem [#allocation14], %s4199_s20 }
 0x126   : > { %s6634_s3 = sld [smem:[#allocation40_spill]]  ;;  %p6637_p11 = scmp.ne.s32.totalorder %s5525_s1, 0 }
 0x127   : > { %s5850_s0 = scalar_lea.vmem %s6630_s21, %s4201_s14  ;;  %s6635_s14 = sld [smem:[#allocation41_spill]] }
 0x128   : > { %s6636_s25 = sld [smem:[#allocation42_spill]] }
 0x129   : > { %s945_s28 = scalar_lea.vmem %s6631_s27, %s5840_s5  ;;  %s5876_s27 = scalar_lea.vmem [#allocation11], %s4196_s12 }
 0x12a   : > { %s948_s19 = scalar_lea.vmem %s6632_s26, %s5840_s5  ;;  %965 = sbr.rel (%p6637_p11) target bundleno = 538 (0x21a), region = 140 }
 0x12b   : > { %s951_s7 = scalar_lea.vmem %s6633_s6, %s5840_s5  ;;  %s5884_s6 = scalar_lea.vmem [#allocation15], %s4199_s20 }
 0x12c   : > { %s954_s29 = scalar_lea.vmem %s6634_s3, %s5840_s5 }
 0x12d   : > { %s957_s23 = scalar_lea.vmem %s6635_s14, %s5840_s5 }
 0x12e   : > { %s960_s2 = scalar_lea.vmem %s6636_s25, %s5840_s5 }
 0x12f   : > { %v4846_v0 = vld [vmem:[#allocation7 + $0x38] sm:$0xff]   ;;  %v4847_v1 = vld [vmem:[#allocation7 + $0x30] sm:$0xff]   ;;  %v4848_v2 = vld [vmem:[#allocation7 + $0x28] sm:$0xff]  }
 0x130   : > { %4485 = vmatprep.subr.bf16.mxu0 %v4846_v0  ;;  %v4849_v3 = vld [vmem:[#allocation7 + $0x20] sm:$0xff]   ;;  %v967_v5 = vld [vmem:[#allocation2 + $0x8] sm:$0xff]  ;;  %v4850_v7 = vld [vmem:[#allocation7 + $0x18] sm:$0xff]  }
 0x131   : > { %4486 = vmatpush3.bf16.msra.mxu0 %v4846_v0  ;;  %v966_v4 = vld [vmem:[#allocation2] sm:$0xff]  ;;  %v4851_v8 = vld [vmem:[#allocation7 + $0x10] sm:$0xff]   ;;  %v4852_v9 = vld [vmem:[#allocation7 + $0x8] sm:$0xff]  }
 0x132   : > { %4487 = vmatprep.subr.bf16.mxu0 %v4847_v1  ;;  %v970_v6 = vpack.c.bf16 %v967_v5, %v966_v4  ;;  %v4853_v10 = vld [vmem:[#allocation7] sm:$0xff]   ;;  %v968_v11 = vld [vmem:[#allocation2 + $0x10] sm:$0xff]  ;;  %v969_v12 = vld [vmem:[#allocation2 + $0x18] sm:$0xff] }
 0x133   : > { %v971_v13 = vpack.c.bf16 %v969_v12, %v968_v11  ;;  %v4203_v14 = vld [vmem:[#allocation8] ss:$0 sm:$0xff] }
 0x134   : > { %4501 = vmatprep.mubr.bf16.mxu0 %v970_v6 }
 0x135   : > { %4488 = vmatpush3.bf16.msra.mxu0 %v4847_v1 }
 0x136   : > { %4489 = vmatprep.subr.bf16.mxu0 %v4848_v2 }
 0x139   : > { %4490 = vmatpush3.bf16.msra.mxu0 %v4848_v2 }
 0x13a   : > { %4491 = vmatprep.subr.bf16.mxu0 %v4849_v3 }
 0x13d   : > { %4492 = vmatpush3.bf16.msra.mxu0 %v4849_v3 }
 0x13e   : > { %4493 = vmatprep.subr.bf16.mxu0 %v4850_v7 }
 0x141   : > { %4494 = vmatpush3.bf16.msra.mxu0 %v4850_v7 }
 0x142   : > { %4495 = vmatprep.subr.bf16.mxu0 %v4851_v8 }
 0x145   : > { %4496 = vmatpush3.bf16.msra.mxu0 %v4851_v8 }
 0x146   : > { %4497 = vmatprep.subr.bf16.mxu0 %v4852_v9 }
 0x149   : > { %4498 = vmatpush3.bf16.msra.mxu0 %v4852_v9 }
 0x14a   : > { %4499 = vmatprep.subr.bf16.mxu0 %v4853_v10 }
 0x14d   : > { %4500 = vmatpush3.bf16.msra.mxu0 %v4853_v10 }
 0x150   : > { %4502 = vmatmul.mubr.bf16.vlgmr.msra.gmra.mxu0 %v971_v13 }
 0x210   : > { %v4503_v15 = vpop.f32.mrf.mxu0 }
 0x211   : > { %v1086_v16 = vadd.f32 %v4503_v15, %v4203_v14 }
 0x212   : > { %v1077_v17 = vpop.f32.mrf.mxu0 }
 0x213   : > { %1094 = vst [vmem:[#allocation16 + $0x10] sm:$0xff] %v1086_v16  ;;  %v1078_v18 = vadd.f32 %v4203_v14, %v1077_v17 }
 0x214   : > { %v4504_v19 = vpop.f32.mrf.mxu0 }
 0x215   : > { %1092 = vst [vmem:[#allocation16] sm:$0xff] %v1078_v18  ;;  %v1089_v20 = vadd.f32 %v4504_v19, %v4203_v14 }
 0x216   : > { %v1080_v21 = vpop.f32.mrf.mxu0 }
 0x217   : > { %1095 = vst [vmem:[#allocation16 + $0x18] sm:$0xff] %v1089_v20  ;;  %v1081_v22 = vadd.f32 %v4203_v14, %v1080_v21 }
 0x219   : > { %1093 = vst [vmem:[#allocation16 + $0x8] sm:$0xff] %v1081_v22 }
 0x21a PF: > { %v1168_v23 = vld [vmem:[%s5832_s17 + $0x1c0] sm:$0xff]  ;;  %v5400_v29 = vmov 0   ;;  %v1169_v44 = vld [vmem:[%s5832_s17 + $0x1c8] sm:$0xff]  ;;  %v1170_v11 = vld [vmem:[%s5832_s17 + $0x1d0] sm:$0xff]  ;;  %vm5402_vm0 = vmmov 0   ;;  %s6638_s15 = sld [smem:[#allocation27_spill]] }
 0x21b   : > { %v1172_v24 = vld [vmem:[%s5832_s17 + $0x1e0] sm:$0xff]  ;;  %1570 = vmatprep.mubr.bf16.mxu0 %v5400_v29  ;;  %1623 = vmatprep.mubr.bf16.mxu1 %v5400_v29  ;;  %v1173_v45 = vld [vmem:[%s5832_s17 + $0x1e8] sm:$0xff]  ;;  %v1174_v12 = vld [vmem:[%s5832_s17 + $0x1f0] sm:$0xff]  ;;  %vm2245_vm1 = vcmask 130048   ;;  %p4794_p13 = scmp.eq.s32.totalorder %s5525_s1, 1 }
 0x21c   : > { %v1160_v25 = vld [vmem:[%s5832_s17 + $0x180] sm:$0xff]  ;;  %v4269_v26 = vcombine.high %v1168_v23, %v1172_v24  ;;  %v4268_v27 = vcombine.low %v1168_v23, %v1172_v24  ;;  %v4271_v47 = vcombine.high %v1169_v44, %v1173_v45  ;;  %v1161_v48 = vld [vmem:[%s5832_s17 + $0x188] sm:$0xff]  ;;  %v4270_v50 = vcombine.low %v1169_v44, %v1173_v45  ;;  %v5914_v3 = vld [vmem:[#allocation16] sm:$0xff] }
 0x21d   : > { %v1164_v28 = vld [vmem:[%s5832_s17 + $0x1a0] sm:$0xff]  ;;  %v1165_v49 = vld [vmem:[%s5832_s17 + $0x1a8] sm:$0xff]  ;;  %v1162_v21 = vld [vmem:[%s5832_s17 + $0x190] sm:$0xff]  ;;  %v4273_v23 = vcombine.high %v1170_v11, %v1174_v12 }
 0x21e   : > { %v4261_v30 = vcombine.high %v1160_v25, %v1164_v28  ;;  %v1152_v31 = vld [vmem:[%s5832_s17 + $0x140] sm:$0xff]  ;;  %1538 = vmatprep.subr.bf16.mxu0 %v4269_v26  ;;  %v4260_v33 = vcombine.low %v1160_v25, %v1164_v28  ;;  %v4263_v51 = vcombine.high %v1161_v48, %v1165_v49  ;;  %v1153_v52 = vld [vmem:[%s5832_s17 + $0x148] sm:$0xff]  ;;  %1591 = vmatprep.subr.bf16.mxu1 %v4271_v47  ;;  %v1166_v22 = vld [vmem:[%s5832_s17 + $0x1b0] sm:$0xff] }
 0x21f   : > { %v1156_v32 = vld [vmem:[%s5832_s17 + $0x160] sm:$0xff]  ;;  %1539 = vmatpush1.bf16.msra.mxu0 %v4268_v27  ;;  %v1157_v53 = vld [vmem:[%s5832_s17 + $0x168] sm:$0xff]  ;;  %1592 = vmatpush1.bf16.msra.mxu1 %v4270_v50  ;;  %v4262_v56 = vcombine.low %v1161_v48, %v1165_v49  ;;  %v4264_v44 = vcombine.low %v1162_v21, %v1166_v22  ;;  %v1146_v45 = vld [vmem:[%s5832_s17 + $0x110] sm:$0xff] }
 0x220   : > { %1540 = vmatprep.subr.bf16.mxu0 %v4261_v30  ;;  %v4253_v34 = vcombine.high %v1152_v31, %v1156_v32  ;;  %v1144_v35 = vld [vmem:[%s5832_s17 + $0x100] sm:$0xff]  ;;  %v4252_v37 = vcombine.low %v1152_v31, %v1156_v32  ;;  %1593 = vmatprep.subr.bf16.mxu1 %v4263_v51  ;;  %v4255_v59 = vcombine.high %v1153_v52, %v1157_v53  ;;  %v1145_v60 = vld [vmem:[%s5832_s17 + $0x108] sm:$0xff]  ;;  %v5916_v4 = vld [vmem:[#allocation16 + $0x8] sm:$0xff] }
 0x221   : > { %v1148_v36 = vld [vmem:[%s5832_s17 + $0x120] sm:$0xff]  ;;  %v1149_v61 = vld [vmem:[%s5832_s17 + $0x128] sm:$0xff]  ;;  %v4254_v2 = vcombine.low %v1153_v52, %v1157_v53  ;;  %v1103_v31 = vld [vmem:[#allocation5 + $0x18] sm:$0xff] }
 0x222   : > { %v4245_v38 = vcombine.high %v1144_v35, %v1148_v36  ;;  %v1136_v39 = vld [vmem:[%s5832_s17 + $0xc0] sm:$0xff]  ;;  %v4244_v41 = vcombine.low %v1144_v35, %v1148_v36  ;;  %v4247_v6 = vcombine.high %v1145_v60, %v1149_v61  ;;  %v1137_v8 = vld [vmem:[%s5832_s17 + $0xc8] sm:$0xff]  ;;  %v4246_v14 = vcombine.low %v1145_v60, %v1149_v61  ;;  %v1154_v35 = vld [vmem:[%s5832_s17 + $0x150] sm:$0xff] }
 0x223   : > { %1541 = vmatpush1.bf16.msra.mxu0 %v4260_v33  ;;  %v1140_v40 = vld [vmem:[%s5832_s17 + $0xe0] sm:$0xff]  ;;  %1594 = vmatpush1.bf16.msra.mxu1 %v4262_v56  ;;  %v1141_v9 = vld [vmem:[%s5832_s17 + $0xe8] sm:$0xff]  ;;  %v1158_v36 = vld [vmem:[%s5832_s17 + $0x170] sm:$0xff] }
 0x224   : > { %1542 = vmatprep.subr.bf16.mxu0 %v4253_v34  ;;  %v4237_v42 = vcombine.high %v1136_v39, %v1140_v40  ;;  %v1128_v43 = vld [vmem:[%s5832_s17 + $0x80] sm:$0xff]  ;;  %v4236_v54 = vcombine.low %v1136_v39, %v1140_v40  ;;  %1595 = vmatprep.subr.bf16.mxu1 %v4255_v59  ;;  %v1129_v15 = vld [vmem:[%s5832_s17 + $0x88] sm:$0xff]  ;;  %v4239_v17 = vcombine.high %v1137_v8, %v1141_v9  ;;  %v1171_v49 = vld [vmem:[%s5832_s17 + $0x1d8] sm:$0xff] }
 0x225   : > { %v1132_v46 = vld [vmem:[%s5832_s17 + $0xa0] sm:$0xff]  ;;  %v1133_v16 = vld [vmem:[%s5832_s17 + $0xa8] sm:$0xff]  ;;  %v4238_v24 = vcombine.low %v1137_v8, %v1141_v9  ;;  %v4272_v34 = vcombine.low %v1170_v11, %v1174_v12  ;;  %v4257_v47 = vcombine.high %v1154_v35, %v1158_v36  ;;  %v1175_v50 = vld [vmem:[%s5832_s17 + $0x1f8] sm:$0xff]  ;;  %v4256_v53 = vcombine.low %v1154_v35, %v1158_v36 }
 0x226   : > { %v4229_v55 = vcombine.high %v1128_v43, %v1132_v46  ;;  %v1120_v57 = vld [vmem:[%s5832_s17 + $0x40] sm:$0xff]  ;;  %v4228_v62 = vcombine.low %v1128_v43, %v1132_v46  ;;  %v1121_v25 = vld [vmem:[%s5832_s17 + $0x48] sm:$0xff]  ;;  %v4231_v32 = vcombine.high %v1129_v15, %v1133_v16  ;;  %v1150_v46 = vld [vmem:[%s5832_s17 + $0x130] sm:$0xff]  ;;  %v4275_v60 = vcombine.high %v1171_v49, %v1175_v50 }
 0x227   : > { %1543 = vmatpush1.bf16.msra.mxu0 %v4252_v37  ;;  %v1124_v58 = vld [vmem:[%s5832_s17 + $0x60] sm:$0xff]  ;;  %1596 = vmatpush1.bf16.msra.mxu1 %v4254_v2  ;;  %v1125_v26 = vld [vmem:[%s5832_s17 + $0x68] sm:$0xff]  ;;  %v4265_v37 = vcombine.high %v1162_v21, %v1166_v22  ;;  %v4249_v56 = vcombine.high %v1146_v45, %v1150_v46  ;;  %v1167_v59 = vld [vmem:[%s5832_s17 + $0x1b8] sm:$0xff]  ;;  %v4248_v61 = vcombine.low %v1146_v45, %v1150_v46 }
 0x228   : > { %1544 = vmatprep.subr.bf16.mxu0 %v4245_v38  ;;  %v4221_v63 = vcombine.high %v1120_v57, %v1124_v58  ;;  %v1112_v0 = vld [vmem:[%s5832_s17] sm:$0xff]  ;;  %v4220_v10 = vcombine.low %v1120_v57, %v1124_v58  ;;  %1597 = vmatprep.subr.bf16.mxu1 %v4247_v6  ;;  %v5932_v28 = vld [vmem:[#allocation16 + $0x18] sm:$0xff]  ;;  %v4230_v38 = vcombine.low %v1129_v15, %v1133_v16  ;;  %v1163_v58 = vld [vmem:[%s5832_s17 + $0x198] sm:$0xff] }
 0x229   : > { %v1116_v1 = vld [vmem:[%s5832_s17 + $0x20] sm:$0xff]  ;;  %v1102_v30 = vld [vmem:[#allocation5 + $0x10] sm:$0xff]  ;;  %v1109_v43 = vadd.f32 %v1103_v31, %v5932_v28  ;;  %v4222_v48 = vcombine.low %v1121_v25, %v1125_v26  ;;  %v1155_v2 = vld [vmem:[%s5832_s17 + $0x158] sm:$0xff]  ;;  %v4267_v6 = vcombine.high %v1163_v58, %v1167_v59  ;;  %v4266_v11 = vcombine.low %v1163_v58, %v1167_v59 }
 0x22a   : > { %v1100_v5 = vld [vmem:[#allocation5] sm:$0xff]  ;;  %v1101_v7 = vld [vmem:[#allocation5 + $0x8] sm:$0xff]  ;;  %v4213_v13 = vcombine.high %v1112_v0, %v1116_v1  ;;  %v4212_v20 = vcombine.low %v1112_v0, %v1116_v1  ;;  %v4274_v1 = vcombine.low %v1171_v49, %v1175_v50  ;;  %v1122_v8 = vld [vmem:[%s5832_s17 + $0x50] sm:$0xff] }
 0x22b   : > { %1545 = vmatpush1.bf16.msra.mxu0 %v4244_v41  ;;  %v1106_v18 = vadd.f32 %v1100_v5, %v5914_v3  ;;  %v1107_v19 = vadd.f32 %v1101_v7, %v5916_v4  ;;  %1598 = vmatpush1.bf16.msra.mxu1 %v4246_v14  ;;  %v5930_v27 = vld [vmem:[#allocation16 + $0x10] sm:$0xff]  ;;  %v1113_v39 = vld [vmem:[%s5832_s17 + $0x8] sm:$0xff]  ;;  %v4223_v41 = vcombine.high %v1121_v25, %v1125_v26  ;;  %v1159_v5 = vld [vmem:[%s5832_s17 + $0x178] sm:$0xff] }
 0x22c   : > { %1546 = vmatprep.subr.bf16.mxu0 %v4237_v42  ;;  %1599 = vmatprep.subr.bf16.mxu1 %v4239_v17  ;;  %v1117_v40 = vld [vmem:[%s5832_s17 + $0x28] sm:$0xff]  ;;  %v1108_v42 = vadd.f32 %v1102_v30, %v5930_v27  ;;  %v1126_v9 = vld [vmem:[%s5832_s17 + $0x70] sm:$0xff]  ;;  %v1147_v12 = vld [vmem:[%s5832_s17 + $0x118] sm:$0xff]  ;;  %v4259_v14 = vcombine.high %v1155_v2, %v1159_v5 }
 0x22d   : > { %v5934_v33 = vpack.c.bf16 %v1107_v19, %v1106_v18  ;;  %v4215_v51 = vcombine.high %v1113_v39, %v1117_v40  ;;  %v4214_v57 = vcombine.low %v1113_v39, %v1117_v40  ;;  %v1114_v16 = vld [vmem:[%s5832_s17 + $0x10] sm:$0xff]  ;;  %v4225_v18 = vcombine.high %v1122_v8, %v1126_v9  ;;  %v1143_v21 = vld [vmem:[%s5832_s17 + $0xf8] sm:$0xff] }
 0x22e   : > { %v5948_v52 = vpack.c.bf16 %v1109_v43, %v1108_v42  ;;  %v1118_v17 = vld [vmem:[%s5832_s17 + $0x30] sm:$0xff]  ;;  %v4258_v19 = vcombine.low %v1155_v2, %v1159_v5  ;;  %v1131_v26 = vld [vmem:[%s5832_s17 + $0x98] sm:$0xff] }
 0x22f   : > { %1547 = vmatpush1.bf16.msra.mxu0 %v4236_v54  ;;  %1600 = vmatpush1.bf16.msra.mxu1 %v4238_v24  ;;  %v1138_v54 = vld [vmem:[%s5832_s17 + $0xd0] sm:$0xff]  ;;  %v4217_v24 = vcombine.high %v1114_v16, %v1118_v17  ;;  %v1135_v30 = vld [vmem:[%s5832_s17 + $0xb8] sm:$0xff] }
 0x230   : > { %1548 = vmatprep.subr.bf16.mxu0 %v4229_v55  ;;  %1601 = vmatprep.subr.bf16.mxu1 %v4231_v32  ;;  %v1142_v55 = vld [vmem:[%s5832_s17 + $0xf0] sm:$0xff]  ;;  %v4216_v32 = vcombine.low %v1114_v16, %v1118_v17  ;;  %v1123_v35 = vld [vmem:[%s5832_s17 + $0x58] sm:$0xff]  ;;  %v5401_v16 = vmov 0.0  }
 0x231   : > { %v4241_v0 = vcombine.high %v1138_v54, %v1142_v55  ;;  %v4240_v7 = vcombine.low %v1138_v54, %v1142_v55  ;;  %v1127_v36 = vld [vmem:[%s5832_s17 + $0x78] sm:$0xff]  ;;  %v4859_v49 = vld [vmem:[%s5878_s24 + $0xe4] ss:$16 sps:$4 sm:$0xff]   ;;  %v4857_v50 = vld [vmem:[%s5878_s24 + $0xe0] ss:$16 sps:$4 sm:$0xff]  }
 0x232   : > { %v4227_v39 = vcombine.high %v1123_v35, %v1127_v36  ;;  %v1115_v40 = vld [vmem:[%s5832_s17 + $0x18] sm:$0xff]  ;;  %v4226_v42 = vcombine.low %v1123_v35, %v1127_v36  ;;  %v4863_v54 = vld [vmem:[%s5878_s24 + $0xc0] ss:$16 sps:$4 sm:$0xff]   ;;  %v4877_v59 = vld [vmem:[%s5878_s24 + $0x84] ss:$16 sps:$4 sm:$0xff]  }
 0x233   : > { %1549 = vmatpush1.bf16.msra.mxu0 %v4228_v62  ;;  %1602 = vmatpush1.bf16.msra.mxu1 %v4230_v38  ;;  %v1130_v62 = vld [vmem:[%s5832_s17 + $0x90] sm:$0xff]  ;;  %v4234_v38 = vcombine.low %v1131_v26, %v1135_v30  ;;  %v4856_v45 = vld [vmem:[%s5878_s24 + $0xec] ss:$16 sps:$4 sm:$0xff]   ;;  %v4854_v46 = vld [vmem:[%s5878_s24 + $0xe8] ss:$16 sps:$4 sm:$0xff]  }
 0x234   : > { %1550 = vmatprep.subr.bf16.mxu0 %v4221_v63  ;;  %1603 = vmatprep.subr.bf16.mxu1 %v4223_v41  ;;  %v1134_v63 = vld [vmem:[%s5832_s17 + $0xb0] sm:$0xff]  ;;  %v1119_v41 = vld [vmem:[%s5832_s17 + $0x38] sm:$0xff] }
 0x235   : > { %v4232_v15 = vcombine.low %v1130_v62, %v1134_v63  ;;  %v4219_v43 = vcombine.high %v1115_v40, %v1119_v41  ;;  %v4872_v55 = vld [vmem:[%s5878_s24 + $0x88] ss:$16 sps:$4 sm:$0xff]   ;;  %v4869_v58 = vld [vmem:[%s5878_s24 + $0xa0] ss:$16 sps:$4 sm:$0xff]   ;;  %v4889_v2 = vld [vmem:[%s5878_s24 + $0x44] ss:$16 sps:$4 sm:$0xff]  }
 0x236   : > { %v4892_v5 = vld [vmem:[%s5878_s24 + $0x2c] ss:$16 sps:$4 sm:$0xff]  }
 0x237   : > { %1551 = vmatpush1.bf16.msra.mxu0 %v4220_v10  ;;  %1604 = vmatpush1.bf16.msra.mxu1 %v4222_v48  ;;  %v4233_v10 = vcombine.high %v1130_v62, %v1134_v63  ;;  %v4860_v48 = vld [vmem:[%s5878_s24 + $0xc8] ss:$16 sps:$4 sm:$0xff]   ;;  %v4886_v62 = vld [vmem:[%s5878_s24 + $0x4c] ss:$16 sps:$4 sm:$0xff]   ;;  %v4883_v63 = vld [vmem:[%s5878_s24 + $0x64] ss:$16 sps:$4 sm:$0xff]  }
 0x238   : > { %1552 = vmatprep.subr.bf16.mxu0 %v4213_v13  ;;  %1605 = vmatprep.subr.bf16.mxu1 %v4215_v51  ;;  %v1151_v13 = vld [vmem:[%s5832_s17 + $0x138] sm:$0xff] }
 0x239   : > { %v4251_v22 = vcombine.high %v1147_v12, %v1151_v13  ;;  %v4250_v25 = vcombine.low %v1147_v12, %v1151_v13  ;;  %v4866_v51 = vld [vmem:[%s5878_s24 + $0xa8] ss:$16 sps:$4 sm:$0xff]   ;;  %v4901_v12 = vld [vmem:[%s5878_s24 + $0x4] ss:$16 sps:$4 sm:$0xff]   ;;  %v1750_v13 = vpack.c.bf16 %v5916_v4, %v5914_v3  ;;  %v1178_v3 = vlaneseq }
 0x23b   : > { %1553 = vmatpush1.bf16.msra.mxu0 %v4212_v20  ;;  %1606 = vmatpush1.bf16.msra.mxu1 %v4214_v57  ;;  %v1139_v20 = vld [vmem:[%s5832_s17 + $0xd8] sm:$0xff] }
 0x23c   : > { %1644 = vmatprep.subr.bf16.mxu0 %v4273_v23  ;;  %1697 = vmatprep.subr.bf16.mxu1 %v4275_v60  ;;  %v4224_v23 = vcombine.low %v1122_v8, %v1126_v9  ;;  %v4243_v31 = vcombine.high %v1139_v20, %v1143_v21  ;;  %v4880_v57 = vld [vmem:[%s5878_s24 + $0x6c] ss:$16 sps:$4 sm:$0xff]   ;;  %v4878_v60 = vld [vmem:[%s5878_s24 + $0x68] ss:$16 sps:$4 sm:$0xff]   ;;  %v4887_v8 = vld [vmem:[%s5878_s24 + $0x40] ss:$16 sps:$4 sm:$0xff]  }
 0x23d   : > { %v4895_v9 = vld [vmem:[%s5878_s24 + $0x24] ss:$16 sps:$4 sm:$0xff]  }
 0x23e   : > { %1571 = vmatmul.mubr.bf16.vlgmr.msra.gmra.mxu0 %v5934_v33  ;;  %1624 = vmatmul.mubr.bf16.vlgmr.msra.gmra.mxu1 %v5934_v33 }
 0x23f   : > { %1645 = vmatpush1.bf16.msra.mxu0 %v4272_v34  ;;  %1580 = vmatprep.mubr.bf16.mxu0 %v5400_v29  ;;  %v4242_v34 = vcombine.low %v1139_v20, %v1143_v21 }
 0x240   : > { %1646 = vmatprep.subr.bf16.mxu0 %v4265_v37  ;;  %1698 = vmatpush1.bf16.msra.mxu1 %v4274_v1  ;;  %v4235_v37 = vcombine.high %v1131_v26, %v1135_v30  ;;  %v4881_v1 = vld [vmem:[%s5878_s24 + $0x60] ss:$16 sps:$4 sm:$0xff]  }
 0x241   : > { %1699 = vmatprep.subr.bf16.mxu1 %v4267_v6  ;;  %1633 = vmatprep.mubr.bf16.mxu1 %v5400_v29  ;;  %v4890_v6 = vld [vmem:[%s5878_s24 + $0x28] ss:$16 sps:$4 sm:$0xff]  }
 0x243   : > { %1647 = vmatpush1.bf16.msra.mxu0 %v4264_v44  ;;  %v4218_v44 = vcombine.low %v1115_v40, %v1119_v41 }
 0x244   : > { %1648 = vmatprep.subr.bf16.mxu0 %v4257_v47  ;;  %1700 = vmatpush1.bf16.msra.mxu1 %v4266_v11  ;;  %v4862_v47 = vld [vmem:[%s5878_s24 + $0xcc] ss:$16 sps:$4 sm:$0xff]   ;;  %v4893_v11 = vld [vmem:[%s5878_s24 + $0x20] ss:$16 sps:$4 sm:$0xff]  }
 0x245   : > { %1701 = vmatprep.subr.bf16.mxu1 %v4259_v14  ;;  %v4899_v14 = vld [vmem:[%s5878_s24] ss:$16 sps:$4 sm:$0xff]  }
 0x246   : > { %1581 = vmatmul.mubr.bf16.gmra.mxu0 %v5948_v52  ;;  %1634 = vmatmul.mubr.bf16.gmra.mxu1 %v5948_v52 }
 0x247   : > { %1649 = vmatpush1.bf16.msra.mxu0 %v4256_v53  ;;  %1676 = vmatprep.mubr.bf16.mxu0 %v5400_v29  ;;  %v4874_v53 = vld [vmem:[%s5878_s24 + $0x8c] ss:$16 sps:$4 sm:$0xff]  }
 0x248   : > { %1650 = vmatprep.subr.bf16.mxu0 %v4249_v56  ;;  %1702 = vmatpush1.bf16.msra.mxu1 %v4258_v19  ;;  %v4871_v56 = vld [vmem:[%s5878_s24 + $0xa4] ss:$16 sps:$4 sm:$0xff]  }
 0x249   : > { %1703 = vmatprep.subr.bf16.mxu1 %v4251_v22  ;;  %1729 = vmatprep.mubr.bf16.mxu1 %v5400_v29 }
 0x24b   : > { %1651 = vmatpush1.bf16.msra.mxu0 %v4248_v61  ;;  %v4875_v61 = vld [vmem:[%s5878_s24 + $0x80] ss:$16 sps:$4 sm:$0xff]  }
 0x24c   : > { %1652 = vmatprep.subr.bf16.mxu0 %v4241_v0  ;;  %1704 = vmatpush1.bf16.msra.mxu1 %v4250_v25  ;;  %v4884_v0 = vld [vmem:[%s5878_s24 + $0x48] ss:$16 sps:$4 sm:$0xff]  }
 0x24d   : > { %1705 = vmatprep.subr.bf16.mxu1 %v4243_v31 }
 0x24f   : > { %1653 = vmatpush1.bf16.msra.mxu0 %v4240_v7  ;;  %v4898_v7 = vld [vmem:[%s5878_s24 + $0xc] ss:$16 sps:$4 sm:$0xff]  }
 0x250   : > { %1654 = vmatprep.subr.bf16.mxu0 %v4233_v10  ;;  %1706 = vmatpush1.bf16.msra.mxu1 %v4242_v34  ;;  %v4896_v10 = vld [vmem:[%s5878_s24 + $0x8] ss:$16 sps:$4 sm:$0xff]  }
 0x251   : > { %1707 = vmatprep.subr.bf16.mxu1 %v4235_v37 }
 0x253   : > { %1655 = vmatpush1.bf16.msra.mxu0 %v4232_v15  ;;  %v1751_v15 = vpack.c.bf16 %v5932_v28, %v5930_v27  ;;  %v6032_v27 = vshrl.u32 %v1178_v3, 7 }
 0x254   : > { %1656 = vmatprep.subr.bf16.mxu0 %v4225_v18  ;;  %1708 = vmatpush1.bf16.msra.mxu1 %v4234_v38  ;;  %v6038_v18 = vld [vmem:[%s5876_s27] sm:$0xff] }
 0x255   : > { %1709 = vmatprep.subr.bf16.mxu1 %v4227_v39  ;;  %v1184_v17 = vsub.s32 1, %v6032_v27  ;;  %v1188_v20 = vsub.s32 2, %v6032_v27  ;;  %v1192_v25 = vsub.s32 3, %v6032_v27 }
 0x257   : > { %1657 = vmatpush1.bf16.msra.mxu0 %v4224_v23  ;;  %v6046_v22 = vrot.slane %v6038_v18, %v1184_v17  ;;  %v1193_v35 = vrot.slane %v6038_v18, %v1192_v25 }
 0x258   : > { %1658 = vmatprep.subr.bf16.mxu0 %v4217_v24  ;;  %1710 = vmatpush1.bf16.msra.mxu1 %v4226_v42  ;;  %v1189_v24 = vrot.slane %v6038_v18, %v1188_v20 }
 0x259   : > { %1711 = vmatprep.subr.bf16.mxu1 %v4219_v43 }
 0x25b   : > { %1659 = vmatpush1.bf16.msra.mxu0 %v4216_v32 }
 0x25c   : > { %1712 = vmatpush1.bf16.msra.mxu1 %v4218_v44  ;;  %1966 = vmatprep.subr.bf16.mxu0 %v4859_v49 }
 0x25d   : > { %2019 = vmatprep.subr.bf16.mxu1 %v4856_v45 }
 0x25e   : > { %1677 = vmatmul.mubr.bf16.vlgmr.msra.gmra.mxu0 %v5934_v33 }
 0x25f   : > { %1686 = vmatprep.mubr.bf16.mxu0 %v5400_v29  ;;  %1730 = vmatmul.mubr.bf16.vlgmr.msra.gmra.mxu1 %v5934_v33  ;;  %v4868_v33 = vld [vmem:[%s5878_s24 + $0xac] ss:$16 sps:$4 sm:$0xff]  }
 0x260   : > { %1739 = vmatprep.mubr.bf16.mxu1 %v5400_v29  ;;  %2020 = vmatpush1.bf16.msra.mxu1 %v4854_v46 }
 0x261   : > { %2021 = vmatprep.subr.bf16.mxu1 %v4862_v47  ;;  %1967 = vmatpush1.bf16.msra.mxu0 %v4857_v50 }
 0x264   : > { %2022 = vmatpush1.bf16.msra.mxu1 %v4860_v48 }
 0x265   : > { %2023 = vmatprep.subr.bf16.mxu1 %v4868_v33 }
 0x266   : > { %1687 = vmatmul.mubr.bf16.gmra.mxu0 %v5948_v52 }
 0x267   : > { %1998 = vmatprep.mubr.bf16.mxu0 %v5400_v29  ;;  %1740 = vmatmul.mubr.bf16.gmra.mxu1 %v5948_v52  ;;  %v4865_v52 = vld [vmem:[%s5878_s24 + $0xc4] ss:$16 sps:$4 sm:$0xff]  }
 0x268   : > { %2051 = vmatprep.mubr.bf16.mxu1 %v5400_v29  ;;  %2024 = vmatpush1.bf16.msra.mxu1 %v4866_v51 }
 0x269   : > { %1968 = vmatprep.subr.bf16.mxu0 %v4865_v52  ;;  %2025 = vmatprep.subr.bf16.mxu1 %v4874_v53 }
 0x26a   : > { %1969 = vmatpush1.bf16.msra.mxu0 %v4863_v54  ;;  %v1196_v54 = vsub.s32 4, %v6032_v27 }
 0x26b   : > { %1970 = vmatprep.subr.bf16.mxu0 %v4871_v56  ;;  %v1200_v56 = vsub.s32 5, %v6032_v27 }
 0x26c   : > { %2026 = vmatpush1.bf16.msra.mxu1 %v4872_v55 }
 0x26d   : > { %2027 = vmatprep.subr.bf16.mxu1 %v4880_v57 }
 0x26e   : > { %1971 = vmatpush1.bf16.msra.mxu0 %v4869_v58  ;;  %v1197_v58 = vrot.slane %v6038_v18, %v1196_v54 }
 0x26f   : > { %1972 = vmatprep.subr.bf16.mxu0 %v4877_v59 }
 0x270   : > { %2028 = vmatpush1.bf16.msra.mxu1 %v4878_v60  ;;  %v1201_v60 = vrot.slane %v6038_v18, %v1200_v56 }
 0x271   : > { %2029 = vmatprep.subr.bf16.mxu1 %v4886_v62 }
 0x272   : > { %1973 = vmatpush1.bf16.msra.mxu0 %v4875_v61  ;;  %v1180_v61 = vsub.s32 0, %v6032_v27 }
 0x273   : > { %1974 = vmatprep.subr.bf16.mxu0 %v4883_v63 }
 0x274   : > { %2030 = vmatpush1.bf16.msra.mxu1 %v4884_v0 }
 0x275   : > { %2031 = vmatprep.subr.bf16.mxu1 %v4892_v5 }
 0x276   : > { %1975 = vmatpush1.bf16.msra.mxu0 %v4881_v1 }
 0x277   : > { %1976 = vmatprep.subr.bf16.mxu0 %v4889_v2  ;;  %v1204_v2 = vsub.s32 6, %v6032_v27 }
 0x278   : > { %2032 = vmatpush1.bf16.msra.mxu1 %v4890_v6 }
 0x279   : > { %2033 = vmatprep.subr.bf16.mxu1 %v4898_v7 }
 0x27a   : > { %1977 = vmatpush1.bf16.msra.mxu0 %v4887_v8  ;;  %v1181_v8 = vrot.slane %v6038_v18, %v1180_v61 }
 0x27b   : > { %1978 = vmatprep.subr.bf16.mxu0 %v4895_v9 }
 0x27c   : > { %2034 = vmatpush1.bf16.msra.mxu1 %v4896_v10 }
 0x27d   : > { %4505 = vmatprep.subr.bf16.mxu1 %v5401_v16 }
 0x27e   : > { %1979 = vmatpush1.bf16.msra.mxu0 %v4893_v11 }
 0x27f   : > { %2052 = vmatmul.mubr.bf16.vlgmr.msra.gmra.mxu1 %v1750_v13  ;;  %1980 = vmatprep.subr.bf16.mxu0 %v4901_v12 }
 0x280   : > { %2061 = vmatprep.mubr.bf16.mxu1 %v5400_v29 }
 0x282   : > { %1981 = vmatpush1.bf16.msra.mxu0 %v4899_v14  ;;  %v1208_v14 = vsub.s32 7, %v6032_v27 }
 0x283   : > { %4529 = vmatprep.subr.bf16.mxu0 %v5401_v16 }
 0x285   : > { %1999 = vmatmul.mubr.bf16.vlgmr.msra.gmra.mxu0 %v1750_v13  ;;  %v1205_v13 = vrot.slane %v6038_v18, %v1204_v2 }
 0x286   : > { %2008 = vmatprep.mubr.bf16.mxu0 %v5400_v29 }
 0x287   : > { %2062 = vmatmul.mubr.bf16.gmra.mxu1 %v1751_v15 }
 0x288   : > { %4507 = vmatprep.mubr.msk.bf16.mxu1 %vm5402_vm0, %v5401_v16 }
 0x28d   : > { %2009 = vmatmul.mubr.bf16.gmra.mxu0 %v1751_v15 }
 0x28e   : > { %4531 = vmatprep.mubr.msk.bf16.mxu0 %vm5402_vm0, %v5401_v16 }
 0x2fe   : > { %v6030_v4 = vpop.f32.mrf.mxu0  ;;  %v1625_v31 = vpop.f32.mrf.mxu1 }
 0x2ff   : > { %v6057_v34 = vadd.f32 %v1625_v31, %v1189_v24  ;;  %v1573_v3 = vadd.f32 %v6030_v4, %v1181_v8 }
 0x300   : > { %v6034_v28 = vpop.f32.mrf.mxu0  ;;  %v1627_v37 = vpop.f32.mrf.mxu1 }
 0x301   : > { %v6067_v40 = vadd.f32 %v1627_v37, %v1193_v35 }
 0x302   : > { %v1576_v29 = vpop.f32.mrf.mxu0  ;;  %v1629_v39 = vpop.f32.mrf.mxu1 }
 0x303   : > { %v6069_v41 = vadd.f32 %v1629_v39, %v1189_v24  ;;  %v1577_v11 = vadd.f32 %v1576_v29, %v1181_v8 }
 0x304   : > { %v1578_v19 = vpop.f32.mrf.mxu0  ;;  %v1631_v42 = vpop.f32.mrf.mxu1 }
 0x305   : > { %v6073_v44 = vadd.f32 %v1631_v42, %v1193_v35  ;;  %v2137_v37 = vpack.c.bf16 %v1577_v11, %v1573_v3 }
 0x306   : > { %v6041_v21 = vpop.f32.mrf.mxu0  ;;  %v1635_v45 = vpop.f32.mrf.mxu1 }
 0x307   : > { %v6077_v48 = vadd.f32 %v1635_v45, %v1189_v24  ;;  %v1209_v45 = vrot.slane %v6038_v18, %v1208_v14 }
 0x308   : > { %v1584_v23 = vpop.f32.mrf.mxu0  ;;  %v1637_v47 = vpop.f32.mrf.mxu1 }
 0x309   : > { %v6053_v26 = vadd.f32 %v1584_v23, %v6046_v22  ;;  %v6079_v33 = vadd.f32 %v1637_v47, %v1193_v35  ;;  %v1579_v23 = vadd.f32 %v1578_v19, %v6046_v22 }
 0x30a   : > { %v6055_v30 = vpop.f32.mrf.mxu0  ;;  %v1639_v49 = vpop.f32.mrf.mxu1 }
 0x30b   : > { %v6081_v50 = vadd.f32 %v1639_v49, %v1189_v24 }
 0x30c   : > { %v1588_v32 = vpop.f32.mrf.mxu0  ;;  %v1641_v51 = vpop.f32.mrf.mxu1 }
 0x30d   : > { %v6063_v36 = vadd.f32 %v1588_v32, %v6046_v22  ;;  %v2809_v52 = vpack.c.bf16 %v6081_v50, %v6077_v48  ;;  %v6085_v53 = vadd.f32 %v1641_v51, %v1193_v35  ;;  %v1575_v35 = vadd.f32 %v6034_v28, %v6046_v22 }
 0x30e   : > { %v1583_v51 = vadd.f32 %v6041_v21, %v1181_v8  ;;  %v1587_v22 = vadd.f32 %v6055_v30, %v1181_v8 }
 0x30f   : > { %v2383_v38 = vpack.c.bf16 %v6063_v36, %v6053_v26  ;;  %v2382_v19 = vpack.c.bf16 %v1579_v23, %v1575_v35 }
 0x31e   : > { %v1678_v57 = vpop.f32.mrf.mxu0 }
 0x31f   : > { %v1679_v63 = vadd.f32 %v1678_v57, %v1197_v58  ;;  %v1731_v29 = vpop.f32.mrf.mxu1 }
 0x320   : > { %v1680_v59 = vpop.f32.mrf.mxu0  ;;  %v6108_v42 = vadd.f32 %v1731_v29, %v1205_v13 }
 0x321   : > { %v1681_v5 = vadd.f32 %v1680_v59, %v1201_v60  ;;  %v1733_v4 = vpop.f32.mrf.mxu1 }
 0x322   : > { %v1682_v62 = vpop.f32.mrf.mxu0  ;;  %v6119_v18 = vadd.f32 %v1733_v4, %v1209_v45 }
 0x323   : > { %v1683_v0 = vadd.f32 %v1682_v62, %v1197_v58  ;;  %v1735_v28 = vpop.f32.mrf.mxu1 }
 0x324   : > { %v1684_v1 = vpop.f32.mrf.mxu0  ;;  %v6121_v56 = vadd.f32 %v1735_v28, %v1205_v13 }
 0x325   : > { %v2139_v6 = vpack.c.bf16 %v1683_v0, %v1679_v63  ;;  %v1685_v7 = vadd.f32 %v1684_v1, %v1201_v60  ;;  %v1737_v57 = vpop.f32.mrf.mxu1 }
 0x326   : > { %v1688_v9 = vpop.f32.mrf.mxu0  ;;  %v2810_v21 = vpack.c.bf16 %v6121_v56, %v6108_v42 }
 0x327   : > { %v2384_v10 = vpack.c.bf16 %v1685_v7, %v1681_v5  ;;  %4506 = vmatpush3.bf16.xpose.msra.mxu1 %v2139_v6  ;;  %v1689_v31 = vadd.f32 %v1688_v9, %v1197_v58  ;;  %v1741_v59 = vpop.f32.mrf.mxu1  ;;  %v1784_v9 = vld [vmem:[%s5850_s0] sm:$0xf]  ;;  %s6647_s0 = scalar_lea.vmem %s6549_s10, %s5840_s5  ;;  %s5403_s5 = smov [#allocation16]  }
 0x328   : > { %v1690_v12 = vpop.f32.mrf.mxu0  ;;  %4511 = vmatprep.subr.bf16.mxu1 %v5401_v16  ;;  %v6132_v63 = vadd.f32 %v1741_v59, %v1205_v13  ;;  %v1801_v11 = vrot.slane %v1784_v9, %v1192_v25  ;;  %v1793_v25 = vrot.slane %v1784_v9, %v1184_v17 }
 0x329   : > { %v6101_v15 = vadd.f32 %v1690_v12, %v1201_v60  ;;  %4530 = vmatpush3.bf16.xpose.msra.mxu0 %v2384_v10  ;;  %v1743_v62 = vpop.f32.mrf.mxu1  ;;  %v1797_v10 = vrot.slane %v1784_v9, %v1188_v20 }
 0x32a   : > { %v1692_v24 = vpop.f32.mrf.mxu0  ;;  %4541 = vmatprep.subr.bf16.mxu0 %v5401_v16  ;;  %v6136_v1 = vadd.f32 %v1743_v62, %v1209_v45 }
 0x32b   : > { %v1693_v32 = vadd.f32 %v1692_v24, %v1197_v58  ;;  %v6128_v58 = vadd.f32 %v1737_v57, %v1209_v45  ;;  %v1745_v0 = vpop.f32.mrf.mxu1 }
 0x32c   : > { %v1694_v39 = vpop.f32.mrf.mxu0  ;;  %v6138_v2 = vadd.f32 %v1745_v0, %v1205_v13 }
 0x32d   : > { %v2140_v47 = vpack.c.bf16 %v1693_v32, %v1689_v31  ;;  %v6111_v49 = vadd.f32 %v1694_v39, %v1201_v60  ;;  %v2138_v60 = vpack.c.bf16 %v1587_v22, %v1583_v51  ;;  %v1747_v5 = vpop.f32.mrf.mxu1  ;;  %v1789_v31 = vrot.slane %v1784_v9, %v1180_v61 }
 0x32e   : > { %4508 = vmatmul.mubr.bf16.vlgmr.msra.gmra.mxu1 %v2137_v37  ;;  %v2811_v6 = vpack.c.bf16 %v6138_v2, %v6132_v63  ;;  %v6142_v7 = vadd.f32 %v1747_v5, %v1209_v45  ;;  %v4910_v63 = vld [vmem:[%s5880_s8 + $0x78] sm:$0xff]  }
 0x32f   : > { %v2385_v54 = vpack.c.bf16 %v6111_v49, %v6101_v15  ;;  %4512 = vmatpush3.bf16.xpose.msra.mxu1 %v2140_v47  ;;  %4513 = vmatprep.mubr.msk.bf16.mxu1 %vm5402_vm0, %v5401_v16 }
 0x330   : > { %4532 = vmatmul.mubr.bf16.vlgmr.msra.gmra.mxu0 %v2382_v19  ;;  %4517 = vmatprep.subr.bf16.mxu1 %v5401_v16 }
 0x331   : > { %4543 = vmatprep.mubr.msk.bf16.mxu0 %vm5402_vm0, %v5401_v16 }
 0x336   : > { %4514 = vmatmul.mubr.bf16.vlgmr.msra.gmra.mxu1 %v2138_v60 }
 0x337   : > { %4519 = vmatprep.mubr.msk.bf16.mxu1 %vm5402_vm0, %v5401_v16 }
 0x33f   : > { %v2053_v12 = vpop.f32.mrf.mxu1 }
 0x340   : > { %v6151_v14 = vadd.f32 %v2053_v12, %v1797_v10 }
 0x341   : > { %v2055_v13 = vpop.f32.mrf.mxu1 }
 0x342   : > { %v6153_v3 = vadd.f32 %v2055_v13, %v1801_v11 }
 0x343   : > { %v2057_v23 = vpop.f32.mrf.mxu1 }
 0x344   : > { %v6155_v24 = vadd.f32 %v2057_v23, %v1797_v10 }
 0x345   : > { %v2059_v32 = vpop.f32.mrf.mxu1  ;;  %v2000_v29 = vpop.f32.mrf.mxu0 }
 0x346   : > { %v6161_v35 = vadd.f32 %v2059_v32, %v1801_v11  ;;  %v2001_v4 = vadd.f32 %v2000_v29, %v1789_v31 }
 0x347   : > { %v2063_v37 = vpop.f32.mrf.mxu1  ;;  %v2002_v39 = vpop.f32.mrf.mxu0 }
 0x348   : > { %v6167_v47 = vadd.f32 %v2063_v37, %v1797_v10  ;;  %v2003_v28 = vadd.f32 %v2002_v39, %v1793_v25 }
 0x349   : > { %v2065_v19 = vpop.f32.mrf.mxu1  ;;  %v2004_v61 = vpop.f32.mrf.mxu0 }
 0x34a   : > { %v6169_v51 = vadd.f32 %v2065_v19, %v1801_v11  ;;  %v2005_v22 = vadd.f32 %v2004_v61, %v1789_v31 }
 0x34b   : > { %v2067_v57 = vpop.f32.mrf.mxu1  ;;  %v2006_v59 = vpop.f32.mrf.mxu0 }
 0x34c   : > { %v6171_v60 = vadd.f32 %v2067_v57, %v1797_v10  ;;  %v2141_v27 = vpack.c.bf16 %v2005_v22, %v2001_v4  ;;  %v2007_v17 = vadd.f32 %v2006_v59, %v1793_v25 }
 0x34d   : > { %v2069_v62 = vpop.f32.mrf.mxu1  ;;  %v2010_v0 = vpop.f32.mrf.mxu0 }
 0x34e   : > { %v2813_v5 = vpack.c.bf16 %v6171_v60, %v6167_v47  ;;  %v6175_v9 = vadd.f32 %v2069_v62, %v1801_v11  ;;  %v2386_v12 = vpack.c.bf16 %v2007_v17, %v2003_v28  ;;  %v6177_v13 = vadd.f32 %v2010_v0, %v1789_v31  ;;  %4518 = vmatpush3.bf16.msra.mxu1 %v2141_v27  ;;  %v6195_v28 = vld [vmem:[%s6638_s15] ss:$0 sm:$0xff] }
 0x34f   : > { %v2012_v23 = vpop.f32.mrf.mxu0  ;;  %4523 = vmatprep.subr.bf16.mxu1 %v5401_v16 }
 0x350   : > { %v6182_v10 = vadd.f32 %v2012_v23, %v1793_v25  ;;  %4542 = vmatpush3.bf16.msra.mxu0 %v2386_v12 }
 0x351   : > { %v2014_v29 = vpop.f32.mrf.mxu0  ;;  %4553 = vmatprep.subr.bf16.mxu0 %v4910_v63 }
 0x352   : > { %v6184_v37 = vadd.f32 %v2014_v29, %v1789_v31 }
 0x353   : > { %v2016_v39 = vpop.f32.mrf.mxu0 }
 0x354   : > { %v2142_v11 = vpack.c.bf16 %v6184_v37, %v6177_v13  ;;  %v6188_v4 = vadd.f32 %v2016_v39, %v1793_v25 }
 0x356   : > { %v2387_v19 = vpack.c.bf16 %v6188_v4, %v6182_v10 }
 0x3ee   : > { %v2177_v61 = vpop.f32.mrf.mxu1 }
 0x3ef   : > { %v2225_v22 = vmul.f32 0.35355338, %v2177_v61  ;;  %v6207_v61 = vld [vmem:[%s6638_s15 + $0x1] ss:$0 sm:$0xff] }
 0x3f0   : > { %v4509_v57 = vpop.f32.mrf.mxu1  ;;  %v6197_v59 = vpop.f32.mrf.mxu0 }
 0x3f1   : > { %v2241_v31 = vsub.f32 %v2225_v22, %v6195_v28 }
 0x3f2   : > { %v2180_v27 = vpop.f32.mrf.mxu1  ;;  %v4533_v17 = vpop.f32.mrf.mxu0 }
 0x3f3   : > { %v2226_v25 = vmul.f32 0.35355338, %v2180_v27  ;;  %v2246_v62 = vsel %vm2245_vm1, %v2241_v31, -inf }
 0x3f4   : > { %v6201_v0 = vpop.f32.mrf.mxu0  ;;  %2247 = vmax.xlane.f32.xlu0 %v2246_v62  ;;  %v4510_v12 = vpop.f32.mrf.mxu1 }
 0x3f5   : > { %v2242_v23 = vsub.f32 %v2226_v25, %v6195_v28 }
 0x3f6   : > { %v2218_v29 = vpop.f32.mrf.mxu1  ;;  %v4534_v39 = vpop.f32.mrf.mxu0 }
 0x3f7   : > { %v2227_v57 = vmul.f32 0.35355338, %v2218_v29  ;;  %v2249_v22 = vsel %vm2245_vm1, %v2242_v23, -inf }
 0x3f8   : > { %2250 = vmax.xlane.f32.xlu0 %v2249_v22  ;;  %v4515_v27 = vpop.f32.mrf.mxu1 }
 0x3f9   : > { %v2243_v17 = vsub.f32 %v2227_v57, %v6207_v61 }
 0x3fa   : > { %v2221_v32 = vpop.f32.mrf.mxu1 }
 0x3fb   : > { %v2228_v45 = vmul.f32 0.35355338, %v2221_v32  ;;  %v2252_v62 = vsel %vm2245_vm1, %v2243_v17, -inf }
 0x3fc   : > { %2253 = vmax.xlane.f32.xlu1 %v2252_v62  ;;  %v4516_v25 = vpop.f32.mrf.mxu1 }
 0x3fd   : > { %v2244_v12 = vsub.f32 %v2228_v45, %v6207_v61 }
 0x3ff   : > { %v2255_v39 = vsel %vm2245_vm1, %v2244_v12, -inf }
 0x400   : > { %2256 = vmax.xlane.f32.xlu1 %v2255_v39 }
 0x47d   : > { %v2248_v55 = vpop.xlane.xlu0 %2247 }
 0x47e   : > { %v2258_v8 = vsub.f32 %v2241_v31, %v2248_v55 }
 0x480   : > { %v2262_v29 = vmul.f32 1.442695, %v2258_v8 }
 0x481   : > { %v2251_v46 = vpop.xlane.xlu0 %2250 }
 0x482   : > { %4950 = vpow2.f32 %v2262_v29  ;;  %v2259_v22 = vsub.f32 %v2242_v23, %v2251_v46 }
 0x484   : > { %v2264_v27 = vmul.f32 1.442695, %v2259_v22 }
 0x485   : > { %v2254_v30 = vpop.xlane.xlu1 %2253 }
 0x486   : > { %4952 = vpow2.f32 %v2264_v27  ;;  %v2260_v57 = vsub.f32 %v2243_v17, %v2254_v30 }
 0x488   : > { %v2266_v32 = vmul.f32 1.442695, %v2260_v57 }
 0x489   : > { %v2257_v20 = vpop.xlane.xlu1 %2256 }
 0x48a   : > { %4954 = vpow2.f32 %v2266_v32  ;;  %v2261_v62 = vsub.f32 %v2244_v12, %v2257_v20 }
 0x48c   : > { %v2268_v25 = vmul.f32 1.442695, %v2261_v62 }
 0x48e   : > { %4956 = vpow2.f32 %v2268_v25 }
 0x48f   : > { %v4951_v45 = vpop.eup %4950 }
 0x490   : > { %v2270_v43 = vsel %vm2245_vm1, %v4951_v45, 0.0 }
 0x491   : > { %2271 = vadd.xlane.f32.xlu0 %v2270_v43 }
 0x493   : > { %v4953_v39 = vpop.eup %4952 }
 0x494   : > { %v2273_v55 = vsel %vm2245_vm1, %v4953_v39, 0.0 }
 0x495   : > { %2274 = vadd.xlane.f32.xlu1 %v2273_v55 }
 0x497   : > { %v4955_v8 = vpop.eup %4954 }
 0x498   : > { %v2276_v46 = vsel %vm2245_vm1, %v4955_v8, 0.0 }
 0x499   : > { %2277 = vadd.xlane.f32.xlu0 %v2276_v46 }
 0x49b   : > { %v4957_v31 = vpop.eup %4956 }
 0x49c   : > { %v2279_v30 = vsel %vm2245_vm1, %v4957_v31, 0.0 }
 0x49d   : > { %2280 = vadd.xlane.f32.xlu1 %v2279_v30 }
 0x51a   : > { %v2272_v23 = vpop.xlane.xlu0 %2271 }
 0x51b   : > { %4958 = vrcp.f32 %v2272_v23 }
 0x51e   : > { %v2275_v20 = vpop.xlane.xlu1 %2274 }
 0x51f   : > { %4960 = vrcp.f32 %v2275_v20 }
 0x522   : > { %v2278_v17 = vpop.xlane.xlu0 %2277 }
 0x523   : > { %4962 = vrcp.f32 %v2278_v17 }
 0x526   : > { %v2281_v12 = vpop.xlane.xlu1 %2280 }
 0x527   : > { %4964 = vrcp.f32 %v2281_v12 }
 0x528   : > { %v4959_v43 = vpop.eup %4958 }
 0x529   : > { %v2286_v22 = vmul.f32 %v4959_v43, %v4951_v45 }
 0x52c   : > { %v4961_v29 = vpop.eup %4960 }
 0x52d   : > { %v2287_v27 = vmul.f32 %v4961_v29, %v4953_v39 }
 0x52f   : > { %v2290_v57 = vpack.c.bf16 %v2287_v27, %v2286_v22 }
 0x530   : > { %v4963_v32 = vpop.eup %4962 }
 0x531   : > { %4520 = vmatmul.mubr.msk.bf16.vlgmr.msra.gmra.mxu1 %vm2245_vm1, %v2290_v57  ;;  %v2288_v25 = vmul.f32 %v4963_v32, %v4955_v8  ;;  %v2470_v32 = vmul.f32 0.35355338, %v6197_v59  ;;  %v4902_v59 = vld [vmem:[%s5880_s8 + $0x38] sm:$0xff]  }
 0x532   : > { %4524 = vmatpush3.bf16.msra.mxu1 %v2142_v11  ;;  %4525 = vmatprep.mubr.msk.bf16.mxu1 %vm5402_vm0, %v5401_v16 }
 0x533   : > { %4535 = vmatprep.subr.bf16.mxu1 %v5401_v16 }
 0x534   : > { %v4965_v62 = vpop.eup %4964 }
 0x535   : > { %v2289_v55 = vmul.f32 %v4965_v62, %v4957_v31 }
 0x537   : > { %v2291_v46 = vpack.c.bf16 %v2289_v55, %v2288_v25  ;;  %v2471_v25 = vmul.f32 0.35355338, %v6201_v0 }
 0x539   : > { %4526 = vmatmul.mubr.msk.bf16.vlgmr.msra.gmra.mxu1 %vm2245_vm1, %v2291_v46  ;;  %v2474_v46 = vsub.f32 %v2470_v32, %v6195_v28  ;;  %v4904_v32 = vld [vmem:[%s5880_s8 + $0x28] sm:$0xff]  }
 0x53a   : > { %4536 = vmatpush3.bf16.xpose.msra.mxu1 %v2385_v54  ;;  %4537 = vmatprep.mubr.msk.bf16.mxu1 %vm5402_vm0, %v5401_v16 }
 0x53b   : > { %4547 = vmatprep.subr.bf16.mxu1 %v5401_v16 }
 0x541   : > { %4538 = vmatmul.mubr.bf16.vlgmr.msra.gmra.mxu1 %v2383_v38 }
 0x542   : > { %4548 = vmatpush3.bf16.msra.mxu1 %v2387_v19  ;;  %4549 = vmatprep.mubr.msk.bf16.mxu1 %vm5402_vm0, %v5401_v16 }
 0x543   : > { %4573 = vmatprep.subr.bf16.mxu1 %v4902_v59 }
 0x5f1   : > { %v6240_v13 = vpop.f32.mrf.mxu1 }
 0x5f3   : > { %v4521_v15 = vpop.f32.mrf.mxu1 }
 0x5f5   : > { %v6242_v49 = vpop.f32.mrf.mxu1 }
 0x5f6   : > { %v2380_v54 = vpack.c.bf16 %v6242_v49, %v6240_v13  ;;  %v4908_v13 = vld [vmem:[%s5880_s8 + $0x8] sm:$0xff]   ;;  %v4909_v49 = vld [vmem:[%s5880_s8] sm:$0xff]  }
 0x5f7   : > { %v4522_v37 = vpop.f32.mrf.mxu1 }
 0x5f8   : > { %v2478_v37 = vsel %vm2245_vm1, %v2474_v46, -inf }
 0x5f9   : > { %v6246_v11 = vpop.f32.mrf.mxu1 }
 0x5fb   : > { %v4527_v26 = vpop.f32.mrf.mxu1 }
 0x5fd   : > { %v6248_v36 = vpop.f32.mrf.mxu1 }
 0x5fe   : > { %v2381_v38 = vpack.c.bf16 %v6248_v36, %v6246_v11  ;;  %v4913_v11 = vld [vmem:[%s5880_s8 + $0x60] sm:$0xff]   ;;  %v4914_v36 = vld [vmem:[%s5880_s8 + $0x58] sm:$0xff]  }
 0x5ff   : > { %v4528_v10 = vpop.f32.mrf.mxu1 }
 0x600   : > { %v2475_v10 = vsub.f32 %v2471_v25, %v6195_v28 }
 0x601   : > { %v2463_v4 = vpop.f32.mrf.mxu1 }
 0x602   : > { %v2472_v19 = vmul.f32 0.35355338, %v2463_v4  ;;  %v2481_v4 = vsel %vm2245_vm1, %v2475_v10, -inf }
 0x603   : > { %v4539_v45 = vpop.f32.mrf.mxu1 }
 0x604   : > { %v2476_v39 = vsub.f32 %v2472_v19, %v6207_v61 }
 0x605   : > { %v2466_v8 = vpop.f32.mrf.mxu1 }
 0x606   : > { %v2473_v31 = vmul.f32 0.35355338, %v2466_v8  ;;  %v2484_v30 = vsel %vm2245_vm1, %v2476_v39, -inf }
 0x607   : > { %2485 = vmax.xlane.f32.xlu0 %v2484_v30  ;;  %v4540_v23 = vpop.f32.mrf.mxu1 }
 0x608   : > { %v2477_v20 = vsub.f32 %v2473_v31, %v6207_v61 }
 0x60a   : > { %v2487_v17 = vsel %vm2245_vm1, %v2477_v20, -inf }
 0x60b   : > { %2488 = vmax.xlane.f32.xlu1 %v2487_v17 }
 0x690   : > { %v2486_v12 = vpop.xlane.xlu0 %2485 }
 0x691   : > { %v2492_v43 = vsub.f32 %v2476_v39, %v2486_v12 }
 0x693   : > { %v2498_v29 = vmul.f32 1.442695, %v2492_v43 }
 0x694   : > { %v2489_v22 = vpop.xlane.xlu1 %2488 }
 0x695   : > { %4966 = vpow2.f32 %v2498_v29  ;;  %v2493_v27 = vsub.f32 %v2477_v20, %v2489_v22  ;;  %v4903_v22 = vld [vmem:[%s5880_s8 + $0x30] sm:$0xff]  }
 0x697   : > { %v2500_v57 = vmul.f32 1.442695, %v2493_v27 }
 0x699   : > { %4968 = vpow2.f32 %v2500_v57 }
 0x6a2   : > { %v4967_v62 = vpop.eup %4966 }
 0x6a3   : > { %v2508_v55 = vsel %vm2245_vm1, %v4967_v62, 0.0 }
 0x6a4   : > { %2509 = vadd.xlane.f32.xlu0 %v2508_v55  ;;  %v4905_v55 = vld [vmem:[%s5880_s8 + $0x20] sm:$0xff]  }
 0x6a6   : > { %v4969_v15 = vpop.eup %4968 }
 0x6a7   : > { %v2511_v26 = vsel %vm2245_vm1, %v4969_v15, 0.0 }
 0x6a8   : > { %2479 = vmax.xlane.f32.xlu0 %v2478_v37  ;;  %2512 = vadd.xlane.f32.xlu1 %v2511_v26  ;;  %v4916_v37 = vld [vmem:[%s5880_s8 + $0x48] sm:$0xff]  }
 0x6ac   : > { %2482 = vmax.xlane.f32.xlu1 %v2481_v4 }
 0x72d   : > { %v2510_v0 = vpop.xlane.xlu0 %2509 }
 0x72e   : > { %4970 = vrcp.f32 %v2510_v0 }
 0x731   : > { %v2480_v19 = vpop.xlane.xlu0 %2479  ;;  %v2513_v45 = vpop.xlane.xlu1 %2512 }
 0x732   : > { %v2490_v39 = vsub.f32 %v2474_v46, %v2480_v19  ;;  %4972 = vrcp.f32 %v2513_v45  ;;  %v4906_v46 = vld [vmem:[%s5880_s8 + $0x18] sm:$0xff]  }
 0x734   : > { %v2494_v8 = vmul.f32 1.442695, %v2490_v39  ;;  %v4917_v39 = vld [vmem:[%s5880_s8 + $0x40] sm:$0xff]  }
 0x735   : > { %v2483_v31 = vpop.xlane.xlu1 %2482 }
 0x736   : > { %4974 = vpow2.f32 %v2494_v8  ;;  %v2491_v30 = vsub.f32 %v2475_v10, %v2483_v31 }
 0x738   : > { %v2496_v23 = vmul.f32 1.442695, %v2491_v30 }
 0x73a   : > { %4976 = vpow2.f32 %v2496_v23 }
 0x73b   : > { %v4971_v20 = vpop.eup %4970 }
 0x73c   : > { %v2520_v12 = vmul.f32 %v4971_v20, %v4967_v62 }
 0x73f   : > { %v4973_v17 = vpop.eup %4972 }
 0x740   : > { %v2521_v43 = vmul.f32 %v4973_v17, %v4969_v15  ;;  %v4907_v15 = vld [vmem:[%s5880_s8 + $0x10] sm:$0xff]  }
 0x742   : > { %v2523_v29 = vpack.c.bf16 %v2521_v43, %v2520_v12 }
 0x743   : > { %v4975_v27 = vpop.eup %4974 }
 0x744   : > { %4550 = vmatmul.mubr.msk.bf16.vlgmr.msra.gmra.mxu1 %vm2245_vm1, %v2523_v29  ;;  %v2502_v57 = vsel %vm2245_vm1, %v4975_v27, 0.0 }
 0x745   : > { %4574 = vmatpush3.bf16.msra.mxu1 %v4902_v59  ;;  %2503 = vadd.xlane.f32.xlu0 %v2502_v57 }
 0x746   : > { %4589 = vmatprep.mubr.bf16.mxu1 %v2380_v54  ;;  %4575 = vmatprep.subr.bf16.mxu1 %v4903_v22  ;;  %v4912_v54 = vld [vmem:[%s5880_s8 + $0x68] sm:$0xff]  }
 0x747   : > { %v4977_v62 = vpop.eup %4976 }
 0x748   : > { %v2505_v25 = vsel %vm2245_vm1, %v4977_v62, 0.0 }
 0x749   : > { %4576 = vmatpush3.bf16.msra.mxu1 %v4903_v22  ;;  %2506 = vadd.xlane.f32.xlu1 %v2505_v25 }
 0x74a   : > { %4577 = vmatprep.subr.bf16.mxu1 %v4904_v32 }
 0x74d   : > { %4578 = vmatpush3.bf16.msra.mxu1 %v4904_v32 }
 0x74e   : > { %4579 = vmatprep.subr.bf16.mxu1 %v4905_v55 }
 0x751   : > { %4580 = vmatpush3.bf16.msra.mxu1 %v4905_v55 }
 0x752   : > { %4581 = vmatprep.subr.bf16.mxu1 %v4906_v46 }
 0x755   : > { %4582 = vmatpush3.bf16.msra.mxu1 %v4906_v46 }
 0x756   : > { %4583 = vmatprep.subr.bf16.mxu1 %v4907_v15 }
 0x759   : > { %4584 = vmatpush3.bf16.msra.mxu1 %v4907_v15  ;;  %v6639_v15 = vpack.c.bf16 %v6069_v41, %v6057_v34 }
 0x75a   : > { %4585 = vmatprep.subr.bf16.mxu1 %v4908_v13 }
 0x75d   : > { %4586 = vmatpush3.bf16.msra.mxu1 %v4908_v13  ;;  %v6640_v13 = vpack.c.bf16 %v6155_v24, %v6151_v14 }
 0x75e   : > { %4587 = vmatprep.subr.bf16.mxu1 %v4909_v49 }
 0x761   : > { %4588 = vmatpush3.bf16.msra.mxu1 %v4909_v49 }
 0x762   : > { %4599 = vmatprep.subr.bf16.mxu1 %v5401_v16 }
 0x764   : > { %4590 = vmatmul.mubr.bf16.vlgmr.msra.gmra.mxu1 %v2381_v38  ;;  %v4915_v38 = vld [vmem:[%s5880_s8 + $0x50] sm:$0xff]  }
 0x765   : > { %4600 = vmatpush3.bf16.xpose.msra.mxu1 %v2811_v6  ;;  %4601 = vmatprep.mubr.msk.bf16.mxu1 %vm5402_vm0, %v5401_v16 }
 0x766   : > { %4611 = vmatprep.subr.bf16.mxu1 %v5401_v16 }
 0x76c   : > { %4602 = vmatmul.mubr.bf16.vlgmr.msra.gmra.mxu1 %v2809_v52 }
 0x76d   : > { %4612 = vmatpush3.bf16.msra.mxu1 %v2813_v5  ;;  %4613 = vmatprep.mubr.msk.bf16.mxu1 %vm5402_vm0, %v5401_v16  ;;  %v4911_v5 = vld [vmem:[%s5880_s8 + $0x70] sm:$0xff]  }
 0x76e   : > { %4637 = vmatprep.subr.bf16.mxu1 %v5401_v16 }
 0x7ce   : > { %v2504_v2 = vpop.xlane.xlu0 %2503 }
 0x7cf   : > { %4978 = vrcp.f32 %v2504_v2 }
 0x7d2   : > { %v2507_v6 = vpop.xlane.xlu1 %2506 }
 0x7d3   : > { %4980 = vrcp.f32 %v2507_v6 }
 0x7dc   : > { %v4979_v48 = vpop.eup %4978 }
 0x7dd   : > { %v2518_v52 = vmul.f32 %v4979_v48, %v4975_v27 }
 0x7e0   : > { %v4981_v50 = vpop.eup %4980 }
 0x7e1   : > { %v2519_v47 = vmul.f32 %v4981_v50, %v4977_v62 }
 0x7e3   : > { %v2522_v60 = vpack.c.bf16 %v2519_v47, %v2518_v52 }
 0x7e5   : > { %4544 = vmatmul.mubr.msk.bf16.vlgmr.msra.gmra.mxu0 %vm2245_vm1, %v2522_v60 }
 0x7e6   : > { %4554 = vmatpush3.bf16.msra.mxu0 %v4910_v63 }
 0x7e7   : > { %4555 = vmatprep.subr.bf16.mxu0 %v4911_v5 }
 0x7ea   : > { %4556 = vmatpush3.bf16.msra.mxu0 %v4911_v5 }
 0x7eb   : > { %4557 = vmatprep.subr.bf16.mxu0 %v4912_v54 }
 0x7ee   : > { %4558 = vmatpush3.bf16.msra.mxu0 %v4912_v54 }
 0x7ef   : > { %4559 = vmatprep.subr.bf16.mxu0 %v4913_v11 }
 0x7f2   : > { %4560 = vmatpush3.bf16.msra.mxu0 %v4913_v11 }
 0x7f3   : > { %4561 = vmatprep.subr.bf16.mxu0 %v4914_v36 }
 0x7f6   : > { %4562 = vmatpush3.bf16.msra.mxu0 %v4914_v36  ;;  %v6641_v36 = vpack.c.bf16 %v6128_v58, %v6119_v18  ;;  %v6643_v18 = vpack.c.bf16 %v6142_v7, %v6136_v1  ;;  %v6644_v1 = vpack.c.bf16 %v6085_v53, %v6079_v33  ;;  %v6645_v7 = vpack.c.bf16 %v6161_v35, %v6153_v3 }
 0x7f7   : > { %4563 = vmatprep.subr.bf16.mxu0 %v4915_v38 }
 0x7fa   : > { %4564 = vmatpush3.bf16.msra.mxu0 %v4915_v38 }
 0x7fb   : > { %4565 = vmatprep.subr.bf16.mxu0 %v4916_v37 }
 0x7fe   : > { %4566 = vmatpush3.bf16.msra.mxu0 %v4916_v37 }
 0x7ff   : > { %4567 = vmatprep.subr.bf16.mxu0 %v4917_v39 }
 0x802   : > { %4568 = vmatpush3.bf16.msra.mxu0 %v4917_v39 }
 0x803   : > { %4593 = vmatprep.subr.bf16.mxu0 %v5401_v16 }
 0x804   : > { %v2605_v26 = vpop.f32.mrf.mxu1 }
 0x806   : > { %v4551_v10 = vpop.f32.mrf.mxu1 }
 0x808   : > { %v2608_v4 = vpop.f32.mrf.mxu1 }
 0x809   : > { %v2613_v59 = vpack.c.bf16 %v2608_v4, %v2605_v26  ;;  %v6642_v4 = vpack.c.bf16 %v6073_v44, %v6067_v40 }
 0x80a   : > { %v4552_v0 = vpop.f32.mrf.mxu1 }
 0x824   : > { %v6305_v19 = vpop.f32.mrf.mxu1 }
 0x826   : > { %v6307_v45 = vpop.f32.mrf.mxu1 }
 0x828   : > { %v6310_v8 = vpop.f32.mrf.mxu1 }
 0x82a   : > { %v6312_v31 = vpop.f32.mrf.mxu1 }
 0x82c   : > { %v2889_v30 = vpop.f32.mrf.mxu1 }
 0x82d   : > { %v2898_v23 = vmul.f32 0.35355338, %v2889_v30 }
 0x82e   : > { %v4603_v20 = vpop.f32.mrf.mxu1 }
 0x82f   : > { %v2902_v17 = vsub.f32 %v2898_v23, %v6207_v61 }
 0x830   : > { %v2892_v12 = vpop.f32.mrf.mxu1 }
 0x831   : > { %v2899_v43 = vmul.f32 0.35355338, %v2892_v12  ;;  %v2910_v29 = vsel %vm2245_vm1, %v2902_v17, -inf }
 0x832   : > { %2911 = vmax.xlane.f32.xlu0 %v2910_v29  ;;  %v4604_v22 = vpop.f32.mrf.mxu1 }
 0x833   : > { %v2903_v27 = vsub.f32 %v2899_v43, %v6207_v61 }
 0x835   : > { %v2913_v57 = vsel %vm2245_vm1, %v2903_v27, -inf }
 0x836   : > { %2914 = vmax.xlane.f32.xlu1 %v2913_v57 }
 0x8a5   : > { %v2561_v32 = vpop.f32.mrf.mxu0 }
 0x8a7   : > { %v4545_v62 = vpop.f32.mrf.mxu0 }
 0x8a9   : > { %v2564_v25 = vpop.f32.mrf.mxu0 }
 0x8aa   : > { %v2612_v55 = vpack.c.bf16 %v2564_v25, %v2561_v32 }
 0x8ab   : > { %v4546_v46 = vpop.f32.mrf.mxu0 }
 0x8ac   : > { %4569 = vmatprep.mubr.bf16.mxu0 %v2612_v55 }
 0x8ad   : > { %4570 = vmatmul.mubr.bf16.vlgmr.msra.gmra.mxu0 %v2613_v59 }
 0x8ae   : > { %4594 = vmatpush3.bf16.xpose.msra.mxu0 %v2810_v21  ;;  %4595 = vmatprep.mubr.msk.bf16.mxu0 %vm5402_vm0, %v5401_v16 }
 0x8af   : > { %4605 = vmatprep.subr.bf16.mxu0 %v5401_v16 }
 0x8b5   : > { %4596 = vmatmul.mubr.bf16.vlgmr.msra.gmra.mxu0 %v6639_v15 }
 0x8b6   : > { %4606 = vmatpush3.bf16.msra.mxu0 %v6640_v13  ;;  %4607 = vmatprep.mubr.msk.bf16.mxu0 %vm5402_vm0, %v5401_v16 }
 0x8bb   : > { %v2912_v49 = vpop.xlane.xlu0 %2911 }
 0x8bc   : > { %v2918_v63 = vsub.f32 %v2902_v17, %v2912_v49 }
 0x8be   : > { %v2924_v42 = vmul.f32 1.442695, %v2918_v63 }
 0x8bf   : > { %v2915_v56 = vpop.xlane.xlu1 %2914 }
 0x8c0   : > { %4982 = vpow2.f32 %v2924_v42  ;;  %v2919_v21 = vsub.f32 %v2903_v27, %v2915_v56 }
 0x8c2   : > { %v2926_v2 = vmul.f32 1.442695, %v2919_v21 }
 0x8c4   : > { %4984 = vpow2.f32 %v2926_v2 }
 0x8cd   : > { %v4983_v6 = vpop.eup %4982 }
 0x8ce   : > { %v2934_v48 = vsel %vm2245_vm1, %v4983_v6, 0.0 }
 0x8cf   : > { %2935 = vadd.xlane.f32.xlu0 %v2934_v48 }
 0x8d1   : > { %v4985_v34 = vpop.eup %4984 }
 0x8d2   : > { %v2937_v41 = vsel %vm2245_vm1, %v4985_v34, 0.0 }
 0x8d3   : > { %2938 = vadd.xlane.f32.xlu1 %v2937_v41 }
 0x958   : > { %v2936_v14 = vpop.xlane.xlu0 %2935 }
 0x959   : > { %4986 = vrcp.f32 %v2936_v14 }
 0x95c   : > { %v2939_v24 = vpop.xlane.xlu1 %2938 }
 0x95d   : > { %4988 = vrcp.f32 %v2939_v24 }
 0x966   : > { %v4987_v50 = vpop.eup %4986 }
 0x967   : > { %v2946_v47 = vmul.f32 %v4987_v50, %v4983_v6 }
 0x96a   : > { %v4989_v52 = vpop.eup %4988 }
 0x96b   : > { %v2947_v60 = vmul.f32 %v4989_v52, %v4985_v34 }
 0x96d   : > { %v6335_v5 = vpop.f32.mrf.mxu0  ;;  %v2949_v54 = vpack.c.bf16 %v2947_v60, %v2946_v47 }
 0x96f   : > { %4614 = vmatmul.mubr.msk.bf16.vlgmr.msra.gmra.mxu1 %vm2245_vm1, %v2949_v54  ;;  %v6338_v11 = vpop.f32.mrf.mxu0 }
 0x970   : > { %4638 = vmatpush3.bf16.xpose.msra.mxu1 %v6641_v36  ;;  %4639 = vmatprep.mubr.msk.bf16.mxu1 %vm5402_vm0, %v5401_v16 }
 0x971   : > { %v6345_v38 = vpop.f32.mrf.mxu0  ;;  %4643 = vmatprep.subr.bf16.mxu1 %v5401_v16 }
 0x973   : > { %v6348_v37 = vpop.f32.mrf.mxu0 }
 0x975   : > { %v2848_v26 = vpop.f32.mrf.mxu0 }
 0x976   : > { %v2896_v10 = vmul.f32 0.35355338, %v2848_v26 }
 0x977   : > { %4640 = vmatmul.mubr.bf16.vlgmr.msra.gmra.mxu1 %v6642_v4  ;;  %v4597_v59 = vpop.f32.mrf.mxu0 }
 0x978   : > { %4644 = vmatpush3.bf16.xpose.msra.mxu1 %v6643_v18  ;;  %v2900_v58 = vsub.f32 %v2896_v10, %v6195_v28  ;;  %4645 = vmatprep.mubr.msk.bf16.mxu1 %vm5402_vm0, %v5401_v16 }
 0x979   : > { %v2851_v0 = vpop.f32.mrf.mxu0  ;;  %4649 = vmatprep.subr.bf16.mxu1 %v5401_v16 }
 0x97a   : > { %v2897_v39 = vmul.f32 0.35355338, %v2851_v0  ;;  %v2904_v30 = vsel %vm2245_vm1, %v2900_v58, -inf }
 0x97b   : > { %v4598_v23 = vpop.f32.mrf.mxu0  ;;  %2905 = vmax.xlane.f32.xlu0 %v2904_v30 }
 0x97c   : > { %v2901_v40 = vsub.f32 %v2897_v39, %v6195_v28 }
 0x97e   : > { %v2907_v44 = vsel %vm2245_vm1, %v2901_v40, -inf }
 0x97f   : > { %4646 = vmatmul.mubr.bf16.vlgmr.msra.gmra.mxu1 %v6644_v1  ;;  %2908 = vmax.xlane.f32.xlu1 %v2907_v44 }
 0x980   : > { %4650 = vmatpush3.bf16.msra.mxu1 %v6645_v7  ;;  %4651 = vmatprep.mubr.msk.bf16.mxu1 %vm5402_vm0, %v5401_v16 }
 0x981   : > { %4655 = vmatprep.subr.bf16.mxu1 %v5401_v16 }
 0xa04   : > { %v2906_v20 = vpop.xlane.xlu0 %2905 }
 0xa05   : > { %v2916_v12 = vsub.f32 %v2900_v58, %v2906_v20 }
 0xa07   : > { %v2920_v33 = vmul.f32 1.442695, %v2916_v12 }
 0xa08   : > { %v2909_v43 = vpop.xlane.xlu1 %2908 }
 0xa09   : > { %v2917_v53 = vsub.f32 %v2901_v40, %v2909_v43  ;;  %4990 = vpow2.f32 %v2920_v33 }
 0xa0b   : > { %v2922_v57 = vmul.f32 1.442695, %v2917_v53 }
 0xa0d   : > { %4992 = vpow2.f32 %v2922_v57 }
 0xa16   : > { %v4991_v41 = vpop.eup %4990 }
 0xa17   : > { %v2928_v50 = vsel %vm2245_vm1, %v4991_v41, 0.0 }
 0xa1a   : > { %v4993_v52 = vpop.eup %4992 }
 0xa1b   : > { %v2931_v47 = vsel %vm2245_vm1, %v4993_v52, 0.0 }
 0xa2f   : > { %v6372_v17 = vpop.f32.mrf.mxu1 }
 0xa31   : > { %v4615_v29 = vpop.f32.mrf.mxu1 }
 0xa33   : > { %v6374_v22 = vpop.f32.mrf.mxu1 }
 0xa34   : > { %v3039_v27 = vpack.c.bf16 %v6374_v22, %v6372_v17  ;;  %v4933_v17 = vld [vmem:[%s5880_s8 + $0xc0] sm:$0xff]  }
 0xa35   : > { %v4616_v3 = vpop.f32.mrf.mxu1 }
 0xa37   : > { %v3181_v35 = vpop.f32.mrf.mxu1 }
 0xa38   : > { %v3229_v32 = vmul.f32 0.35355338, %v3181_v35 }
 0xa39   : > { %v4641_v62 = vpop.f32.mrf.mxu1 }
 0xa3a   : > { %v3233_v25 = vsub.f32 %v3229_v32, %v6195_v28  ;;  %v4918_v32 = vld [vmem:[%s5880_s8 + $0xb8] sm:$0xff]   ;;  %v4919_v62 = vld [vmem:[%s5880_s8 + $0xb0] sm:$0xff]  }
 0xa3b   : > { %v3184_v55 = vpop.f32.mrf.mxu1  ;;  %4617 = vmatprep.subr.bf16.mxu0 %v4918_v32 }
 0xa3c   : > { %v3230_v46 = vmul.f32 0.35355338, %v3184_v55  ;;  %v3237_v15 = vsel %vm2245_vm1, %v3233_v25, -inf  ;;  %v4921_v55 = vld [vmem:[%s5880_s8 + $0xa0] sm:$0xff]  }
 0xa3d   : > { %3238 = vmax.xlane.f32.xlu0 %v3237_v15  ;;  %v4642_v13 = vpop.f32.mrf.mxu1  ;;  %v4923_v15 = vld [vmem:[%s5880_s8 + $0x90] sm:$0xff]  }
 0xa3e   : > { %v3234_v49 = vsub.f32 %v3230_v46, %v6195_v28  ;;  %v4922_v46 = vld [vmem:[%s5880_s8 + $0x98] sm:$0xff]   ;;  %v4924_v13 = vld [vmem:[%s5880_s8 + $0x88] sm:$0xff]  }
 0xa3f   : > { %v3222_v63 = vpop.f32.mrf.mxu1 }
 0xa40   : > { %v3231_v42 = vmul.f32 0.35355338, %v3222_v63  ;;  %v3240_v56 = vsel %vm2245_vm1, %v3234_v49, -inf  ;;  %v4926_v63 = vld [vmem:[%s5880_s8 + $0xf8] sm:$0xff]  }
 0xa41   : > { %3241 = vmax.xlane.f32.xlu1 %v3240_v56  ;;  %v4647_v21 = vpop.f32.mrf.mxu1 }
 0xa42   : > { %v3235_v2 = vsub.f32 %v3231_v42, %v6207_v61 }
 0xa43   : > { %v3225_v6 = vpop.f32.mrf.mxu1 }
 0xa44   : > { %v3232_v48 = vmul.f32 0.35355338, %v3225_v6  ;;  %v3243_v34 = vsel %vm2245_vm1, %v3235_v2, -inf }
 0xa45   : > { %3244 = vmax.xlane.f32.xlu0 %v3243_v34  ;;  %v4648_v14 = vpop.f32.mrf.mxu1 }
 0xa46   : > { %v3236_v24 = vsub.f32 %v3232_v48, %v6207_v61 }
 0xa48   : > { %v3246_v28 = vsel %vm2245_vm1, %v3236_v24, -inf }
 0xa49   : > { %2929 = vadd.xlane.f32.xlu0 %v2928_v50  ;;  %3247 = vmax.xlane.f32.xlu1 %v3246_v28  ;;  %v6646_v50 = vpack.c.bf16 %v6175_v9, %v6169_v51  ;;  %v4927_v51 = vld [vmem:[%s5880_s8 + $0xf0] sm:$0xff]   ;;  %v4929_v9 = vld [vmem:[%s5880_s8 + $0xe0] sm:$0xff]  }
 0xa4d   : > { %2932 = vadd.xlane.f32.xlu1 %v2931_v47 }
 0xac6   : > { %v3239_v60 = vpop.xlane.xlu0 %3238 }
 0xac7   : > { %v3249_v54 = vsub.f32 %v3233_v25, %v3239_v60  ;;  %v4920_v25 = vld [vmem:[%s5880_s8 + $0xa8] sm:$0xff]  }
 0xac9   : > { %v3253_v36 = vmul.f32 1.442695, %v3249_v54 }
 0xaca   : > { %v3242_v26 = vpop.xlane.xlu1 %3241 }
 0xacb   : > { %4994 = vpow2.f32 %v3253_v36  ;;  %v3250_v10 = vsub.f32 %v3234_v49, %v3242_v26  ;;  %v4925_v49 = vld [vmem:[%s5880_s8 + $0x80] sm:$0xff]  }
 0xacd   : > { %v3255_v4 = vmul.f32 1.442695, %v3250_v10 }
 0xace   : > { %v3245_v59 = vpop.xlane.xlu0 %3244 }
 0xacf   : > { %4996 = vpow2.f32 %v3255_v4  ;;  %v3251_v61 = vsub.f32 %v3235_v2, %v3245_v59  ;;  %v4930_v59 = vld [vmem:[%s5880_s8 + $0xd8] sm:$0xff]  }
 0xad1   : > { %v3257_v18 = vmul.f32 1.442695, %v3251_v61  ;;  %v4931_v61 = vld [vmem:[%s5880_s8 + $0xd0] sm:$0xff]  }
 0xad2   : > { %v3248_v58 = vpop.xlane.xlu1 %3247  ;;  %v2930_v0 = vpop.xlane.xlu0 %2929 }
 0xad3   : > { %4998 = vpow2.f32 %v3257_v18  ;;  %v3252_v39 = vsub.f32 %v3236_v24, %v3248_v58  ;;  %v4932_v18 = vld [vmem:[%s5880_s8 + $0xc8] sm:$0xff]  }
 0xad4   : > { %5000 = vrcp.f32 %v2930_v0 }
 0xad5   : > { %v3259_v30 = vmul.f32 1.442695, %v3252_v39 }
 0xad6   : > { %v2933_v23 = vpop.xlane.xlu1 %2932 }
 0xad7   : > { %5002 = vpow2.f32 %v3259_v30 }
 0xad8   : > { %v4995_v40 = vpop.eup %4994  ;;  %5004 = vrcp.f32 %v2933_v23 }
 0xad9   : > { %v3261_v44 = vsel %vm2245_vm1, %v4995_v40, 0.0 }
 0xada   : > { %3262 = vadd.xlane.f32.xlu0 %v3261_v44 }
 0xadc   : > { %v4997_v1 = vpop.eup %4996 }
 0xadd   : > { %v3264_v7 = vsel %vm2245_vm1, %v4997_v1, 0.0 }
 0xade   : > { %3265 = vadd.xlane.f32.xlu1 %v3264_v7 }
 0xae0   : > { %v4999_v20 = vpop.eup %4998 }
 0xae1   : > { %v3267_v12 = vsel %vm2245_vm1, %v4999_v20, 0.0  ;;  %v5001_v43 = vpop.eup %5000 }
 0xae2   : > { %3268 = vadd.xlane.f32.xlu0 %v3267_v12  ;;  %v2944_v3 = vmul.f32 %v5001_v43, %v4991_v41  ;;  %v2802_v43 = vadd.f32 %v6305_v19, %v6335_v5  ;;  %v2797_v19 = vadd.f32 %v6312_v31, %v6348_v37  ;;  %v5032_v31 = vld [vmem:[#allocation16] sm:$0xff] }
 0xae4   : > { %v5003_v29 = vpop.eup %5002 }
 0xae5   : > { %v5005_v33 = vpop.eup %5004  ;;  %v3270_v53 = vsel %vm2245_vm1, %v5003_v29, 0.0 }
 0xae6   : > { %3271 = vadd.xlane.f32.xlu1 %v3270_v53  ;;  %v2945_v35 = vmul.f32 %v5005_v33, %v4993_v52  ;;  %v2794_v33 = vadd.f32 %v6307_v45, %v6338_v11 }
 0xae8   : > { %v2948_v57 = vpack.c.bf16 %v2945_v35, %v2944_v3  ;;  %v4350_v3 = vld [vmem:[%s6647_s0] ss:$0 sm:$0xff] }
 0xaea   : > { %4608 = vmatmul.mubr.msk.bf16.vlgmr.msra.gmra.mxu0 %vm2245_vm1, %v2948_v57  ;;  %v2805_v57 = vadd.f32 %v6310_v8, %v6345_v38  ;;  %v5031_v38 = vld [vmem:[#allocation16 + $0x18] sm:$0xff] }
 0xaeb   : > { %4618 = vmatpush3.bf16.msra.mxu0 %v4918_v32 }
 0xaec   : > { %4619 = vmatprep.subr.bf16.mxu0 %v4919_v62 }
 0xaef   : > { %4620 = vmatpush3.bf16.msra.mxu0 %v4919_v62 }
 0xaf0   : > { %4621 = vmatprep.subr.bf16.mxu0 %v4920_v25 }
 0xaf3   : > { %4622 = vmatpush3.bf16.msra.mxu0 %v4920_v25 }
 0xaf4   : > { %4623 = vmatprep.subr.bf16.mxu0 %v4921_v55 }
 0xaf7   : > { %4624 = vmatpush3.bf16.msra.mxu0 %v4921_v55 }
 0xaf8   : > { %4625 = vmatprep.subr.bf16.mxu0 %v4922_v46 }
 0xafb   : > { %4626 = vmatpush3.bf16.msra.mxu0 %v4922_v46 }
 0xafc   : > { %4627 = vmatprep.subr.bf16.mxu0 %v4923_v15 }
 0xaff   : > { %4628 = vmatpush3.bf16.msra.mxu0 %v4923_v15 }
 0xb00   : > { %4629 = vmatprep.subr.bf16.mxu0 %v4924_v13 }
 0xb03   : > { %4630 = vmatpush3.bf16.msra.mxu0 %v4924_v13 }
 0xb04   : > { %4631 = vmatprep.subr.bf16.mxu0 %v4925_v49 }
 0xb07   : > { %4632 = vmatpush3.bf16.msra.mxu0 %v4925_v49  ;;  %v5030_v49 = vld [vmem:[#allocation16 + $0x10] sm:$0xff] }
 0xb08   : > { %4661 = vmatprep.subr.bf16.mxu0 %v4926_v63 }
 0xb63   : > { %v3263_v42 = vpop.xlane.xlu0 %3262 }
 0xb64   : > { %5006 = vrcp.f32 %v3263_v42 }
 0xb67   : > { %v3266_v56 = vpop.xlane.xlu1 %3265 }
 0xb68   : > { %5008 = vrcp.f32 %v3266_v56 }
 0xb6b   : > { %v3269_v21 = vpop.xlane.xlu0 %3268 }
 0xb6c   : > { %5010 = vrcp.f32 %v3269_v21 }
 0xb6f   : > { %v3272_v2 = vpop.xlane.xlu1 %3271 }
 0xb70   : > { %5012 = vrcp.f32 %v3272_v2 }
 0xb71   : > { %v5007_v6 = vpop.eup %5006 }
 0xb72   : > { %v3277_v34 = vmul.f32 %v5007_v6, %v4995_v40  ;;  %v5033_v6 = vld [vmem:[#allocation16 + $0x8] sm:$0xff] }
 0xb75   : > { %v5009_v48 = vpop.eup %5008 }
 0xb76   : > { %v3278_v41 = vmul.f32 %v5009_v48, %v4997_v1 }
 0xb78   : > { %v3281_v14 = vpack.c.bf16 %v3278_v41, %v3277_v34 }
 0xb79   : > { %v5011_v24 = vpop.eup %5010 }
 0xb7a   : > { %4652 = vmatmul.mubr.msk.bf16.vlgmr.msra.gmra.mxu1 %vm2245_vm1, %v3281_v14  ;;  %v3279_v52 = vmul.f32 %v5011_v24, %v4999_v20 }
 0xb7b   : > { %4656 = vmatpush3.bf16.msra.mxu1 %v6646_v50  ;;  %4657 = vmatprep.mubr.msk.bf16.mxu1 %vm5402_vm0, %v5401_v16  ;;  %v4928_v16 = vld [vmem:[%s5880_s8 + $0xe8] sm:$0xff]   ;;  %v4934_v50 = vld [vmem:[%s5882_s4 + $0x38] sm:$0xff]  }
 0xb7c   : > { %4681 = vmatprep.subr.bf16.mxu1 %v4934_v50 }
 0xb7d   : > { %v5013_v28 = vpop.eup %5012 }
 0xb7e   : > { %v3280_v47 = vmul.f32 %v5013_v28, %v5003_v29  ;;  %v4935_v28 = vld [vmem:[%s5882_s4 + $0x30] sm:$0xff]  }
 0xb80   : > { %v3282_v60 = vpack.c.bf16 %v3280_v47, %v3279_v52  ;;  %v4936_v52 = vld [vmem:[%s5882_s4 + $0x28] sm:$0xff]   ;;  %v4937_v47 = vld [vmem:[%s5882_s4 + $0x20] sm:$0xff]  }
 0xb82   : > { %4658 = vmatmul.mubr.msk.bf16.vlgmr.msra.gmra.mxu1 %vm2245_vm1, %v3282_v60  ;;  %v4938_v60 = vld [vmem:[%s5882_s4 + $0x18] sm:$0xff]  }
 0xb83   : > { %4682 = vmatpush3.bf16.msra.mxu1 %v4934_v50 }
 0xb84   : > { %4683 = vmatprep.subr.bf16.mxu1 %v4935_v28 }
 0xb87   : > { %4684 = vmatpush3.bf16.msra.mxu1 %v4935_v28 }
 0xb88   : > { %4685 = vmatprep.subr.bf16.mxu1 %v4936_v52 }
 0xb8b   : > { %4686 = vmatpush3.bf16.msra.mxu1 %v4936_v52  ;;  %v4947_v52 = vld [vmem:[%s5884_s6 + $0x10] sm:$0xff]  }
 0xb8c   : > { %4687 = vmatprep.subr.bf16.mxu1 %v4937_v47 }
 0xb8f   : > { %4688 = vmatpush3.bf16.msra.mxu1 %v4937_v47  ;;  %v4949_v47 = vld [vmem:[%s5884_s6] sm:$0xff]  }
 0xb90   : > { %4689 = vmatprep.subr.bf16.mxu1 %v4938_v60 }
 0xb93   : > { %4690 = vmatpush3.bf16.msra.mxu1 %v4938_v60 }
 0xbaa   : > { %v2987_v54 = vpop.f32.mrf.mxu0 }
 0xbac   : > { %v4609_v36 = vpop.f32.mrf.mxu0 }
 0xbad   : > { %v4940_v36 = vld [vmem:[%s5882_s4 + $0x8] sm:$0xff]  }
 0xbae   : > { %v2990_v26 = vpop.f32.mrf.mxu0 }
 0xbaf   : > { %v3038_v10 = vpack.c.bf16 %v2990_v26, %v2987_v54  ;;  %v4939_v54 = vld [vmem:[%s5882_s4 + $0x10] sm:$0xff]   ;;  %v4941_v26 = vld [vmem:[%s5882_s4] sm:$0xff]  }
 0xbb0   : > { %v4610_v4 = vpop.f32.mrf.mxu0  ;;  %4691 = vmatprep.subr.bf16.mxu1 %v4939_v54 }
 0xbb1   : > { %4633 = vmatprep.mubr.bf16.mxu0 %v3038_v10  ;;  %4692 = vmatpush3.bf16.msra.mxu1 %v4939_v54  ;;  %v4942_v10 = vld [vmem:[%s5884_s6 + $0x38] sm:$0xff]   ;;  %v4943_v4 = vld [vmem:[%s5884_s6 + $0x30] sm:$0xff]  }
 0xbb2   : > { %4634 = vmatmul.mubr.bf16.vlgmr.msra.gmra.mxu0 %v3039_v27  ;;  %4693 = vmatprep.subr.bf16.mxu1 %v4940_v36 }
 0xbb3   : > { %4662 = vmatpush3.bf16.msra.mxu0 %v4926_v63 }
 0xbb4   : > { %4663 = vmatprep.subr.bf16.mxu0 %v4927_v51 }
 0xbb5   : > { %4694 = vmatpush3.bf16.msra.mxu1 %v4940_v36  ;;  %v4353_v36 = vld [vmem:[%s951_s7] ss:$0 sm:$0xff] }
 0xbb6   : > { %4695 = vmatprep.subr.bf16.mxu1 %v4941_v26 }
 0xbb7   : > { %4664 = vmatpush3.bf16.msra.mxu0 %v4927_v51  ;;  %v4944_v51 = vld [vmem:[%s5884_s6 + $0x28] sm:$0xff]  }
 0xbb8   : > { %4665 = vmatprep.subr.bf16.mxu0 %v4928_v16 }
 0xbb9   : > { %4696 = vmatpush3.bf16.msra.mxu1 %v4941_v26 }
 0xbbb   : > { %4666 = vmatpush3.bf16.msra.mxu0 %v4928_v16  ;;  %v4945_v16 = vld [vmem:[%s5884_s6 + $0x20] sm:$0xff]  }
 0xbbc   : > { %4667 = vmatprep.subr.bf16.mxu0 %v4929_v9 }
 0xbbf   : > { %4668 = vmatpush3.bf16.msra.mxu0 %v4929_v9  ;;  %v4946_v9 = vld [vmem:[%s5884_s6 + $0x18] sm:$0xff]  }
 0xbc0   : > { %4669 = vmatprep.subr.bf16.mxu0 %v4930_v59 }
 0xbc3   : > { %4670 = vmatpush3.bf16.msra.mxu0 %v4930_v59 }
 0xbc4   : > { %4671 = vmatprep.subr.bf16.mxu0 %v4931_v61 }
 0xbc7   : > { %4672 = vmatpush3.bf16.msra.mxu0 %v4931_v61 }
 0xbc8   : > { %4673 = vmatprep.subr.bf16.mxu0 %v4932_v18 }
 0xbcb   : > { %4674 = vmatpush3.bf16.msra.mxu0 %v4932_v18 }
 0xbcc   : > { %4675 = vmatprep.subr.bf16.mxu0 %v4933_v17 }
 0xbcf   : > { %4676 = vmatpush3.bf16.msra.mxu0 %v4933_v17 }
 0xbd0   : > { %4701 = vmatprep.subr.bf16.mxu0 %v4942_v10 }
 0xc3a   : > { %v3320_v22 = vpop.f32.mrf.mxu1 }
 0xc3c   : > { %v4653_v27 = vpop.f32.mrf.mxu1 }
 0xc3e   : > { %v3323_v58 = vpop.f32.mrf.mxu1 }
 0xc3f   : > { %v3371_v0 = vpack.c.bf16 %v3323_v58, %v3320_v22 }
 0xc40   : > { %v4654_v39 = vpop.f32.mrf.mxu1 }
 0xc41   : > { %4677 = vmatprep.mubr.bf16.mxu0 %v3371_v0 }
 0xc42   : > { %v3364_v30 = vpop.f32.mrf.mxu1 }
 0xc44   : > { %v4659_v23 = vpop.f32.mrf.mxu1 }
 0xc46   : > { %v3367_v40 = vpop.f32.mrf.mxu1 }
 0xc47   : > { %v3372_v44 = vpack.c.bf16 %v3367_v40, %v3364_v30 }
 0xc48   : > { %v4660_v1 = vpop.f32.mrf.mxu1 }
 0xc49   : > { %4678 = vmatmul.mubr.bf16.vlgmr.msra.gmra.mxu0 %v3372_v44 }
 0xc4a   : > { %4702 = vmatpush3.bf16.msra.mxu0 %v4942_v10 }
 0xc4b   : > { %4703 = vmatprep.subr.bf16.mxu0 %v4943_v4 }
 0xc4e   : > { %4704 = vmatpush3.bf16.msra.mxu0 %v4943_v4 }
 0xc4f   : > { %4705 = vmatprep.subr.bf16.mxu0 %v4944_v51 }
 0xc52   : > { %4706 = vmatpush3.bf16.msra.mxu0 %v4944_v51 }
 0xc53   : > { %4707 = vmatprep.subr.bf16.mxu0 %v4945_v16 }
 0xc56   : > { %4708 = vmatpush3.bf16.msra.mxu0 %v4945_v16 }
 0xc57   : > { %4709 = vmatprep.subr.bf16.mxu0 %v4946_v9 }
 0xc5a   : > { %4710 = vmatpush3.bf16.msra.mxu0 %v4946_v9 }
 0xc5b   : > { %4711 = vmatprep.subr.bf16.mxu0 %v4947_v52 }
 0xc5e   : > { %4712 = vmatpush3.bf16.msra.mxu0 %v4947_v52 }
 0xc72   : > { %v4635_v7 = vpop.f32.mrf.mxu0 }
 0xc73   : > { %v3139_v53 = vadd.f32 %v4635_v7, %v2802_v43 }
 0xc74   : > { %v3122_v20 = vpop.f32.mrf.mxu0 }
 0xc75   : > { %v3137_v32 = vadd.f32 %v3122_v20, %v2794_v33 }
 0xc76   : > { %v4636_v12 = vpop.f32.mrf.mxu0 }
 0xc77   : > { %v3140_v5 = vadd.f32 %v4636_v12, %v2805_v57 }
 0xc78   : > { %v3125_v29 = vpop.f32.mrf.mxu0 }
 0xc79   : > { %v3138_v11 = vadd.f32 %v3125_v29, %v2797_v19 }
 0xd09   : > { %v4679_v35 = vpop.f32.mrf.mxu0 }
 0xd0a   : > { %v3472_v62 = vadd.f32 %v4679_v35, %v3139_v53 }
 0xd0b   : > { %v3455_v25 = vpop.f32.mrf.mxu0 }
 0xd0c   : > { %v3482_v55 = vadd.f32 %v4350_v3, %v3472_v62  ;;  %v3470_v46 = vadd.f32 %v3455_v25, %v3137_v32 }
 0xd0d   : > { %v4680_v45 = vpop.f32.mrf.mxu0 }
 0xd0e   : > { %v3480_v15 = vadd.f32 %v4350_v3, %v3470_v46  ;;  %v3473_v13 = vadd.f32 %v4680_v45, %v3140_v5  ;;  %v6432_v63 = vadd.f32 %v5030_v49, %v3482_v55  ;;  %v4351_v45 = vld [vmem:[%s945_s28] ss:$0 sm:$0xff] }
 0xd0f   : > { %v3458_v42 = vpop.f32.mrf.mxu0 }
 0xd10   : > { %v3483_v56 = vadd.f32 %v4350_v3, %v3473_v13  ;;  %v3471_v21 = vadd.f32 %v3458_v42, %v3138_v11  ;;  %3494 = vadd.xlane.f32.xlu0 %v6432_v63  ;;  %v6437_v37 = vadd.f32 %v5032_v31, %v3480_v15  ;;  %v3505_v14 = vmul.f32 %v6432_v63, %v6432_v63 }
 0xd12   : > { %v3481_v8 = vadd.f32 %v4350_v3, %v3471_v21  ;;  %v6435_v2 = vadd.f32 %v5031_v38, %v3483_v56  ;;  %v3503_v34 = vmul.f32 %v6437_v37, %v6437_v37  ;;  %v4352_v21 = vld [vmem:[%s948_s19] ss:$0 sm:$0xff] }
 0xd14   : > { %3496 = vadd.xlane.f32.xlu1 %v6435_v2  ;;  %3490 = vadd.xlane.f32.xlu0 %v6437_v37  ;;  %v6441_v48 = vadd.f32 %v5033_v6, %v3481_v8  ;;  %v3506_v24 = vmul.f32 %v6435_v2, %v6435_v2 }
 0xd16   : > { %v3504_v41 = vmul.f32 %v6441_v48, %v6441_v48 }
 0xd18   : > { %3492 = vadd.xlane.f32.xlu1 %v6441_v48  ;;  %3507 = vadd.xlane.f32.xlu0 %v3503_v34 }
 0xd1c   : > { %3509 = vadd.xlane.f32.xlu1 %v3504_v41  ;;  %3511 = vadd.xlane.f32.xlu0 %v3505_v14 }
 0xd20   : > { %3513 = vadd.xlane.f32.xlu1 %v3506_v24 }
 0xd99   : > { %v3495_v59 = vpop.xlane.xlu0 %3494 }
 0xd9a   : > { %v3501_v22 = vmul.f32 0.03125, %v3495_v59 }
 0xd9c   : > { %v3521_v40 = vmul.f32 %v3501_v22, %v3501_v22  ;;  %v3529_v13 = vsub.f32 %v6432_v63, %v3501_v22 }
 0xd9d   : > { %v3497_v61 = vpop.xlane.xlu1 %3496  ;;  %v3491_v18 = vpop.xlane.xlu0 %3490 }
 0xd9e   : > { %v3499_v17 = vmul.f32 0.03125, %v3491_v18  ;;  %v3502_v44 = vmul.f32 0.03125, %v3497_v61 }
 0xda0   : > { %v3519_v0 = vmul.f32 %v3499_v17, %v3499_v17  ;;  %v3522_v35 = vmul.f32 %v3502_v44, %v3502_v44  ;;  %v3527_v5 = vsub.f32 %v6437_v37, %v3499_v17  ;;  %v3530_v38 = vsub.f32 %v6435_v2, %v3502_v44  ;;  %v4948_v2 = vld [vmem:[%s5884_s6 + $0x8] sm:$0xff]  }
 0xda1   : > { %v3493_v27 = vpop.xlane.xlu1 %3492  ;;  %v3508_v58 = vpop.xlane.xlu0 %3507  ;;  %4713 = vmatprep.subr.bf16.mxu0 %v4948_v2 }
 0xda2   : > { %v3500_v39 = vmul.f32 0.03125, %v3493_v27  ;;  %v3515_v30 = vmul.f32 0.03125, %v3508_v58  ;;  %4714 = vmatpush3.bf16.msra.mxu0 %v4948_v2  ;;  %v4362_v58 = vld [vmem:[%s954_s29] ss:$0 sm:$0xff] }
 0xda3   : > { %4715 = vmatprep.subr.bf16.mxu0 %v4949_v47  ;;  %v4371_v2 = vld [vmem:[%s957_s23] ss:$0 sm:$0xff]  ;;  %s3899_s23 = sshll.u32 %s5403_s5, 4  ;;  %s3900_s23 = int_to_ptr.vmem [resolvable:$true] %s3899_s23 }
 0xda4   : > { %v3523_v23 = vsub.f32 %v3515_v30, %v3519_v0  ;;  %v3520_v20 = vmul.f32 %v3500_v39, %v3500_v39  ;;  %v3528_v11 = vsub.f32 %v6441_v48, %v3500_v39  ;;  %p5313_p2 = scmp.lt.s32.totalorder %s3900_s23, %s3900_s23 }
 0xda5   : > { %v3510_v1 = vpop.xlane.xlu1 %3509  ;;  %v3512_v7 = vpop.xlane.xlu0 %3511 }
 0xda6   : > { %v3531_v12 = vadd.f32 1e-05, %v3523_v23  ;;  %v3516_v43 = vmul.f32 0.03125, %v3510_v1  ;;  %v3517_v29 = vmul.f32 0.03125, %v3512_v7  ;;  %4716 = vmatpush3.bf16.msra.mxu0 %v4949_v47 }
 0xda8   : > { %5014 = vrsqrt.f32 %v3531_v12  ;;  %v3524_v33 = vsub.f32 %v3516_v43, %v3520_v20  ;;  %v3525_v53 = vsub.f32 %v3517_v29, %v3521_v40 }
 0xda9   : > { %v3514_v3 = vpop.xlane.xlu1 %3513 }
 0xdaa   : > { %v3532_v57 = vadd.f32 1e-05, %v3524_v33  ;;  %v3533_v32 = vadd.f32 1e-05, %v3525_v53  ;;  %v3518_v62 = vmul.f32 0.03125, %v3514_v3 }
 0xdac   : > { %5016 = vrsqrt.f32 %v3532_v57  ;;  %v3526_v25 = vsub.f32 %v3518_v62, %v3522_v35 }
 0xdad   : > { %5018 = vrsqrt.f32 %v3533_v32 }
 0xdae   : > { %v3534_v19 = vadd.f32 1e-05, %v3526_v25 }
 0xdb0   : > { %5020 = vrsqrt.f32 %v3534_v19 }
 0xdb5   : > { %v5015_v55 = vpop.eup %5014 }
 0xdb6   : > { %v3539_v46 = vmul.f32 %v5015_v55, %v3527_v5 }
 0xdb8   : > { %v3549_v56 = vmul.f32 %v4351_v45, %v3539_v46 }
 0xdb9   : > { %v5017_v15 = vpop.eup %5016 }
 0xdba   : > { %v5019_v49 = vpop.eup %5018  ;;  %v3540_v42 = vmul.f32 %v5017_v15, %v3528_v11  ;;  %v3559_v6 = vadd.f32 %v4352_v21, %v3549_v56 }
 0xdbb   : > { %v3541_v8 = vmul.f32 %v5019_v49, %v3529_v13 }
 0xdbc   : > { %v3550_v31 = vmul.f32 %v4351_v45, %v3540_v42 }
 0xdbd   : > { %v5021_v37 = vpop.eup %5020  ;;  %v3551_v63 = vmul.f32 %v4351_v45, %v3541_v8 }
 0xdbe   : > { %v3560_v48 = vadd.f32 %v4352_v21, %v3550_v31  ;;  %v3542_v34 = vmul.f32 %v5021_v37, %v3530_v38 }
 0xdbf   : > { %v3561_v24 = vadd.f32 %v4352_v21, %v3551_v63 }
 0xdc0   : > { %v3563_v41 = vpack.c.bf16 %v3560_v48, %v3559_v6  ;;  %v3552_v14 = vmul.f32 %v4351_v45, %v3542_v34 }
 0xdc2   : > { %4697 = vmatprep.mubr.bf16.mxu1 %v3563_v41  ;;  %v3562_v50 = vadd.f32 %v4352_v21, %v3552_v14 }
 0xdc4   : > { %v3564_v28 = vpack.c.bf16 %v3562_v50, %v3561_v24 }
 0xdc6   : > { %4698 = vmatmul.mubr.bf16.vlgmr.msra.gmra.mxu1 %v3564_v28 }
 0xe86   : > { %v4699_v60 = vpop.f32.mrf.mxu1 }
 0xe87   : > { %v3679_v51 = vadd.f32 %v4699_v60, %v4353_v36  ;;  %v4372_v60 = vld [vmem:[%s960_s2] ss:$0 sm:$0xff]  ;;  %s5306_s2 = scalar_lea.vmem %s3900_s23, 512 }
 0xe88   : > { %v3670_v54 = vpop.f32.mrf.mxu1  ;;  %p5307_p1 = scmp.ne.s32.totalorder %s3900_s23, %s5306_s2  ;;  %p5314_p8 = scmp.lt.s32.totalorder %s5306_s2, %s5306_s2 }
 0xe89   : > { %v3671_v10 = vadd.f32 %v4353_v36, %v3670_v54  ;;  %v3687_v17 = vmax.f32 %v3679_v51, 0.0 }
 0xe8a   : > { %v4700_v26 = vpop.f32.mrf.mxu1  ;;  %p5308_p3 = pnand %p5307_p1, %p4794_p13  ;;  %p5315_p4 = por %p5314_p8, %p5313_p2 }
 0xe8b   : > { %v3682_v4 = vadd.f32 %v4700_v26, %v4353_v36  ;;  %v3685_v61 = vmax.f32 %v3671_v10, 0.0 }
 0xe8c   : > { %v3673_v16 = vpop.f32.mrf.mxu1  ;;  %p5309_p5 = pneg %p5308_p3 }
 0xe8d   : > { %v3674_v9 = vadd.f32 %v4353_v36, %v3673_v16  ;;  %v3688_v59 = vmax.f32 %v3682_v4, 0.0 }
 0xe8e   : > { %p5316_p10 = pnand %p5315_p4, %p5309_p5 }
 0xe8f   : > { %v3686_v18 = vmax.f32 %v3674_v9, 0.0  ;;  %v3690_v27 = vpack.c.bf16 %v3688_v59, %v3687_v17 }
 0xe91   : > { %v3689_v22 = vpack.c.bf16 %v3686_v18, %v3685_v61 }
 0xe93   : > { %4717 = vmatprep.mubr.bf16.mxu0 %v3689_v22 }
 0xe94   : > { %4718 = vmatmul.mubr.bf16.vlgmr.msra.gmra.mxu0 %v3690_v27 }
 0xf54   : > { %v4719_v0 = vpop.f32.mrf.mxu0 }
 0xf55   : > { %v3805_v39 = vadd.f32 %v4719_v0, %v4362_v58 }
 0xf56   : > { %v3796_v30 = vpop.f32.mrf.mxu0 }
 0xf57   : > { %v6492_v23 = vadd.f32 %v3805_v39, %v3561_v24  ;;  %v3797_v40 = vadd.f32 %v4362_v58, %v3796_v30 }
 0xf58   : > { %v4720_v44 = vpop.f32.mrf.mxu0 }
 0xf59   : > { %v3808_v1 = vadd.f32 %v4720_v44, %v4362_v58  ;;  %3821 = vadd.xlane.f32.xlu0 %v6492_v23  ;;  %v3811_v20 = vadd.f32 %v3797_v40, %v3559_v6  ;;  %v3831_v3 = vmul.f32 %v6492_v23, %v6492_v23 }
 0xf5a   : > { %v3799_v7 = vpop.f32.mrf.mxu0 }
 0xf5b   : > { %v6495_v12 = vadd.f32 %v3808_v1, %v3562_v50  ;;  %v3800_v43 = vadd.f32 %v4362_v58, %v3799_v7  ;;  %v3829_v33 = vmul.f32 %v3811_v20, %v3811_v20 }
 0xf5d   : > { %3823 = vadd.xlane.f32.xlu1 %v6495_v12  ;;  %3817 = vadd.xlane.f32.xlu0 %v3811_v20  ;;  %v3812_v29 = vadd.f32 %v3800_v43, %v3560_v48  ;;  %v3832_v35 = vmul.f32 %v6495_v12, %v6495_v12 }
 0xf5f   : > { %v3830_v53 = vmul.f32 %v3812_v29, %v3812_v29 }
 0xf61   : > { %3819 = vadd.xlane.f32.xlu1 %v3812_v29  ;;  %3833 = vadd.xlane.f32.xlu0 %v3829_v33 }
 0xf65   : > { %3835 = vadd.xlane.f32.xlu1 %v3830_v53  ;;  %3837 = vadd.xlane.f32.xlu0 %v3831_v3 }
 0xf69   : > { %3839 = vadd.xlane.f32.xlu1 %v3832_v35 }
 0xfe2   : > { %v3822_v57 = vpop.xlane.xlu0 %3821 }
 0xfe3   : > { %v3827_v19 = vmul.f32 0.03125, %v3822_v57 }
 0xfe5   : > { %v3847_v13 = vmul.f32 %v3827_v19, %v3827_v19  ;;  %v3855_v10 = vsub.f32 %v6492_v23, %v3827_v19 }
 0xfe6   : > { %v3824_v32 = vpop.xlane.xlu1 %3823  ;;  %v3818_v62 = vpop.xlane.xlu0 %3817 }
 0xfe7   : > { %v3825_v25 = vmul.f32 0.03125, %v3818_v62  ;;  %v3828_v49 = vmul.f32 0.03125, %v3824_v32 }
 0xfe9   : > { %v3845_v46 = vmul.f32 %v3825_v25, %v3825_v25  ;;  %v3848_v34 = vmul.f32 %v3828_v49, %v3828_v49  ;;  %v3853_v28 = vsub.f32 %v3811_v20, %v3825_v25  ;;  %v3856_v59 = vsub.f32 %v6495_v12, %v3828_v49 }
 0xfea   : > { %v3820_v5 = vpop.xlane.xlu1 %3819  ;;  %v3834_v55 = vpop.xlane.xlu0 %3833 }
 0xfeb   : > { %v3826_v45 = vmul.f32 0.03125, %v3820_v5  ;;  %v3841_v11 = vmul.f32 0.03125, %v3834_v55 }
 0xfed   : > { %v3849_v15 = vsub.f32 %v3841_v11, %v3845_v46  ;;  %v3846_v21 = vmul.f32 %v3826_v45, %v3826_v45  ;;  %v3854_v54 = vsub.f32 %v3812_v29, %v3826_v45 }
 0xfee   : > { %v3836_v42 = vpop.xlane.xlu1 %3835  ;;  %v3838_v56 = vpop.xlane.xlu0 %3837 }
 0xfef   : > { %v3857_v8 = vadd.f32 1e-05, %v3849_v15  ;;  %v3842_v38 = vmul.f32 0.03125, %v3836_v42  ;;  %v3843_v31 = vmul.f32 0.03125, %v3838_v56 }
 0xff1   : > { %5022 = vrsqrt.f32 %v3857_v8  ;;  %v3850_v37 = vsub.f32 %v3842_v38, %v3846_v21  ;;  %v3851_v6 = vsub.f32 %v3843_v31, %v3847_v13 }
 0xff2   : > { %v3840_v48 = vpop.xlane.xlu1 %3839 }
 0xff3   : > { %v3858_v63 = vadd.f32 1e-05, %v3850_v37  ;;  %v3859_v41 = vadd.f32 1e-05, %v3851_v6  ;;  %v3844_v14 = vmul.f32 0.03125, %v3840_v48 }
 0xff5   : > { %5024 = vrsqrt.f32 %v3858_v63  ;;  %v3852_v24 = vsub.f32 %v3844_v14, %v3848_v34 }
 0xff6   : > { %5026 = vrsqrt.f32 %v3859_v41 }
 0xff7   : > { %v3860_v50 = vadd.f32 1e-05, %v3852_v24 }
 0xff9   : > { %5028 = vrsqrt.f32 %v3860_v50 }
 0xffe   : > { %v5023_v52 = vpop.eup %5022 }
 0xfff   : > { %v3865_v47 = vmul.f32 %v5023_v52, %v3853_v28 }
0x1001   : > { %v3875_v36 = vmul.f32 %v4371_v2, %v3865_v47 }
0x1002   : > { %v5025_v26 = vpop.eup %5024 }
0x1003   : > { %v5027_v4 = vpop.eup %5026  ;;  %v3866_v51 = vmul.f32 %v5025_v26, %v3854_v54  ;;  %v3885_v16 = vadd.f32 %v4372_v60, %v3875_v36 }
0x1004   : > { %v3867_v9 = vmul.f32 %v5027_v4, %v3855_v10 }
0x1005   : > { %v3876_v61 = vmul.f32 %v4371_v2, %v3866_v51  ;;  %3889 = vst [vmem:[#allocation16] sm:$0xff] %v3885_v16 }
0x1006   : > { %v5029_v18 = vpop.eup %5028  ;;  %v3877_v17 = vmul.f32 %v4371_v2, %v3867_v9 }
0x1007   : > { %v3868_v22 = vmul.f32 %v5029_v18, %v3856_v59  ;;  %v3886_v27 = vadd.f32 %v4372_v60, %v3876_v61 }
0x1008   : > { %v3887_v58 = vadd.f32 %v4372_v60, %v3877_v17 }
0x1009   : > { %v3878_v0 = vmul.f32 %v4371_v2, %v3868_v22  ;;  %3890 = vst [vmem:[#allocation16 + $0x8] sm:$0xff] %v3886_v27 }
0x100a   : > { %3891 = vst [vmem:[#allocation16 + $0x10] sm:$0xff] %v3887_v58 }
0x100b   : > { %v3888_v39 = vadd.f32 %v4372_v60, %v3878_v0 }
0x100d   : > { %3892 = vst [vmem:[#allocation16 + $0x18] sm:$0xff] %v3888_v39 }
0x100e   : > { %5319 = shalt.err (!%p5316_p10)
}
0x100f   : > { %s5404_s13 = smov 128   ;;  %s5405_s17 = smov 8  }
0x1010   : > { %s6654_s20 = sld [smem:[#allocation43_spill]] }
0x1016   : > { %4750 = dma.vmem_to_hbm [thread:$0]  (%p4794_p13), %s3900_s23, 512, %s6654_s20, [#allocation4], %s5404_s13, %s5404_s13, %s5405_s17  }
0x1017   : > { %5363 = dma.done.wait (%p4794_p13), [#allocation4], 512  }
0x1018   : > { %5365 = vsyncadd (%p4794_p13), [#allocation4], 4294966784 }
0x1019 PF: > { %s6655_s21 = sld [smem:[#allocation23_spill]]  ;;  %s6658_s0 = smov %s5372_s30 }
0x101a   : > { %s6656_s26 = sld [smem:[#allocation22_spill]] }
0x101b   : > { %s6657_s20 = sld [smem:[#allocation24_spill]] }
0x101f   : > { %p30_p12 = scmp.ge.s32.totalorder %s6655_s21, 4  }
0x1020   : > { %s6659_s30 = smov %s6656_s26 }
0x1021   :  { %32 = sbr.rel (!%p30_p12) target bundleno = 25 (0x19), region = 231 }
0x1026   :  { %3915 = vsyncpa [#allocation3], 1 }
0x1027   :  { %3917 = vsyncpa [#allocation3 + $0x1], 1 }
0x1028   :  { %3918 = vsyncpa [#allocation6], 1 }
0x1029   :  { %3919 = vsyncpa [#allocation9], 1 }
0x102a   :  { %3920 = vsyncpa [#allocation4], 1 }
0x102b   :  { %3922 = vsyncpa [#allocation4 + $0x1], 1 }

</bundles_post_ra>
